<compile_context>
chip_gen: v6e
topology: v6e:2x2x1
jax: 0.10.0
libtpu: 0.0.40
codegen_flags: <defaults>
</compile_context>

<pallas_src>
import functools

import jax
import jax.numpy as jnp
from jax.experimental import pallas as pl
from jax.experimental.pallas import tpu as pltpu

GATE_PAD = 128    # lanes per gate block (i/f/g/o each padded to a full vreg width)
HID_PAD = 128     # padded hidden width of the h/c state (lane-aligned)
BATCH_PAD = 8     # padded batch rows (one full sublane tile)


def _lstm_proj_kernel(x_ref, gate_ref, rec_ref, proj_ref, out_ref, *,
                      seq, batch, in_dim, b0_row, b1_row):
    """Two-layer LSTM wavefront + per-timestep projection, fully VMEM-resident.

    x_ref    : (seq*BATCH_PAD, in_dim)       f32, time-major, batch padded to 8
    gate_ref : (b1_row+8, 4*GATE_PAD)        f32 slab: rows [0:in_dim]=W_ih0,
                                             row b0_row=b0, row b1_row=b1
                                             (fused gates i,f,g,o; i/f/o cols
                                             pre-scaled by 0.5; bias = b_ih+b_hh)
    rec_ref  : (3*HID_PAD, 4*GATE_PAD)       bf16 slab: [W_hh0 ; W_ih1 ; W_hh1]
    proj_ref : (batch*HID_PAD+8, out)        f32 slab: per-batch (HID_PAD,out)
                                             blocks of W_proj^T, then bias row
    out_ref  : (seq, out)                    f32
    """
    GP = GATE_PAD
    bf16 = jnp.bfloat16

    # ---- load parameters once (static slices; off the serial chain) ----
    w_ih0 = gate_ref[0:in_dim, :]                            # (in, 4*GP)  f32
    b0 = gate_ref[b0_row:b0_row + 1, :]                      # (1, 4*GP)
    b1 = gate_ref[b1_row:b1_row + 1, :]                      # (1, 4*GP)
    w_hh0 = rec_ref[0:HID_PAD, :]                            # (128, 4*GP) bf16
    w_l1 = rec_ref[HID_PAD:3 * HID_PAD, :]                   # (256, 4*GP) bf16
    w_proj = [proj_ref[b * HID_PAD:(b + 1) * HID_PAD, :] for b in range(batch)]
    b_proj = proj_ref[batch * HID_PAD:batch * HID_PAD + 1, :]   # (1, out)

    # ---- hoisted, time-parallel layer-0 input projection (off the chain) ----
    pre0_all = jnp.dot(x_ref[...], w_ih0,
                       preferred_element_type=jnp.float32) + b0   # (seq*8, 4*GP)

    def gates(pre):
        # Host side pre-scales the i/f/o gate columns (weights + bias) by 0.5,
        # so a single tanh over the whole padded pre-activation covers all four
        # gates:  sigmoid(z) = 0.5*tanh(z/2) + 0.5 (exact identity), g = tanh(z).
        t = jnp.tanh(pre)
        i = 0.5 * t[:, 0 * GP:1 * GP] + 0.5
        f = 0.5 * t[:, 1 * GP:2 * GP] + 0.5
        g = t[:, 2 * GP:3 * GP]
        o = 0.5 * t[:, 3 * GP:4 * GP] + 0.5
        return i, f, g, o

    zero_state = jnp.zeros((BATCH_PAD, HID_PAD), jnp.float32)
    h1 = c1 = h2 = c2 = zero_state
    h1_b = h2_b = zero_state.astype(bf16)

    # Fully unrolled wavefront: layer-1 step t is issued right after layer-0
    # produces h1[t]; it does not feed layer-0 step t+1, so the scheduler
    # overlaps them and the critical path is ~seq+1 recurrent steps, not 2*seq.
    for t in range(seq):   # static full unroll: seq is small & fixed
        # ---- layer 0, step t (serial chain; single bf16 fused-gate matmul) ----
        pre0 = pre0_all[t * BATCH_PAD:(t + 1) * BATCH_PAD, :] + jnp.dot(
            h1_b, w_hh0, preferred_element_type=jnp.float32)      # (8, 4*GP)
        i0, f0, g0, o0 = gates(pre0)
        c1 = f0 * c1 + i0 * g0
        h1 = o0 * jnp.tanh(c1)
        h1_b = h1.astype(bf16)

        # ---- layer 1, step t: input + hidden matmuls fused into one dot ----
        x1 = jnp.concatenate([h1_b, h2_b], axis=1)                # (8, 256) bf16
        pre1 = jnp.dot(x1, w_l1, preferred_element_type=jnp.float32) + b1
        i1, f1, g1, o1 = gates(pre1)
        c2 = f1 * c2 + i1 * g1
        h2 = o1 * jnp.tanh(c2)
        h2_b = h2.astype(bf16)

        # TODO(synk): F.dropout(x, p=0.5) in the reference forward discards its
        # result, so it is a no-op and intentionally omitted.

        # ---- projection of timestep t (tiny; hidden under the next step) ----
        o_t = b_proj
        for b in range(batch):                                    # batch is tiny & static
            o_t = o_t + jnp.dot(h2[b:b + 1, :], w_proj[b],
                                preferred_element_type=jnp.float32)
        out_ref[t:t + 1, :] = o_t


def prepare_params(w_ih0, w_hh0, b_ih0, b_hh0, w_ih1, w_hh1, b_ih1, b_hh1,
                   w_proj, b_proj):
    """One-time host-side packing of PyTorch-layout parameters into kernel slabs."""
    hidden = w_hh0.shape[1]
    in_dim = w_ih0.shape[1]
    out_dim = w_proj.shape[0]
    assert w_proj.shape[1] % hidden == 0, \
        "Linear(50, out) requires batch * hidden_size == 50"
    batch = w_proj.shape[1] // hidden
    GP = GATE_PAD
    assert hidden <= GP and hidden <= HID_PAD and batch <= BATCH_PAD

    # i/f/o (sigmoid) gate columns pre-scaled by 0.5 for the single-tanh trick.
    gate_scale = jnp.array([0.5, 0.5, 1.0, 0.5], jnp.float32)

    def fuse_gates(w):          # (4H, K) torch layout -> (K, 4*GP), padded + scaled
        k = w.shape[1]
        w4 = w.reshape(4, hidden, k) * gate_scale[:, None, None]
        out = jnp.zeros((k, 4 * GP), jnp.float32)
        for g in range(4):
            out = out.at[:, g * GP:g * GP + hidden].set(w4[g].T)
        return out

    def fuse_bias(b_i, b_h):    # -> (4*GP,)
        b = (b_i + b_h).reshape(4, hidden) * gate_scale[:, None]
        out = jnp.zeros((4 * GP,), jnp.float32)
        for g in range(4):
            out = out.at[g * GP:g * GP + hidden].set(b[g])
        return out

    def pad_rows(w, rows):
        return jnp.zeros((rows, w.shape[1]), w.dtype).at[:w.shape[0]].set(w)

    # f32 slab: [W_ih0 ; b0 ; b1], rows 8-aligned.
    b0_row = -(-in_dim // 8) * 8
    b1_row = b0_row + 8
    gate_slab = jnp.zeros((b1_row + 8, 4 * GP), jnp.float32)
    gate_slab = gate_slab.at[:in_dim].set(fuse_gates(w_ih0))
    gate_slab = gate_slab.at[b0_row].set(fuse_bias(b_ih0, b_hh0))
    gate_slab = gate_slab.at[b1_row].set(fuse_bias(b_ih1, b_hh1))

    # bf16 slab with the recurrent-chain weights: [W_hh0 ; W_ih1 ; W_hh1].
    rec_slab = jnp.concatenate(
        [pad_rows(fuse_gates(w_hh0), HID_PAD),
         pad_rows(fuse_gates(w_ih1), HID_PAD),
         pad_rows(fuse_gates(w_hh1), HID_PAD)], axis=0).astype(jnp.bfloat16)

    # Projection slab: per-batch (HID_PAD, out) blocks of W_proj^T, then bias row.
    wpt = w_proj.T                                            # (batch*hidden, out)
    proj_slab = jnp.zeros((batch * HID_PAD + 8, out_dim), jnp.float32)
    for b in range(batch):
        proj_slab = proj_slab.at[b * HID_PAD:b * HID_PAD + hidden].set(
            wpt[b * hidden:(b + 1) * hidden])
    proj_slab = proj_slab.at[batch * HID_PAD].set(b_proj)

    return dict(gate_slab=gate_slab, rec_slab=rec_slab, proj_slab=proj_slab,
                in_dim=in_dim, b0_row=b0_row, b1_row=b1_row,
                batch=batch, out_dim=out_dim)


def lstm_forward(x, params):
    seq, batch, in_dim = x.shape
    assert batch == params["batch"] and in_dim == params["in_dim"], \
        "x shape inconsistent with prepared params (Linear(50,.) => batch*hidden == 50)"
    # Pad batch to one full sublane tile (free FLOP-wise; removes sublane shifts).
    x_pad = jnp.zeros((seq, BATCH_PAD, in_dim), jnp.float32).at[:, :batch, :].set(x)
    x_flat = x_pad.reshape(seq * BATCH_PAD, in_dim)

    kernel = functools.partial(
        _lstm_proj_kernel, seq=seq, batch=batch, in_dim=in_dim,
        b0_row=params["b0_row"], b1_row=params["b1_row"])
    vmem = pl.BlockSpec(memory_space=pltpu.MemorySpace.VMEM)
    # Single sequence -> single TensorCore; no grid / pipelining needed at these
    # sizes (total VMEM footprint < 1 MiB on v5e/v6e/v7x).
    # TODO(synk): if many independent sequences are processed, add a leading
    # "parallel" grid axis so both v7x TensorCores are used and launch overhead
    # is amortized.
    return pl.pallas_call(
        kernel,
        out_shape=jax.ShapeDtypeStruct((seq, params["out_dim"]), jnp.float32),
        in_specs=[vmem] * 4,
        out_specs=vmem,
    )(x_flat, params["gate_slab"], params["rec_slab"], params["proj_slab"])


def _reference(x, w_ih0, w_hh0, b_ih0, b_hh0, w_ih1, w_hh1, b_ih1, b_hh1,
               w_proj, b_proj):
    """Pure-JAX f32 replica of the PyTorch forward (for verification)."""
    seq, batch, _ = x.shape
    hidden = w_hh0.shape[1]

    def sig(z):
        return 1.0 / (1.0 + jnp.exp(-z))

    def run_layer(inp, w_ih, w_hh, b_ih, b_hh):
        h = jnp.zeros((batch, hidden), jnp.float32)
        c = jnp.zeros((batch, hidden), jnp.float32)
        outs = []
        for t in range(seq):
            gates = inp[t] @ w_ih.T + b_ih + h @ w_hh.T + b_hh
            i = sig(gates[:, :hidden])
            f = sig(gates[:, hidden:2 * hidden])
            g = jnp.tanh(gates[:, 2 * hidden:3 * hidden])
            o = sig(gates[:, 3 * hidden:])
            c = f * c + i * g
            h = o * jnp.tanh(c)
            outs.append(h)
        return jnp.stack(outs)

    h1 = run_layer(x, w_ih0, w_hh0, b_ih0, b_hh0)
    h2 = run_layer(h1, w_ih1, w_hh1, b_ih1, b_hh1)
    flat = h2.reshape(seq, batch * hidden)
    return flat @ w_proj.T + b_proj


if __name__ == "__main__":
    # Shapes implied by the module: proj = Linear(50, out) forces batch*hidden == 50.
    input_size, hidden_size, output_size, num_layers = 16, 25, 4, 2
    seq_len, batch = 8, 2

    key = jax.random.PRNGKey(0)
    ks = jax.random.split(key, 12)
    bound = 1.0 / (hidden_size ** 0.5)

    def u(k, shape, b):
        return jax.random.uniform(k, shape, jnp.float32, -b, b)

    # nn.LSTM parameters (PyTorch layout: weight_ih (4H, in), weight_hh (4H, H),
    # gate row order i, f, g, o).
    w_ih0 = u(ks[0], (4 * hidden_size, input_size), bound)
    w_hh0 = u(ks[1], (4 * hidden_size, hidden_size), bound)
    b_ih0 = u(ks[2], (4 * hidden_size,), bound)
    b_hh0 = u(ks[3], (4 * hidden_size,), bound)
    w_ih1 = u(ks[4], (4 * hidden_size, hidden_size), bound)
    w_hh1 = u(ks[5], (4 * hidden_size, hidden_size), bound)
    b_ih1 = u(ks[6], (4 * hidden_size,), bound)
    b_hh1 = u(ks[7], (4 * hidden_size,), bound)
    # nn.Linear(50, output_size)
    bound_p = 1.0 / (50.0 ** 0.5)
    w_proj = u(ks[8], (output_size, 50), bound_p)
    b_proj = u(ks[9], (output_size,), bound_p)

    x = jax.random.normal(ks[10], (seq_len, batch, input_size), jnp.float32)

    params = prepare_params(w_ih0, w_hh0, b_ih0, b_hh0,
                            w_ih1, w_hh1, b_ih1, b_hh1, w_proj, b_proj)

    out = lstm_forward(x, params)
    out = jax.block_until_ready(out)

    ref = _reference(x, w_ih0, w_hh0, b_ih0, b_hh0,
                     w_ih1, w_hh1, b_ih1, b_hh1, w_proj, b_proj)
    assert out.shape == (seq_len, output_size)
    # bf16 MXU operands on the recurrent matmuls (intentional, per perf review)
    # introduce ~1e-3-scale quantization vs the f32 reference; gate/elementwise
    # math stays f32.  2e-2 still catches structural bugs (those are O(1e-1)).
    err = float(jnp.max(jnp.abs(out - ref)))
    assert err < 2e-2, f"max abs err {err}"
    print("KERNEL_OK")
</pallas_src>

<mosaic_0001>
module attributes {stable_mosaic.version = 11 : i64} {
  func.func @_lstm_proj_kernel(%arg0: memref<64x16xf32, #tpu.memory_space<vmem>>, %arg1: memref<32x512xf32, #tpu.memory_space<vmem>>, %arg2: memref<384x512xbf16, #tpu.memory_space<vmem>>, %arg3: memref<264x4xf32, #tpu.memory_space<vmem>>, %arg4: memref<8x4xf32, #tpu.memory_space<vmem>>) attributes {dimension_semantics = [], scalar_prefetch = 0 : i64, scratch_operands = 0 : i64, tpu.core_type = #tpu.core_type<tc>} {
    %c0 = arith.constant 0 : index
    %c0_0 = arith.constant 0 : index
    %0 = vector.load %arg1[%c0, %c0_0] : memref<32x512xf32, #tpu.memory_space<vmem>>, vector<16x512xf32>
    %c16 = arith.constant 16 : index
    %c0_1 = arith.constant 0 : index
    %1 = vector.load %arg1[%c16, %c0_1] : memref<32x512xf32, #tpu.memory_space<vmem>>, vector<1x512xf32>
    %c24 = arith.constant 24 : index
    %c0_2 = arith.constant 0 : index
    %2 = vector.load %arg1[%c24, %c0_2] : memref<32x512xf32, #tpu.memory_space<vmem>>, vector<1x512xf32>
    %c0_3 = arith.constant 0 : index
    %c0_4 = arith.constant 0 : index
    %3 = vector.load %arg2[%c0_3, %c0_4] : memref<384x512xbf16, #tpu.memory_space<vmem>>, vector<128x512xbf16>
    %c128 = arith.constant 128 : index
    %c0_5 = arith.constant 0 : index
    %4 = vector.load %arg2[%c128, %c0_5] : memref<384x512xbf16, #tpu.memory_space<vmem>>, vector<256x512xbf16>
    %c0_6 = arith.constant 0 : index
    %c0_7 = arith.constant 0 : index
    %5 = vector.load %arg3[%c0_6, %c0_7] : memref<264x4xf32, #tpu.memory_space<vmem>>, vector<128x4xf32>
    %c128_8 = arith.constant 128 : index
    %c0_9 = arith.constant 0 : index
    %6 = vector.load %arg3[%c128_8, %c0_9] : memref<264x4xf32, #tpu.memory_space<vmem>>, vector<128x4xf32>
    %c256 = arith.constant 256 : index
    %c0_10 = arith.constant 0 : index
    %7 = vector.load %arg3[%c256, %c0_10] : memref<264x4xf32, #tpu.memory_space<vmem>>, vector<1x4xf32>
    %c0_11 = arith.constant 0 : index
    %c0_12 = arith.constant 0 : index
    %8 = vector.load %arg0[%c0_11, %c0_12] : memref<64x16xf32, #tpu.memory_space<vmem>>, vector<64x16xf32>
    %cst = arith.constant dense<0.000000e+00> : vector<64x512xf32>
    %9 = tpu.matmul %8, %0, %cst {dimension_numbers = #tpu.dot_dimension_numbers<[1], [0], [0], [1], [0, 0, 1, 1], [], []>} : vector<64x16xf32>, vector<16x512xf32>, vector<64x512xf32> -> vector<64x512xf32>
    %10 = vector.broadcast %1 : vector<1x512xf32> to vector<64x512xf32>
    %11 = arith.addf %9, %10 : vector<64x512xf32>
    %cst_13 = arith.constant 0.000000e+00 : f32
    %12 = vector.broadcast %cst_13 : f32 to vector<8x128xf32>
    %13 = arith.truncf %12 : vector<8x128xf32> to vector<8x128xbf16>
    %14 = vector.extract_strided_slice %11 {offsets = [0, 0], sizes = [8, 512], strides = [1, 1]} : vector<64x512xf32> to vector<8x512xf32>
    %cst_14 = arith.constant dense<0.000000e+00> : vector<8x512xf32>
    %15 = tpu.matmul %13, %3, %cst_14 {dimension_numbers = #tpu.dot_dimension_numbers<[1], [0], [0], [1], [0, 0, 1, 1], [], []>} : vector<8x128xbf16>, vector<128x512xbf16>, vector<8x512xf32> -> vector<8x512xf32>
    %16 = arith.addf %14, %15 : vector<8x512xf32>
    %17 = math.tanh %16 : vector<8x512xf32>
    %18 = vector.extract_strided_slice %17 {offsets = [0, 0], sizes = [8, 128], strides = [1, 1]} : vector<8x512xf32> to vector<8x128xf32>
    %cst_15 = arith.constant 5.000000e-01 : f32
    %19 = vector.broadcast %cst_15 : f32 to vector<8x128xf32>
    %20 = arith.mulf %19, %18 : vector<8x128xf32>
    %cst_16 = arith.constant 5.000000e-01 : f32
    %21 = vector.broadcast %cst_16 : f32 to vector<8x128xf32>
    %22 = arith.addf %20, %21 : vector<8x128xf32>
    %23 = vector.extract_strided_slice %17 {offsets = [0, 128], sizes = [8, 128], strides = [1, 1]} : vector<8x512xf32> to vector<8x128xf32>
    %cst_17 = arith.constant 5.000000e-01 : f32
    %24 = vector.broadcast %cst_17 : f32 to vector<8x128xf32>
    %25 = arith.mulf %24, %23 : vector<8x128xf32>
    %cst_18 = arith.constant 5.000000e-01 : f32
    %26 = vector.broadcast %cst_18 : f32 to vector<8x128xf32>
    %27 = arith.addf %25, %26 : vector<8x128xf32>
    %28 = vector.extract_strided_slice %17 {offsets = [0, 256], sizes = [8, 128], strides = [1, 1]} : vector<8x512xf32> to vector<8x128xf32>
    %29 = vector.extract_strided_slice %17 {offsets = [0, 384], sizes = [8, 128], strides = [1, 1]} : vector<8x512xf32> to vector<8x128xf32>
    %cst_19 = arith.constant 5.000000e-01 : f32
    %30 = vector.broadcast %cst_19 : f32 to vector<8x128xf32>
    %31 = arith.mulf %30, %29 : vector<8x128xf32>
    %cst_20 = arith.constant 5.000000e-01 : f32
    %32 = vector.broadcast %cst_20 : f32 to vector<8x128xf32>
    %33 = arith.addf %31, %32 : vector<8x128xf32>
    %34 = arith.mulf %27, %12 : vector<8x128xf32>
    %35 = arith.mulf %22, %28 : vector<8x128xf32>
    %36 = arith.addf %34, %35 : vector<8x128xf32>
    %37 = math.tanh %36 : vector<8x128xf32>
    %38 = arith.mulf %33, %37 : vector<8x128xf32>
    %39 = arith.truncf %38 : vector<8x128xf32> to vector<8x128xbf16>
    %40 = tpu.concatenate %39, %13 in 1 : vector<8x128xbf16>, vector<8x128xbf16> -> vector<8x256xbf16>
    %cst_21 = arith.constant dense<0.000000e+00> : vector<8x512xf32>
    %41 = tpu.matmul %40, %4, %cst_21 {dimension_numbers = #tpu.dot_dimension_numbers<[1], [0], [0], [1], [0, 0, 1, 1], [], []>} : vector<8x256xbf16>, vector<256x512xbf16>, vector<8x512xf32> -> vector<8x512xf32>
    %42 = vector.broadcast %2 : vector<1x512xf32> to vector<8x512xf32>
    %43 = arith.addf %41, %42 : vector<8x512xf32>
    %44 = math.tanh %43 : vector<8x512xf32>
    %45 = vector.extract_strided_slice %44 {offsets = [0, 0], sizes = [8, 128], strides = [1, 1]} : vector<8x512xf32> to vector<8x128xf32>
    %cst_22 = arith.constant 5.000000e-01 : f32
    %46 = vector.broadcast %cst_22 : f32 to vector<8x128xf32>
    %47 = arith.mulf %46, %45 : vector<8x128xf32>
    %cst_23 = arith.constant 5.000000e-01 : f32
    %48 = vector.broadcast %cst_23 : f32 to vector<8x128xf32>
    %49 = arith.addf %47, %48 : vector<8x128xf32>
    %50 = vector.extract_strided_slice %44 {offsets = [0, 128], sizes = [8, 128], strides = [1, 1]} : vector<8x512xf32> to vector<8x128xf32>
    %cst_24 = arith.constant 5.000000e-01 : f32
    %51 = vector.broadcast %cst_24 : f32 to vector<8x128xf32>
    %52 = arith.mulf %51, %50 : vector<8x128xf32>
    %cst_25 = arith.constant 5.000000e-01 : f32
    %53 = vector.broadcast %cst_25 : f32 to vector<8x128xf32>
    %54 = arith.addf %52, %53 : vector<8x128xf32>
    %55 = vector.extract_strided_slice %44 {offsets = [0, 256], sizes = [8, 128], strides = [1, 1]} : vector<8x512xf32> to vector<8x128xf32>
    %56 = vector.extract_strided_slice %44 {offsets = [0, 384], sizes = [8, 128], strides = [1, 1]} : vector<8x512xf32> to vector<8x128xf32>
    %cst_26 = arith.constant 5.000000e-01 : f32
    %57 = vector.broadcast %cst_26 : f32 to vector<8x128xf32>
    %58 = arith.mulf %57, %56 : vector<8x128xf32>
    %cst_27 = arith.constant 5.000000e-01 : f32
    %59 = vector.broadcast %cst_27 : f32 to vector<8x128xf32>
    %60 = arith.addf %58, %59 : vector<8x128xf32>
    %61 = arith.mulf %54, %12 : vector<8x128xf32>
    %62 = arith.mulf %49, %55 : vector<8x128xf32>
    %63 = arith.addf %61, %62 : vector<8x128xf32>
    %64 = math.tanh %63 : vector<8x128xf32>
    %65 = arith.mulf %60, %64 : vector<8x128xf32>
    %66 = arith.truncf %65 : vector<8x128xf32> to vector<8x128xbf16>
    %67 = vector.extract_strided_slice %65 {offsets = [0, 0], sizes = [1, 128], strides = [1, 1]} : vector<8x128xf32> to vector<1x128xf32>
    %cst_28 = arith.constant dense<0.000000e+00> : vector<1x4xf32>
    %68 = tpu.matmul %67, %5, %cst_28 {dimension_numbers = #tpu.dot_dimension_numbers<[1], [0], [0], [1], [0, 0, 1, 1], [], []>} : vector<1x128xf32>, vector<128x4xf32>, vector<1x4xf32> -> vector<1x4xf32>
    %69 = arith.addf %7, %68 : vector<1x4xf32>
    %70 = vector.extract_strided_slice %65 {offsets = [1, 0], sizes = [1, 128], strides = [1, 1]} : vector<8x128xf32> to vector<1x128xf32>
    %cst_29 = arith.constant dense<0.000000e+00> : vector<1x4xf32>
    %71 = tpu.matmul %70, %6, %cst_29 {dimension_numbers = #tpu.dot_dimension_numbers<[1], [0], [0], [1], [0, 0, 1, 1], [], []>} : vector<1x128xf32>, vector<128x4xf32>, vector<1x4xf32> -> vector<1x4xf32>
    %72 = arith.addf %69, %71 : vector<1x4xf32>
    %c0_30 = arith.constant 0 : index
    %c0_31 = arith.constant 0 : index
    %73 = vector.load %arg4[%c0_30, %c0_31] : memref<8x4xf32, #tpu.memory_space<vmem>>, vector<1x4xf32>
    tpu.vector_store %arg4[%c0_30, %c0_31], %72 {strides = array<i32>} : memref<8x4xf32, #tpu.memory_space<vmem>>, vector<1x4xf32>,
    %74 = vector.extract_strided_slice %11 {offsets = [8, 0], sizes = [8, 512], strides = [1, 1]} : vector<64x512xf32> to vector<8x512xf32>
    %cst_32 = arith.constant dense<0.000000e+00> : vector<8x512xf32>
    %75 = tpu.matmul %39, %3, %cst_32 {dimension_numbers = #tpu.dot_dimension_numbers<[1], [0], [0], [1], [0, 0, 1, 1], [], []>} : vector<8x128xbf16>, vector<128x512xbf16>, vector<8x512xf32> -> vector<8x512xf32>
    %76 = arith.addf %74, %75 : vector<8x512xf32>
    %77 = math.tanh %76 : vector<8x512xf32>
    %78 = vector.extract_strided_slice %77 {offsets = [0, 0], sizes = [8, 128], strides = [1, 1]} : vector<8x512xf32> to vector<8x128xf32>
    %cst_33 = arith.constant 5.000000e-01 : f32
    %79 = vector.broadcast %cst_33 : f32 to vector<8x128xf32>
    %80 = arith.mulf %79, %78 : vector<8x128xf32>
    %cst_34 = arith.constant 5.000000e-01 : f32
    %81 = vector.broadcast %cst_34 : f32 to vector<8x128xf32>
    %82 = arith.addf %80, %81 : vector<8x128xf32>
    %83 = vector.extract_strided_slice %77 {offsets = [0, 128], sizes = [8, 128], strides = [1, 1]} : vector<8x512xf32> to vector<8x128xf32>
    %cst_35 = arith.constant 5.000000e-01 : f32
    %84 = vector.broadcast %cst_35 : f32 to vector<8x128xf32>
    %85 = arith.mulf %84, %83 : vector<8x128xf32>
    %cst_36 = arith.constant 5.000000e-01 : f32
    %86 = vector.broadcast %cst_36 : f32 to vector<8x128xf32>
    %87 = arith.addf %85, %86 : vector<8x128xf32>
    %88 = vector.extract_strided_slice %77 {offsets = [0, 256], sizes = [8, 128], strides = [1, 1]} : vector<8x512xf32> to vector<8x128xf32>
    %89 = vector.extract_strided_slice %77 {offsets = [0, 384], sizes = [8, 128], strides = [1, 1]} : vector<8x512xf32> to vector<8x128xf32>
    %cst_37 = arith.constant 5.000000e-01 : f32
    %90 = vector.broadcast %cst_37 : f32 to vector<8x128xf32>
    %91 = arith.mulf %90, %89 : vector<8x128xf32>
    %cst_38 = arith.constant 5.000000e-01 : f32
    %92 = vector.broadcast %cst_38 : f32 to vector<8x128xf32>
    %93 = arith.addf %91, %92 : vector<8x128xf32>
    %94 = arith.mulf %87, %36 : vector<8x128xf32>
    %95 = arith.mulf %82, %88 : vector<8x128xf32>
    %96 = arith.addf %94, %95 : vector<8x128xf32>
    %97 = math.tanh %96 : vector<8x128xf32>
    %98 = arith.mulf %93, %97 : vector<8x128xf32>
    %99 = arith.truncf %98 : vector<8x128xf32> to vector<8x128xbf16>
    %100 = tpu.concatenate %99, %66 in 1 : vector<8x128xbf16>, vector<8x128xbf16> -> vector<8x256xbf16>
    %cst_39 = arith.constant dense<0.000000e+00> : vector<8x512xf32>
    %101 = tpu.matmul %100, %4, %cst_39 {dimension_numbers = #tpu.dot_dimension_numbers<[1], [0], [0], [1], [0, 0, 1, 1], [], []>} : vector<8x256xbf16>, vector<256x512xbf16>, vector<8x512xf32> -> vector<8x512xf32>
    %102 = vector.broadcast %2 : vector<1x512xf32> to vector<8x512xf32>
    %103 = arith.addf %101, %102 : vector<8x512xf32>
    %104 = math.tanh %103 : vector<8x512xf32>
    %105 = vector.extract_strided_slice %104 {offsets = [0, 0], sizes = [8, 128], strides = [1, 1]} : vector<8x512xf32> to vector<8x128xf32>
    %cst_40 = arith.constant 5.000000e-01 : f32
    %106 = vector.broadcast %cst_40 : f32 to vector<8x128xf32>
    %107 = arith.mulf %106, %105 : vector<8x128xf32>
    %cst_41 = arith.constant 5.000000e-01 : f32
    %108 = vector.broadcast %cst_41 : f32 to vector<8x128xf32>
    %109 = arith.addf %107, %108 : vector<8x128xf32>
    %110 = vector.extract_strided_slice %104 {offsets = [0, 128], sizes = [8, 128], strides = [1, 1]} : vector<8x512xf32> to vector<8x128xf32>
    %cst_42 = arith.constant 5.000000e-01 : f32
    %111 = vector.broadcast %cst_42 : f32 to vector<8x128xf32>
    %112 = arith.mulf %111, %110 : vector<8x128xf32>
    %cst_43 = arith.constant 5.000000e-01 : f32
    %113 = vector.broadcast %cst_43 : f32 to vector<8x128xf32>
    %114 = arith.addf %112, %113 : vector<8x128xf32>
    %115 = vector.extract_strided_slice %104 {offsets = [0, 256], sizes = [8, 128], strides = [1, 1]} : vector<8x512xf32> to vector<8x128xf32>
    %116 = vector.extract_strided_slice %104 {offsets = [0, 384], sizes = [8, 128], strides = [1, 1]} : vector<8x512xf32> to vector<8x128xf32>
    %cst_44 = arith.constant 5.000000e-01 : f32
    %117 = vector.broadcast %cst_44 : f32 to vector<8x128xf32>
    %118 = arith.mulf %117, %116 : vector<8x128xf32>
    %cst_45 = arith.constant 5.000000e-01 : f32
    %119 = vector.broadcast %cst_45 : f32 to vector<8x128xf32>
    %120 = arith.addf %118, %119 : vector<8x128xf32>
    %121 = arith.mulf %114, %63 : vector<8x128xf32>
    %122 = arith.mulf %109, %115 : vector<8x128xf32>
    %123 = arith.addf %121, %122 : vector<8x128xf32>
    %124 = math.tanh %123 : vector<8x128xf32>
    %125 = arith.mulf %120, %124 : vector<8x128xf32>
    %126 = arith.truncf %125 : vector<8x128xf32> to vector<8x128xbf16>
    %127 = vector.extract_strided_slice %125 {offsets = [0, 0], sizes = [1, 128], strides = [1, 1]} : vector<8x128xf32> to vector<1x128xf32>
    %cst_46 = arith.constant dense<0.000000e+00> : vector<1x4xf32>
    %128 = tpu.matmul %127, %5, %cst_46 {dimension_numbers = #tpu.dot_dimension_numbers<[1], [0], [0], [1], [0, 0, 1, 1], [], []>} : vector<1x128xf32>, vector<128x4xf32>, vector<1x4xf32> -> vector<1x4xf32>
    %129 = arith.addf %7, %128 : vector<1x4xf32>
    %130 = vector.extract_strided_slice %125 {offsets = [1, 0], sizes = [1, 128], strides = [1, 1]} : vector<8x128xf32> to vector<1x128xf32>
    %cst_47 = arith.constant dense<0.000000e+00> : vector<1x4xf32>
    %131 = tpu.matmul %130, %6, %cst_47 {dimension_numbers = #tpu.dot_dimension_numbers<[1], [0], [0], [1], [0, 0, 1, 1], [], []>} : vector<1x128xf32>, vector<128x4xf32>, vector<1x4xf32> -> vector<1x4xf32>
    %132 = arith.addf %129, %131 : vector<1x4xf32>
    %c1 = arith.constant 1 : index
    %c0_48 = arith.constant 0 : index
    %133 = vector.load %arg4[%c1, %c0_48] : memref<8x4xf32, #tpu.memory_space<vmem>>, vector<1x4xf32>
    tpu.vector_store %arg4[%c1, %c0_48], %132 {strides = array<i32>} : memref<8x4xf32, #tpu.memory_space<vmem>>, vector<1x4xf32>,
    %134 = vector.extract_strided_slice %11 {offsets = [16, 0], sizes = [8, 512], strides = [1, 1]} : vector<64x512xf32> to vector<8x512xf32>
    %cst_49 = arith.constant dense<0.000000e+00> : vector<8x512xf32>
    %135 = tpu.matmul %99, %3, %cst_49 {dimension_numbers = #tpu.dot_dimension_numbers<[1], [0], [0], [1], [0, 0, 1, 1], [], []>} : vector<8x128xbf16>, vector<128x512xbf16>, vector<8x512xf32> -> vector<8x512xf32>
    %136 = arith.addf %134, %135 : vector<8x512xf32>
    %137 = math.tanh %136 : vector<8x512xf32>
    %138 = vector.extract_strided_slice %137 {offsets = [0, 0], sizes = [8, 128], strides = [1, 1]} : vector<8x512xf32> to vector<8x128xf32>
    %cst_50 = arith.constant 5.000000e-01 : f32
    %139 = vector.broadcast %cst_50 : f32 to vector<8x128xf32>
    %140 = arith.mulf %139, %138 : vector<8x128xf32>
    %cst_51 = arith.constant 5.000000e-01 : f32
    %141 = vector.broadcast %cst_51 : f32 to vector<8x128xf32>
    %142 = arith.addf %140, %141 : vector<8x128xf32>
    %143 = vector.extract_strided_slice %137 {offsets = [0, 128], sizes = [8, 128], strides = [1, 1]} : vector<8x512xf32> to vector<8x128xf32>
    %cst_52 = arith.constant 5.000000e-01 : f32
    %144 = vector.broadcast %cst_52 : f32 to vector<8x128xf32>
    %145 = arith.mulf %144, %143 : vector<8x128xf32>
    %cst_53 = arith.constant 5.000000e-01 : f32
    %146 = vector.broadcast %cst_53 : f32 to vector<8x128xf32>
    %147 = arith.addf %145, %146 : vector<8x128xf32>
    %148 = vector.extract_strided_slice %137 {offsets = [0, 256], sizes = [8, 128], strides = [1, 1]} : vector<8x512xf32> to vector<8x128xf32>
    %149 = vector.extract_strided_slice %137 {offsets = [0, 384], sizes = [8, 128], strides = [1, 1]} : vector<8x512xf32> to vector<8x128xf32>
    %cst_54 = arith.constant 5.000000e-01 : f32
    %150 = vector.broadcast %cst_54 : f32 to vector<8x128xf32>
    %151 = arith.mulf %150, %149 : vector<8x128xf32>
    %cst_55 = arith.constant 5.000000e-01 : f32
    %152 = vector.broadcast %cst_55 : f32 to vector<8x128xf32>
    %153 = arith.addf %151, %152 : vector<8x128xf32>
    %154 = arith.mulf %147, %96 : vector<8x128xf32>
    %155 = arith.mulf %142, %148 : vector<8x128xf32>
    %156 = arith.addf %154, %155 : vector<8x128xf32>
    %157 = math.tanh %156 : vector<8x128xf32>
    %158 = arith.mulf %153, %157 : vector<8x128xf32>
    %159 = arith.truncf %158 : vector<8x128xf32> to vector<8x128xbf16>
    %160 = tpu.concatenate %159, %126 in 1 : vector<8x128xbf16>, vector<8x128xbf16> -> vector<8x256xbf16>
    %cst_56 = arith.constant dense<0.000000e+00> : vector<8x512xf32>
    %161 = tpu.matmul %160, %4, %cst_56 {dimension_numbers = #tpu.dot_dimension_numbers<[1], [0], [0], [1], [0, 0, 1, 1], [], []>} : vector<8x256xbf16>, vector<256x512xbf16>, vector<8x512xf32> -> vector<8x512xf32>
    %162 = vector.broadcast %2 : vector<1x512xf32> to vector<8x512xf32>
    %163 = arith.addf %161, %162 : vector<8x512xf32>
    %164 = math.tanh %163 : vector<8x512xf32>
    %165 = vector.extract_strided_slice %164 {offsets = [0, 0], sizes = [8, 128], strides = [1, 1]} : vector<8x512xf32> to vector<8x128xf32>
    %cst_57 = arith.constant 5.000000e-01 : f32
    %166 = vector.broadcast %cst_57 : f32 to vector<8x128xf32>
    %167 = arith.mulf %166, %165 : vector<8x128xf32>
    %cst_58 = arith.constant 5.000000e-01 : f32
    %168 = vector.broadcast %cst_58 : f32 to vector<8x128xf32>
    %169 = arith.addf %167, %168 : vector<8x128xf32>
    %170 = vector.extract_strided_slice %164 {offsets = [0, 128], sizes = [8, 128], strides = [1, 1]} : vector<8x512xf32> to vector<8x128xf32>
    %cst_59 = arith.constant 5.000000e-01 : f32
    %171 = vector.broadcast %cst_59 : f32 to vector<8x128xf32>
    %172 = arith.mulf %171, %170 : vector<8x128xf32>
    %cst_60 = arith.constant 5.000000e-01 : f32
    %173 = vector.broadcast %cst_60 : f32 to vector<8x128xf32>
    %174 = arith.addf %172, %173 : vector<8x128xf32>
    %175 = vector.extract_strided_slice %164 {offsets = [0, 256], sizes = [8, 128], strides = [1, 1]} : vector<8x512xf32> to vector<8x128xf32>
    %176 = vector.extract_strided_slice %164 {offsets = [0, 384], sizes = [8, 128], strides = [1, 1]} : vector<8x512xf32> to vector<8x128xf32>
    %cst_61 = arith.constant 5.000000e-01 : f32
    %177 = vector.broadcast %cst_61 : f32 to vector<8x128xf32>
    %178 = arith.mulf %177, %176 : vector<8x128xf32>
    %cst_62 = arith.constant 5.000000e-01 : f32
    %179 = vector.broadcast %cst_62 : f32 to vector<8x128xf32>
    %180 = arith.addf %178, %179 : vector<8x128xf32>
    %181 = arith.mulf %174, %123 : vector<8x128xf32>
    %182 = arith.mulf %169, %175 : vector<8x128xf32>
    %183 = arith.addf %181, %182 : vector<8x128xf32>
    %184 = math.tanh %183 : vector<8x128xf32>
    %185 = arith.mulf %180, %184 : vector<8x128xf32>
    %186 = arith.truncf %185 : vector<8x128xf32> to vector<8x128xbf16>
    %187 = vector.extract_strided_slice %185 {offsets = [0, 0], sizes = [1, 128], strides = [1, 1]} : vector<8x128xf32> to vector<1x128xf32>
    %cst_63 = arith.constant dense<0.000000e+00> : vector<1x4xf32>
    %188 = tpu.matmul %187, %5, %cst_63 {dimension_numbers = #tpu.dot_dimension_numbers<[1], [0], [0], [1], [0, 0, 1, 1], [], []>} : vector<1x128xf32>, vector<128x4xf32>, vector<1x4xf32> -> vector<1x4xf32>
    %189 = arith.addf %7, %188 : vector<1x4xf32>
    %190 = vector.extract_strided_slice %185 {offsets = [1, 0], sizes = [1, 128], strides = [1, 1]} : vector<8x128xf32> to vector<1x128xf32>
    %cst_64 = arith.constant dense<0.000000e+00> : vector<1x4xf32>
    %191 = tpu.matmul %190, %6, %cst_64 {dimension_numbers = #tpu.dot_dimension_numbers<[1], [0], [0], [1], [0, 0, 1, 1], [], []>} : vector<1x128xf32>, vector<128x4xf32>, vector<1x4xf32> -> vector<1x4xf32>
    %192 = arith.addf %189, %191 : vector<1x4xf32>
    %c2 = arith.constant 2 : index
    %c0_65 = arith.constant 0 : index
    %193 = vector.load %arg4[%c2, %c0_65] : memref<8x4xf32, #tpu.memory_space<vmem>>, vector<1x4xf32>
    tpu.vector_store %arg4[%c2, %c0_65], %192 {strides = array<i32>} : memref<8x4xf32, #tpu.memory_space<vmem>>, vector<1x4xf32>,
    %194 = vector.extract_strided_slice %11 {offsets = [24, 0], sizes = [8, 512], strides = [1, 1]} : vector<64x512xf32> to vector<8x512xf32>
    %cst_66 = arith.constant dense<0.000000e+00> : vector<8x512xf32>
    %195 = tpu.matmul %159, %3, %cst_66 {dimension_numbers = #tpu.dot_dimension_numbers<[1], [0], [0], [1], [0, 0, 1, 1], [], []>} : vector<8x128xbf16>, vector<128x512xbf16>, vector<8x512xf32> -> vector<8x512xf32>
    %196 = arith.addf %194, %195 : vector<8x512xf32>
    %197 = math.tanh %196 : vector<8x512xf32>
    %198 = vector.extract_strided_slice %197 {offsets = [0, 0], sizes = [8, 128], strides = [1, 1]} : vector<8x512xf32> to vector<8x128xf32>
    %cst_67 = arith.constant 5.000000e-01 : f32
    %199 = vector.broadcast %cst_67 : f32 to vector<8x128xf32>
    %200 = arith.mulf %199, %198 : vector<8x128xf32>
    %cst_68 = arith.constant 5.000000e-01 : f32
    %201 = vector.broadcast %cst_68 : f32 to vector<8x128xf32>
    %202 = arith.addf %200, %201 : vector<8x128xf32>
    %203 = vector.extract_strided_slice %197 {offsets = [0, 128], sizes = [8, 128], strides = [1, 1]} : vector<8x512xf32> to vector<8x128xf32>
    %cst_69 = arith.constant 5.000000e-01 : f32
    %204 = vector.broadcast %cst_69 : f32 to vector<8x128xf32>
    %205 = arith.mulf %204, %203 : vector<8x128xf32>
    %cst_70 = arith.constant 5.000000e-01 : f32
    %206 = vector.broadcast %cst_70 : f32 to vector<8x128xf32>
    %207 = arith.addf %205, %206 : vector<8x128xf32>
    %208 = vector.extract_strided_slice %197 {offsets = [0, 256], sizes = [8, 128], strides = [1, 1]} : vector<8x512xf32> to vector<8x128xf32>
    %209 = vector.extract_strided_slice %197 {offsets = [0, 384], sizes = [8, 128], strides = [1, 1]} : vector<8x512xf32> to vector<8x128xf32>
    %cst_71 = arith.constant 5.000000e-01 : f32
    %210 = vector.broadcast %cst_71 : f32 to vector<8x128xf32>
    %211 = arith.mulf %210, %209 : vector<8x128xf32>
    %cst_72 = arith.constant 5.000000e-01 : f32
    %212 = vector.broadcast %cst_72 : f32 to vector<8x128xf32>
    %213 = arith.addf %211, %212 : vector<8x128xf32>
    %214 = arith.mulf %207, %156 : vector<8x128xf32>
    %215 = arith.mulf %202, %208 : vector<8x128xf32>
    %216 = arith.addf %214, %215 : vector<8x128xf32>
    %217 = math.tanh %216 : vector<8x128xf32>
    %218 = arith.mulf %213, %217 : vector<8x128xf32>
    %219 = arith.truncf %218 : vector<8x128xf32> to vector<8x128xbf16>
    %220 = tpu.concatenate %219, %186 in 1 : vector<8x128xbf16>, vector<8x128xbf16> -> vector<8x256xbf16>
    %cst_73 = arith.constant dense<0.000000e+00> : vector<8x512xf32>
    %221 = tpu.matmul %220, %4, %cst_73 {dimension_numbers = #tpu.dot_dimension_numbers<[1], [0], [0], [1], [0, 0, 1, 1], [], []>} : vector<8x256xbf16>, vector<256x512xbf16>, vector<8x512xf32> -> vector<8x512xf32>
    %222 = vector.broadcast %2 : vector<1x512xf32> to vector<8x512xf32>
    %223 = arith.addf %221, %222 : vector<8x512xf32>
    %224 = math.tanh %223 : vector<8x512xf32>
    %225 = vector.extract_strided_slice %224 {offsets = [0, 0], sizes = [8, 128], strides = [1, 1]} : vector<8x512xf32> to vector<8x128xf32>
    %cst_74 = arith.constant 5.000000e-01 : f32
    %226 = vector.broadcast %cst_74 : f32 to vector<8x128xf32>
    %227 = arith.mulf %226, %225 : vector<8x128xf32>
    %cst_75 = arith.constant 5.000000e-01 : f32
    %228 = vector.broadcast %cst_75 : f32 to vector<8x128xf32>
    %229 = arith.addf %227, %228 : vector<8x128xf32>
    %230 = vector.extract_strided_slice %224 {offsets = [0, 128], sizes = [8, 128], strides = [1, 1]} : vector<8x512xf32> to vector<8x128xf32>
    %cst_76 = arith.constant 5.000000e-01 : f32
    %231 = vector.broadcast %cst_76 : f32 to vector<8x128xf32>
    %232 = arith.mulf %231, %230 : vector<8x128xf32>
    %cst_77 = arith.constant 5.000000e-01 : f32
    %233 = vector.broadcast %cst_77 : f32 to vector<8x128xf32>
    %234 = arith.addf %232, %233 : vector<8x128xf32>
    %235 = vector.extract_strided_slice %224 {offsets = [0, 256], sizes = [8, 128], strides = [1, 1]} : vector<8x512xf32> to vector<8x128xf32>
    %236 = vector.extract_strided_slice %224 {offsets = [0, 384], sizes = [8, 128], strides = [1, 1]} : vector<8x512xf32> to vector<8x128xf32>
    %cst_78 = arith.constant 5.000000e-01 : f32
    %237 = vector.broadcast %cst_78 : f32 to vector<8x128xf32>
    %238 = arith.mulf %237, %236 : vector<8x128xf32>
    %cst_79 = arith.constant 5.000000e-01 : f32
    %239 = vector.broadcast %cst_79 : f32 to vector<8x128xf32>
    %240 = arith.addf %238, %239 : vector<8x128xf32>
    %241 = arith.mulf %234, %183 : vector<8x128xf32>
    %242 = arith.mulf %229, %235 : vector<8x128xf32>
    %243 = arith.addf %241, %242 : vector<8x128xf32>
    %244 = math.tanh %243 : vector<8x128xf32>
    %245 = arith.mulf %240, %244 : vector<8x128xf32>
    %246 = arith.truncf %245 : vector<8x128xf32> to vector<8x128xbf16>
    %247 = vector.extract_strided_slice %245 {offsets = [0, 0], sizes = [1, 128], strides = [1, 1]} : vector<8x128xf32> to vector<1x128xf32>
    %cst_80 = arith.constant dense<0.000000e+00> : vector<1x4xf32>
    %248 = tpu.matmul %247, %5, %cst_80 {dimension_numbers = #tpu.dot_dimension_numbers<[1], [0], [0], [1], [0, 0, 1, 1], [], []>} : vector<1x128xf32>, vector<128x4xf32>, vector<1x4xf32> -> vector<1x4xf32>
    %249 = arith.addf %7, %248 : vector<1x4xf32>
    %250 = vector.extract_strided_slice %245 {offsets = [1, 0], sizes = [1, 128], strides = [1, 1]} : vector<8x128xf32> to vector<1x128xf32>
    %cst_81 = arith.constant dense<0.000000e+00> : vector<1x4xf32>
    %251 = tpu.matmul %250, %6, %cst_81 {dimension_numbers = #tpu.dot_dimension_numbers<[1], [0], [0], [1], [0, 0, 1, 1], [], []>} : vector<1x128xf32>, vector<128x4xf32>, vector<1x4xf32> -> vector<1x4xf32>
    %252 = arith.addf %249, %251 : vector<1x4xf32>
    %c3 = arith.constant 3 : index
    %c0_82 = arith.constant 0 : index
    %253 = vector.load %arg4[%c3, %c0_82] : memref<8x4xf32, #tpu.memory_space<vmem>>, vector<1x4xf32>
    tpu.vector_store %arg4[%c3, %c0_82], %252 {strides = array<i32>} : memref<8x4xf32, #tpu.memory_space<vmem>>, vector<1x4xf32>,
    %254 = vector.extract_strided_slice %11 {offsets = [32, 0], sizes = [8, 512], strides = [1, 1]} : vector<64x512xf32> to vector<8x512xf32>
    %cst_83 = arith.constant dense<0.000000e+00> : vector<8x512xf32>
    %255 = tpu.matmul %219, %3, %cst_83 {dimension_numbers = #tpu.dot_dimension_numbers<[1], [0], [0], [1], [0, 0, 1, 1], [], []>} : vector<8x128xbf16>, vector<128x512xbf16>, vector<8x512xf32> -> vector<8x512xf32>
    %256 = arith.addf %254, %255 : vector<8x512xf32>
    %257 = math.tanh %256 : vector<8x512xf32>
    %258 = vector.extract_strided_slice %257 {offsets = [0, 0], sizes = [8, 128], strides = [1, 1]} : vector<8x512xf32> to vector<8x128xf32>
    %cst_84 = arith.constant 5.000000e-01 : f32
    %259 = vector.broadcast %cst_84 : f32 to vector<8x128xf32>
    %260 = arith.mulf %259, %258 : vector<8x128xf32>
    %cst_85 = arith.constant 5.000000e-01 : f32
    %261 = vector.broadcast %cst_85 : f32 to vector<8x128xf32>
    %262 = arith.addf %260, %261 : vector<8x128xf32>
    %263 = vector.extract_strided_slice %257 {offsets = [0, 128], sizes = [8, 128], strides = [1, 1]} : vector<8x512xf32> to vector<8x128xf32>
    %cst_86 = arith.constant 5.000000e-01 : f32
    %264 = vector.broadcast %cst_86 : f32 to vector<8x128xf32>
    %265 = arith.mulf %264, %263 : vector<8x128xf32>
    %cst_87 = arith.constant 5.000000e-01 : f32
    %266 = vector.broadcast %cst_87 : f32 to vector<8x128xf32>
    %267 = arith.addf %265, %266 : vector<8x128xf32>
    %268 = vector.extract_strided_slice %257 {offsets = [0, 256], sizes = [8, 128], strides = [1, 1]} : vector<8x512xf32> to vector<8x128xf32>
    %269 = vector.extract_strided_slice %257 {offsets = [0, 384], sizes = [8, 128], strides = [1, 1]} : vector<8x512xf32> to vector<8x128xf32>
    %cst_88 = arith.constant 5.000000e-01 : f32
    %270 = vector.broadcast %cst_88 : f32 to vector<8x128xf32>
    %271 = arith.mulf %270, %269 : vector<8x128xf32>
    %cst_89 = arith.constant 5.000000e-01 : f32
    %272 = vector.broadcast %cst_89 : f32 to vector<8x128xf32>
    %273 = arith.addf %271, %272 : vector<8x128xf32>
    %274 = arith.mulf %267, %216 : vector<8x128xf32>
    %275 = arith.mulf %262, %268 : vector<8x128xf32>
    %276 = arith.addf %274, %275 : vector<8x128xf32>
    %277 = math.tanh %276 : vector<8x128xf32>
    %278 = arith.mulf %273, %277 : vector<8x128xf32>
    %279 = arith.truncf %278 : vector<8x128xf32> to vector<8x128xbf16>
    %280 = tpu.concatenate %279, %246 in 1 : vector<8x128xbf16>, vector<8x128xbf16> -> vector<8x256xbf16>
    %cst_90 = arith.constant dense<0.000000e+00> : vector<8x512xf32>
    %281 = tpu.matmul %280, %4, %cst_90 {dimension_numbers = #tpu.dot_dimension_numbers<[1], [0], [0], [1], [0, 0, 1, 1], [], []>} : vector<8x256xbf16>, vector<256x512xbf16>, vector<8x512xf32> -> vector<8x512xf32>
    %282 = vector.broadcast %2 : vector<1x512xf32> to vector<8x512xf32>
    %283 = arith.addf %281, %282 : vector<8x512xf32>
    %284 = math.tanh %283 : vector<8x512xf32>
    %285 = vector.extract_strided_slice %284 {offsets = [0, 0], sizes = [8, 128], strides = [1, 1]} : vector<8x512xf32> to vector<8x128xf32>
    %cst_91 = arith.constant 5.000000e-01 : f32
    %286 = vector.broadcast %cst_91 : f32 to vector<8x128xf32>
    %287 = arith.mulf %286, %285 : vector<8x128xf32>
    %cst_92 = arith.constant 5.000000e-01 : f32
    %288 = vector.broadcast %cst_92 : f32 to vector<8x128xf32>
    %289 = arith.addf %287, %288 : vector<8x128xf32>
    %290 = vector.extract_strided_slice %284 {offsets = [0, 128], sizes = [8, 128], strides = [1, 1]} : vector<8x512xf32> to vector<8x128xf32>
    %cst_93 = arith.constant 5.000000e-01 : f32
    %291 = vector.broadcast %cst_93 : f32 to vector<8x128xf32>
    %292 = arith.mulf %291, %290 : vector<8x128xf32>
    %cst_94 = arith.constant 5.000000e-01 : f32
    %293 = vector.broadcast %cst_94 : f32 to vector<8x128xf32>
    %294 = arith.addf %292, %293 : vector<8x128xf32>
    %295 = vector.extract_strided_slice %284 {offsets = [0, 256], sizes = [8, 128], strides = [1, 1]} : vector<8x512xf32> to vector<8x128xf32>
    %296 = vector.extract_strided_slice %284 {offsets = [0, 384], sizes = [8, 128], strides = [1, 1]} : vector<8x512xf32> to vector<8x128xf32>
    %cst_95 = arith.constant 5.000000e-01 : f32
    %297 = vector.broadcast %cst_95 : f32 to vector<8x128xf32>
    %298 = arith.mulf %297, %296 : vector<8x128xf32>
    %cst_96 = arith.constant 5.000000e-01 : f32
    %299 = vector.broadcast %cst_96 : f32 to vector<8x128xf32>
    %300 = arith.addf %298, %299 : vector<8x128xf32>
    %301 = arith.mulf %294, %243 : vector<8x128xf32>
    %302 = arith.mulf %289, %295 : vector<8x128xf32>
    %303 = arith.addf %301, %302 : vector<8x128xf32>
    %304 = math.tanh %303 : vector<8x128xf32>
    %305 = arith.mulf %300, %304 : vector<8x128xf32>
    %306 = arith.truncf %305 : vector<8x128xf32> to vector<8x128xbf16>
    %307 = vector.extract_strided_slice %305 {offsets = [0, 0], sizes = [1, 128], strides = [1, 1]} : vector<8x128xf32> to vector<1x128xf32>
    %cst_97 = arith.constant dense<0.000000e+00> : vector<1x4xf32>
    %308 = tpu.matmul %307, %5, %cst_97 {dimension_numbers = #tpu.dot_dimension_numbers<[1], [0], [0], [1], [0, 0, 1, 1], [], []>} : vector<1x128xf32>, vector<128x4xf32>, vector<1x4xf32> -> vector<1x4xf32>
    %309 = arith.addf %7, %308 : vector<1x4xf32>
    %310 = vector.extract_strided_slice %305 {offsets = [1, 0], sizes = [1, 128], strides = [1, 1]} : vector<8x128xf32> to vector<1x128xf32>
    %cst_98 = arith.constant dense<0.000000e+00> : vector<1x4xf32>
    %311 = tpu.matmul %310, %6, %cst_98 {dimension_numbers = #tpu.dot_dimension_numbers<[1], [0], [0], [1], [0, 0, 1, 1], [], []>} : vector<1x128xf32>, vector<128x4xf32>, vector<1x4xf32> -> vector<1x4xf32>
    %312 = arith.addf %309, %311 : vector<1x4xf32>
    %c4 = arith.constant 4 : index
    %c0_99 = arith.constant 0 : index
    %313 = vector.load %arg4[%c4, %c0_99] : memref<8x4xf32, #tpu.memory_space<vmem>>, vector<1x4xf32>
    tpu.vector_store %arg4[%c4, %c0_99], %312 {strides = array<i32>} : memref<8x4xf32, #tpu.memory_space<vmem>>, vector<1x4xf32>,
    %314 = vector.extract_strided_slice %11 {offsets = [40, 0], sizes = [8, 512], strides = [1, 1]} : vector<64x512xf32> to vector<8x512xf32>
    %cst_100 = arith.constant dense<0.000000e+00> : vector<8x512xf32>
    %315 = tpu.matmul %279, %3, %cst_100 {dimension_numbers = #tpu.dot_dimension_numbers<[1], [0], [0], [1], [0, 0, 1, 1], [], []>} : vector<8x128xbf16>, vector<128x512xbf16>, vector<8x512xf32> -> vector<8x512xf32>
    %316 = arith.addf %314, %315 : vector<8x512xf32>
    %317 = math.tanh %316 : vector<8x512xf32>
    %318 = vector.extract_strided_slice %317 {offsets = [0, 0], sizes = [8, 128], strides = [1, 1]} : vector<8x512xf32> to vector<8x128xf32>
    %cst_101 = arith.constant 5.000000e-01 : f32
    %319 = vector.broadcast %cst_101 : f32 to vector<8x128xf32>
    %320 = arith.mulf %319, %318 : vector<8x128xf32>
    %cst_102 = arith.constant 5.000000e-01 : f32
    %321 = vector.broadcast %cst_102 : f32 to vector<8x128xf32>
    %322 = arith.addf %320, %321 : vector<8x128xf32>
    %323 = vector.extract_strided_slice %317 {offsets = [0, 128], sizes = [8, 128], strides = [1, 1]} : vector<8x512xf32> to vector<8x128xf32>
    %cst_103 = arith.constant 5.000000e-01 : f32
    %324 = vector.broadcast %cst_103 : f32 to vector<8x128xf32>
    %325 = arith.mulf %324, %323 : vector<8x128xf32>
    %cst_104 = arith.constant 5.000000e-01 : f32
    %326 = vector.broadcast %cst_104 : f32 to vector<8x128xf32>
    %327 = arith.addf %325, %326 : vector<8x128xf32>
    %328 = vector.extract_strided_slice %317 {offsets = [0, 256], sizes = [8, 128], strides = [1, 1]} : vector<8x512xf32> to vector<8x128xf32>
    %329 = vector.extract_strided_slice %317 {offsets = [0, 384], sizes = [8, 128], strides = [1, 1]} : vector<8x512xf32> to vector<8x128xf32>
    %cst_105 = arith.constant 5.000000e-01 : f32
    %330 = vector.broadcast %cst_105 : f32 to vector<8x128xf32>
    %331 = arith.mulf %330, %329 : vector<8x128xf32>
    %cst_106 = arith.constant 5.000000e-01 : f32
    %332 = vector.broadcast %cst_106 : f32 to vector<8x128xf32>
    %333 = arith.addf %331, %332 : vector<8x128xf32>
    %334 = arith.mulf %327, %276 : vector<8x128xf32>
    %335 = arith.mulf %322, %328 : vector<8x128xf32>
    %336 = arith.addf %334, %335 : vector<8x128xf32>
    %337 = math.tanh %336 : vector<8x128xf32>
    %338 = arith.mulf %333, %337 : vector<8x128xf32>
    %339 = arith.truncf %338 : vector<8x128xf32> to vector<8x128xbf16>
    %340 = tpu.concatenate %339, %306 in 1 : vector<8x128xbf16>, vector<8x128xbf16> -> vector<8x256xbf16>
    %cst_107 = arith.constant dense<0.000000e+00> : vector<8x512xf32>
    %341 = tpu.matmul %340, %4, %cst_107 {dimension_numbers = #tpu.dot_dimension_numbers<[1], [0], [0], [1], [0, 0, 1, 1], [], []>} : vector<8x256xbf16>, vector<256x512xbf16>, vector<8x512xf32> -> vector<8x512xf32>
    %342 = vector.broadcast %2 : vector<1x512xf32> to vector<8x512xf32>
    %343 = arith.addf %341, %342 : vector<8x512xf32>
    %344 = math.tanh %343 : vector<8x512xf32>
    %345 = vector.extract_strided_slice %344 {offsets = [0, 0], sizes = [8, 128], strides = [1, 1]} : vector<8x512xf32> to vector<8x128xf32>
    %cst_108 = arith.constant 5.000000e-01 : f32
    %346 = vector.broadcast %cst_108 : f32 to vector<8x128xf32>
    %347 = arith.mulf %346, %345 : vector<8x128xf32>
    %cst_109 = arith.constant 5.000000e-01 : f32
    %348 = vector.broadcast %cst_109 : f32 to vector<8x128xf32>
    %349 = arith.addf %347, %348 : vector<8x128xf32>
    %350 = vector.extract_strided_slice %344 {offsets = [0, 128], sizes = [8, 128], strides = [1, 1]} : vector<8x512xf32> to vector<8x128xf32>
    %cst_110 = arith.constant 5.000000e-01 : f32
    %351 = vector.broadcast %cst_110 : f32 to vector<8x128xf32>
    %352 = arith.mulf %351, %350 : vector<8x128xf32>
    %cst_111 = arith.constant 5.000000e-01 : f32
    %353 = vector.broadcast %cst_111 : f32 to vector<8x128xf32>
    %354 = arith.addf %352, %353 : vector<8x128xf32>
    %355 = vector.extract_strided_slice %344 {offsets = [0, 256], sizes = [8, 128], strides = [1, 1]} : vector<8x512xf32> to vector<8x128xf32>
    %356 = vector.extract_strided_slice %344 {offsets = [0, 384], sizes = [8, 128], strides = [1, 1]} : vector<8x512xf32> to vector<8x128xf32>
    %cst_112 = arith.constant 5.000000e-01 : f32
    %357 = vector.broadcast %cst_112 : f32 to vector<8x128xf32>
    %358 = arith.mulf %357, %356 : vector<8x128xf32>
    %cst_113 = arith.constant 5.000000e-01 : f32
    %359 = vector.broadcast %cst_113 : f32 to vector<8x128xf32>
    %360 = arith.addf %358, %359 : vector<8x128xf32>
    %361 = arith.mulf %354, %303 : vector<8x128xf32>
    %362 = arith.mulf %349, %355 : vector<8x128xf32>
    %363 = arith.addf %361, %362 : vector<8x128xf32>
    %364 = math.tanh %363 : vector<8x128xf32>
    %365 = arith.mulf %360, %364 : vector<8x128xf32>
    %366 = arith.truncf %365 : vector<8x128xf32> to vector<8x128xbf16>
    %367 = vector.extract_strided_slice %365 {offsets = [0, 0], sizes = [1, 128], strides = [1, 1]} : vector<8x128xf32> to vector<1x128xf32>
    %cst_114 = arith.constant dense<0.000000e+00> : vector<1x4xf32>
    %368 = tpu.matmul %367, %5, %cst_114 {dimension_numbers = #tpu.dot_dimension_numbers<[1], [0], [0], [1], [0, 0, 1, 1], [], []>} : vector<1x128xf32>, vector<128x4xf32>, vector<1x4xf32> -> vector<1x4xf32>
    %369 = arith.addf %7, %368 : vector<1x4xf32>
    %370 = vector.extract_strided_slice %365 {offsets = [1, 0], sizes = [1, 128], strides = [1, 1]} : vector<8x128xf32> to vector<1x128xf32>
    %cst_115 = arith.constant dense<0.000000e+00> : vector<1x4xf32>
    %371 = tpu.matmul %370, %6, %cst_115 {dimension_numbers = #tpu.dot_dimension_numbers<[1], [0], [0], [1], [0, 0, 1, 1], [], []>} : vector<1x128xf32>, vector<128x4xf32>, vector<1x4xf32> -> vector<1x4xf32>
    %372 = arith.addf %369, %371 : vector<1x4xf32>
    %c5 = arith.constant 5 : index
    %c0_116 = arith.constant 0 : index
    %373 = vector.load %arg4[%c5, %c0_116] : memref<8x4xf32, #tpu.memory_space<vmem>>, vector<1x4xf32>
    tpu.vector_store %arg4[%c5, %c0_116], %372 {strides = array<i32>} : memref<8x4xf32, #tpu.memory_space<vmem>>, vector<1x4xf32>,
    %374 = vector.extract_strided_slice %11 {offsets = [48, 0], sizes = [8, 512], strides = [1, 1]} : vector<64x512xf32> to vector<8x512xf32>
    %cst_117 = arith.constant dense<0.000000e+00> : vector<8x512xf32>
    %375 = tpu.matmul %339, %3, %cst_117 {dimension_numbers = #tpu.dot_dimension_numbers<[1], [0], [0], [1], [0, 0, 1, 1], [], []>} : vector<8x128xbf16>, vector<128x512xbf16>, vector<8x512xf32> -> vector<8x512xf32>
    %376 = arith.addf %374, %375 : vector<8x512xf32>
    %377 = math.tanh %376 : vector<8x512xf32>
    %378 = vector.extract_strided_slice %377 {offsets = [0, 0], sizes = [8, 128], strides = [1, 1]} : vector<8x512xf32> to vector<8x128xf32>
    %cst_118 = arith.constant 5.000000e-01 : f32
    %379 = vector.broadcast %cst_118 : f32 to vector<8x128xf32>
    %380 = arith.mulf %379, %378 : vector<8x128xf32>
    %cst_119 = arith.constant 5.000000e-01 : f32
    %381 = vector.broadcast %cst_119 : f32 to vector<8x128xf32>
    %382 = arith.addf %380, %381 : vector<8x128xf32>
    %383 = vector.extract_strided_slice %377 {offsets = [0, 128], sizes = [8, 128], strides = [1, 1]} : vector<8x512xf32> to vector<8x128xf32>
    %cst_120 = arith.constant 5.000000e-01 : f32
    %384 = vector.broadcast %cst_120 : f32 to vector<8x128xf32>
    %385 = arith.mulf %384, %383 : vector<8x128xf32>
    %cst_121 = arith.constant 5.000000e-01 : f32
    %386 = vector.broadcast %cst_121 : f32 to vector<8x128xf32>
    %387 = arith.addf %385, %386 : vector<8x128xf32>
    %388 = vector.extract_strided_slice %377 {offsets = [0, 256], sizes = [8, 128], strides = [1, 1]} : vector<8x512xf32> to vector<8x128xf32>
    %389 = vector.extract_strided_slice %377 {offsets = [0, 384], sizes = [8, 128], strides = [1, 1]} : vector<8x512xf32> to vector<8x128xf32>
    %cst_122 = arith.constant 5.000000e-01 : f32
    %390 = vector.broadcast %cst_122 : f32 to vector<8x128xf32>
    %391 = arith.mulf %390, %389 : vector<8x128xf32>
    %cst_123 = arith.constant 5.000000e-01 : f32
    %392 = vector.broadcast %cst_123 : f32 to vector<8x128xf32>
    %393 = arith.addf %391, %392 : vector<8x128xf32>
    %394 = arith.mulf %387, %336 : vector<8x128xf32>
    %395 = arith.mulf %382, %388 : vector<8x128xf32>
    %396 = arith.addf %394, %395 : vector<8x128xf32>
    %397 = math.tanh %396 : vector<8x128xf32>
    %398 = arith.mulf %393, %397 : vector<8x128xf32>
    %399 = arith.truncf %398 : vector<8x128xf32> to vector<8x128xbf16>
    %400 = tpu.concatenate %399, %366 in 1 : vector<8x128xbf16>, vector<8x128xbf16> -> vector<8x256xbf16>
    %cst_124 = arith.constant dense<0.000000e+00> : vector<8x512xf32>
    %401 = tpu.matmul %400, %4, %cst_124 {dimension_numbers = #tpu.dot_dimension_numbers<[1], [0], [0], [1], [0, 0, 1, 1], [], []>} : vector<8x256xbf16>, vector<256x512xbf16>, vector<8x512xf32> -> vector<8x512xf32>
    %402 = vector.broadcast %2 : vector<1x512xf32> to vector<8x512xf32>
    %403 = arith.addf %401, %402 : vector<8x512xf32>
    %404 = math.tanh %403 : vector<8x512xf32>
    %405 = vector.extract_strided_slice %404 {offsets = [0, 0], sizes = [8, 128], strides = [1, 1]} : vector<8x512xf32> to vector<8x128xf32>
    %cst_125 = arith.constant 5.000000e-01 : f32
    %406 = vector.broadcast %cst_125 : f32 to vector<8x128xf32>
    %407 = arith.mulf %406, %405 : vector<8x128xf32>
    %cst_126 = arith.constant 5.000000e-01 : f32
    %408 = vector.broadcast %cst_126 : f32 to vector<8x128xf32>
    %409 = arith.addf %407, %408 : vector<8x128xf32>
    %410 = vector.extract_strided_slice %404 {offsets = [0, 128], sizes = [8, 128], strides = [1, 1]} : vector<8x512xf32> to vector<8x128xf32>
    %cst_127 = arith.constant 5.000000e-01 : f32
    %411 = vector.broadcast %cst_127 : f32 to vector<8x128xf32>
    %412 = arith.mulf %411, %410 : vector<8x128xf32>
    %cst_128 = arith.constant 5.000000e-01 : f32
    %413 = vector.broadcast %cst_128 : f32 to vector<8x128xf32>
    %414 = arith.addf %412, %413 : vector<8x128xf32>
    %415 = vector.extract_strided_slice %404 {offsets = [0, 256], sizes = [8, 128], strides = [1, 1]} : vector<8x512xf32> to vector<8x128xf32>
    %416 = vector.extract_strided_slice %404 {offsets = [0, 384], sizes = [8, 128], strides = [1, 1]} : vector<8x512xf32> to vector<8x128xf32>
    %cst_129 = arith.constant 5.000000e-01 : f32
    %417 = vector.broadcast %cst_129 : f32 to vector<8x128xf32>
    %418 = arith.mulf %417, %416 : vector<8x128xf32>
    %cst_130 = arith.constant 5.000000e-01 : f32
    %419 = vector.broadcast %cst_130 : f32 to vector<8x128xf32>
    %420 = arith.addf %418, %419 : vector<8x128xf32>
    %421 = arith.mulf %414, %363 : vector<8x128xf32>
    %422 = arith.mulf %409, %415 : vector<8x128xf32>
    %423 = arith.addf %421, %422 : vector<8x128xf32>
    %424 = math.tanh %423 : vector<8x128xf32>
    %425 = arith.mulf %420, %424 : vector<8x128xf32>
    %426 = arith.truncf %425 : vector<8x128xf32> to vector<8x128xbf16>
    %427 = vector.extract_strided_slice %425 {offsets = [0, 0], sizes = [1, 128], strides = [1, 1]} : vector<8x128xf32> to vector<1x128xf32>
    %cst_131 = arith.constant dense<0.000000e+00> : vector<1x4xf32>
    %428 = tpu.matmul %427, %5, %cst_131 {dimension_numbers = #tpu.dot_dimension_numbers<[1], [0], [0], [1], [0, 0, 1, 1], [], []>} : vector<1x128xf32>, vector<128x4xf32>, vector<1x4xf32> -> vector<1x4xf32>
    %429 = arith.addf %7, %428 : vector<1x4xf32>
    %430 = vector.extract_strided_slice %425 {offsets = [1, 0], sizes = [1, 128], strides = [1, 1]} : vector<8x128xf32> to vector<1x128xf32>
    %cst_132 = arith.constant dense<0.000000e+00> : vector<1x4xf32>
    %431 = tpu.matmul %430, %6, %cst_132 {dimension_numbers = #tpu.dot_dimension_numbers<[1], [0], [0], [1], [0, 0, 1, 1], [], []>} : vector<1x128xf32>, vector<128x4xf32>, vector<1x4xf32> -> vector<1x4xf32>
    %432 = arith.addf %429, %431 : vector<1x4xf32>
    %c6 = arith.constant 6 : index
    %c0_133 = arith.constant 0 : index
    %433 = vector.load %arg4[%c6, %c0_133] : memref<8x4xf32, #tpu.memory_space<vmem>>, vector<1x4xf32>
    tpu.vector_store %arg4[%c6, %c0_133], %432 {strides = array<i32>} : memref<8x4xf32, #tpu.memory_space<vmem>>, vector<1x4xf32>,
    %434 = vector.extract_strided_slice %11 {offsets = [56, 0], sizes = [8, 512], strides = [1, 1]} : vector<64x512xf32> to vector<8x512xf32>
    %cst_134 = arith.constant dense<0.000000e+00> : vector<8x512xf32>
    %435 = tpu.matmul %399, %3, %cst_134 {dimension_numbers = #tpu.dot_dimension_numbers<[1], [0], [0], [1], [0, 0, 1, 1], [], []>} : vector<8x128xbf16>, vector<128x512xbf16>, vector<8x512xf32> -> vector<8x512xf32>
    %436 = arith.addf %434, %435 : vector<8x512xf32>
    %437 = math.tanh %436 : vector<8x512xf32>
    %438 = vector.extract_strided_slice %437 {offsets = [0, 0], sizes = [8, 128], strides = [1, 1]} : vector<8x512xf32> to vector<8x128xf32>
    %cst_135 = arith.constant 5.000000e-01 : f32
    %439 = vector.broadcast %cst_135 : f32 to vector<8x128xf32>
    %440 = arith.mulf %439, %438 : vector<8x128xf32>
    %cst_136 = arith.constant 5.000000e-01 : f32
    %441 = vector.broadcast %cst_136 : f32 to vector<8x128xf32>
    %442 = arith.addf %440, %441 : vector<8x128xf32>
    %443 = vector.extract_strided_slice %437 {offsets = [0, 128], sizes = [8, 128], strides = [1, 1]} : vector<8x512xf32> to vector<8x128xf32>
    %cst_137 = arith.constant 5.000000e-01 : f32
    %444 = vector.broadcast %cst_137 : f32 to vector<8x128xf32>
    %445 = arith.mulf %444, %443 : vector<8x128xf32>
    %cst_138 = arith.constant 5.000000e-01 : f32
    %446 = vector.broadcast %cst_138 : f32 to vector<8x128xf32>
    %447 = arith.addf %445, %446 : vector<8x128xf32>
    %448 = vector.extract_strided_slice %437 {offsets = [0, 256], sizes = [8, 128], strides = [1, 1]} : vector<8x512xf32> to vector<8x128xf32>
    %449 = vector.extract_strided_slice %437 {offsets = [0, 384], sizes = [8, 128], strides = [1, 1]} : vector<8x512xf32> to vector<8x128xf32>
    %cst_139 = arith.constant 5.000000e-01 : f32
    %450 = vector.broadcast %cst_139 : f32 to vector<8x128xf32>
    %451 = arith.mulf %450, %449 : vector<8x128xf32>
    %cst_140 = arith.constant 5.000000e-01 : f32
    %452 = vector.broadcast %cst_140 : f32 to vector<8x128xf32>
    %453 = arith.addf %451, %452 : vector<8x128xf32>
    %454 = arith.mulf %447, %396 : vector<8x128xf32>
    %455 = arith.mulf %442, %448 : vector<8x128xf32>
    %456 = arith.addf %454, %455 : vector<8x128xf32>
    %457 = math.tanh %456 : vector<8x128xf32>
    %458 = arith.mulf %453, %457 : vector<8x128xf32>
    %459 = arith.truncf %458 : vector<8x128xf32> to vector<8x128xbf16>
    %460 = tpu.concatenate %459, %426 in 1 : vector<8x128xbf16>, vector<8x128xbf16> -> vector<8x256xbf16>
    %cst_141 = arith.constant dense<0.000000e+00> : vector<8x512xf32>
    %461 = tpu.matmul %460, %4, %cst_141 {dimension_numbers = #tpu.dot_dimension_numbers<[1], [0], [0], [1], [0, 0, 1, 1], [], []>} : vector<8x256xbf16>, vector<256x512xbf16>, vector<8x512xf32> -> vector<8x512xf32>
    %462 = vector.broadcast %2 : vector<1x512xf32> to vector<8x512xf32>
    %463 = arith.addf %461, %462 : vector<8x512xf32>
    %464 = math.tanh %463 : vector<8x512xf32>
    %465 = vector.extract_strided_slice %464 {offsets = [0, 0], sizes = [8, 128], strides = [1, 1]} : vector<8x512xf32> to vector<8x128xf32>
    %cst_142 = arith.constant 5.000000e-01 : f32
    %466 = vector.broadcast %cst_142 : f32 to vector<8x128xf32>
    %467 = arith.mulf %466, %465 : vector<8x128xf32>
    %cst_143 = arith.constant 5.000000e-01 : f32
    %468 = vector.broadcast %cst_143 : f32 to vector<8x128xf32>
    %469 = arith.addf %467, %468 : vector<8x128xf32>
    %470 = vector.extract_strided_slice %464 {offsets = [0, 128], sizes = [8, 128], strides = [1, 1]} : vector<8x512xf32> to vector<8x128xf32>
    %cst_144 = arith.constant 5.000000e-01 : f32
    %471 = vector.broadcast %cst_144 : f32 to vector<8x128xf32>
    %472 = arith.mulf %471, %470 : vector<8x128xf32>
    %cst_145 = arith.constant 5.000000e-01 : f32
    %473 = vector.broadcast %cst_145 : f32 to vector<8x128xf32>
    %474 = arith.addf %472, %473 : vector<8x128xf32>
    %475 = vector.extract_strided_slice %464 {offsets = [0, 256], sizes = [8, 128], strides = [1, 1]} : vector<8x512xf32> to vector<8x128xf32>
    %476 = vector.extract_strided_slice %464 {offsets = [0, 384], sizes = [8, 128], strides = [1, 1]} : vector<8x512xf32> to vector<8x128xf32>
    %cst_146 = arith.constant 5.000000e-01 : f32
    %477 = vector.broadcast %cst_146 : f32 to vector<8x128xf32>
    %478 = arith.mulf %477, %476 : vector<8x128xf32>
    %cst_147 = arith.constant 5.000000e-01 : f32
    %479 = vector.broadcast %cst_147 : f32 to vector<8x128xf32>
    %480 = arith.addf %478, %479 : vector<8x128xf32>
    %481 = arith.mulf %474, %423 : vector<8x128xf32>
    %482 = arith.mulf %469, %475 : vector<8x128xf32>
    %483 = arith.addf %481, %482 : vector<8x128xf32>
    %484 = math.tanh %483 : vector<8x128xf32>
    %485 = arith.mulf %480, %484 : vector<8x128xf32>
    %486 = vector.extract_strided_slice %485 {offsets = [0, 0], sizes = [1, 128], strides = [1, 1]} : vector<8x128xf32> to vector<1x128xf32>
    %cst_148 = arith.constant dense<0.000000e+00> : vector<1x4xf32>
    %487 = tpu.matmul %486, %5, %cst_148 {dimension_numbers = #tpu.dot_dimension_numbers<[1], [0], [0], [1], [0, 0, 1, 1], [], []>} : vector<1x128xf32>, vector<128x4xf32>, vector<1x4xf32> -> vector<1x4xf32>
    %488 = arith.addf %7, %487 : vector<1x4xf32>
    %489 = vector.extract_strided_slice %485 {offsets = [1, 0], sizes = [1, 128], strides = [1, 1]} : vector<8x128xf32> to vector<1x128xf32>
    %cst_149 = arith.constant dense<0.000000e+00> : vector<1x4xf32>
    %490 = tpu.matmul %489, %6, %cst_149 {dimension_numbers = #tpu.dot_dimension_numbers<[1], [0], [0], [1], [0, 0, 1, 1], [], []>} : vector<1x128xf32>, vector<128x4xf32>, vector<1x4xf32> -> vector<1x4xf32>
    %491 = arith.addf %488, %490 : vector<1x4xf32>
    %c7 = arith.constant 7 : index
    %c0_150 = arith.constant 0 : index
    %492 = vector.load %arg4[%c7, %c0_150] : memref<8x4xf32, #tpu.memory_space<vmem>>, vector<1x4xf32>
    tpu.vector_store %arg4[%c7, %c0_150], %491 {strides = array<i32>} : memref<8x4xf32, #tpu.memory_space<vmem>>, vector<1x4xf32>,
    return
  }
}

</mosaic_0001>

<bundles_post_ra>
// kernel: tpu_custom_call.1
= control target key start
LH: loop header
LB: loop body
LE: loop exit
PB: predicated region body
PF: predicated region fallthrough
CT: control target
= control target key end

     0   :  { %9 = vsyncpa [#allocation3], 0  ;;  %s5287_s15 = smov [#allocation2]   ;;  %s8030_s0 = inlined_call_operand.vmem [shape: f32[64,16], index: 0, kind: input, shape index: {}]   ;;  %s8031_s1 = inlined_call_operand.vmem [shape: f32[32,512], index: 1, kind: input, shape index: {}]   ;;  %s8032_s2 = inlined_call_operand.hbm [shape: bf16[384,512], index: 2, kind: input, shape index: {}]   ;;  %s8033_s3 = inlined_call_operand.vmem [shape: f32[264,4], index: 3, kind: input, shape index: {}]   ;;  %s8034_s4 = inlined_call_operand.vmem [shape: f32[8,4], index: 4, kind: output, shape index: {}]  }
   0x1   :  { %s19_s16 = sshll.u32 %s5287_s15, 4  ;;  %s20_s16 = int_to_ptr.vmem [resolvable:$true] %s19_s16 }
   0x2   :  { %s5273_s17 = scalar_lea.vmem %s20_s16, 12288  ;;  %p5278_p1 = scmp.lt.s32.totalorder %s20_s16, %s20_s16 }
   0x3   :  { %p5274_p0 = scmp.ne.s32.totalorder %s20_s16, %s5273_s17  ;;  %p5279_p2 = scmp.lt.s32.totalorder %s5273_s17, %s5273_s17 }
   0x5   :  { %p5280_p3 = por %p5279_p2, %p5278_p1 }
   0x7   :  { %p5281_p4 = pnand %p5280_p3, %p5274_p0 }
   0x9   :  { %5284 = shalt.err (!%p5281_p4)
}
   0xa   :  { %s5288_s18 = smov 256   ;;  %s5289_s19 = smov 16  }
   0xb   :  { %25 = dma.hbm_to_vmem [thread:$0]  %s8032_s2, 12288, %s20_s16, [#allocation3], %s5288_s18, %s5288_s18, %s5289_s19  }
   0xc   :  { %5285 = dma.done.wait [#allocation3], 12288  }
   0xd   :  { %5286 = vsyncadd [#allocation3], 4294955008  ;;  %v8037_v0 = vmov 0.0   ;;  %v37_v1 = vld [vmem:[%s8031_s1 + $0x28] sm:$0xff]  ;;  %v39_v2 = vld [vmem:[%s8031_s1 + $0x38] sm:$0xff]  ;;  %vm202_vm0 = vcmask 130048  }
   0xe   :  { %291 = vmatprep.mubr.f32.mxu0 %v8037_v0  ;;  %404 = vmatprep.mubr.f32.mxu1 %v8037_v0  ;;  %v36_v3 = vld [vmem:[%s8031_s1 + $0x20] sm:$0xff]  ;;  %v38_v4 = vld [vmem:[%s8031_s1 + $0x30] sm:$0xff]  ;;  %v33_v5 = vld [vmem:[%s8031_s1 + $0x8] sm:$0xff]  ;;  %v8035_v49 = vmov 0   ;;  %vm5292_vm1 = vmmov 0   ;;  %vm1299_vm2 = vcmask 24576  }
   0xf   :  { %255 = vmatprep.subr.mxu0 %v37_v1  ;;  %368 = vmatprep.subr.mxu1 %v39_v2  ;;  %v35_v6 = vld [vmem:[%s8031_s1 + $0x18] sm:$0xff]  ;;  %v32_v7 = vld [vmem:[%s8031_s1] sm:$0xff]  ;;  %v34_v8 = vld [vmem:[%s8031_s1 + $0x10] sm:$0xff] }
  0x10   :  { %256 = vmatpush1.msra.mxu0 %v36_v3  ;;  %369 = vmatpush1.msra.mxu1 %v38_v4  ;;  %v173_v9 = vld [vmem:[%s8030_s0] sm:$0xff]  ;;  %v4681_v11 = vld [vmem:[#allocation2 + $0xec] ss:$16 sps:$4 sm:$0xff]   ;;  %v4684_v13 = vld [vmem:[#allocation2 + $0xe8] ss:$16 sps:$4 sm:$0xff]  }
  0x11   :  { %257 = vmatprep.subr.mxu0 %v33_v5  ;;  %370 = vmatprep.subr.mxu1 %v35_v6  ;;  %v4679_v10 = vld [vmem:[#allocation2 + $0xe4] ss:$16 sps:$4 sm:$0xff]   ;;  %v4683_v12 = vld [vmem:[#allocation2 + $0xe0] ss:$16 sps:$4 sm:$0xff]   ;;  %v174_v14 = vld [vmem:[%s8030_s0 + $0x8] sm:$0xff] }
  0x12   :  { %258 = vmatpush1.msra.mxu0 %v32_v7  ;;  %371 = vmatpush1.msra.mxu1 %v34_v8  ;;  %v4685_v15 = vld [vmem:[#allocation2 + $0xc4] ss:$16 sps:$4 sm:$0xff]   ;;  %v4687_v16 = vld [vmem:[#allocation2 + $0xcc] ss:$16 sps:$4 sm:$0xff]   ;;  %v4689_v17 = vld [vmem:[#allocation2 + $0xc0] ss:$16 sps:$4 sm:$0xff]  }
  0x13   :  { %3729 = vmatmul.mubr.msk.f32.vlgmr.msra.gmra.mxu0 %vm202_vm0, %v173_v9  ;;  %3737 = vmatmul.mubr.msk.f32.vlgmr.msra.gmra.mxu1 %vm202_vm0, %v173_v9  ;;  %v4690_v18 = vld [vmem:[#allocation2 + $0xc8] ss:$16 sps:$4 sm:$0xff]   ;;  %v175_v19 = vld [vmem:[%s8030_s0 + $0x10] sm:$0xff]  ;;  %v4693_v21 = vld [vmem:[#allocation2 + $0xac] ss:$16 sps:$4 sm:$0xff]  }
  0x14   :  { %613 = vmatprep.subr.bf16.mxu0 %v4679_v10  ;;  %654 = vmatprep.subr.bf16.mxu1 %v4681_v11  ;;  %v4691_v20 = vld [vmem:[#allocation2 + $0xa4] ss:$16 sps:$4 sm:$0xff]   ;;  %v4695_v22 = vld [vmem:[#allocation2 + $0xa0] ss:$16 sps:$4 sm:$0xff]   ;;  %v4696_v23 = vld [vmem:[#allocation2 + $0xa8] ss:$16 sps:$4 sm:$0xff]  }
  0x15   :  { %614 = vmatpush1.bf16.msra.mxu0 %v4683_v12  ;;  %655 = vmatpush1.bf16.msra.mxu1 %v4684_v13  ;;  %v176_v24 = vld [vmem:[%s8030_s0 + $0x18] sm:$0xff]  ;;  %v4697_v25 = vld [vmem:[#allocation2 + $0x84] ss:$16 sps:$4 sm:$0xff]   ;;  %v4701_v27 = vld [vmem:[#allocation2 + $0x80] ss:$16 sps:$4 sm:$0xff]  }
  0x16   :  { %297 = vmatprep.mubr.f32.mxu0 %v8037_v0  ;;  %410 = vmatprep.mubr.f32.mxu1 %v8037_v0  ;;  %v4699_v26 = vld [vmem:[#allocation2 + $0x8c] ss:$16 sps:$4 sm:$0xff]   ;;  %v4702_v28 = vld [vmem:[#allocation2 + $0x88] ss:$16 sps:$4 sm:$0xff]   ;;  %v177_v29 = vld [vmem:[%s8030_s0 + $0x20] sm:$0xff] }
  0x17   :  { %3730 = vmatmul.mubr.msk.f32.gmra.mxu0 %vm202_vm0, %v174_v14  ;;  %3738 = vmatmul.mubr.msk.f32.gmra.mxu1 %vm202_vm0, %v174_v14  ;;  %v4703_v30 = vld [vmem:[#allocation2 + $0x64] ss:$16 sps:$4 sm:$0xff]   ;;  %v4705_v31 = vld [vmem:[#allocation2 + $0x6c] ss:$16 sps:$4 sm:$0xff]   ;;  %v4707_v32 = vld [vmem:[#allocation2 + $0x60] ss:$16 sps:$4 sm:$0xff]  }
  0x18   :  { %615 = vmatprep.subr.bf16.mxu0 %v4685_v15  ;;  %656 = vmatprep.subr.bf16.mxu1 %v4687_v16  ;;  %v4708_v33 = vld [vmem:[#allocation2 + $0x68] ss:$16 sps:$4 sm:$0xff]   ;;  %v4709_v35 = vld [vmem:[#allocation2 + $0x44] ss:$16 sps:$4 sm:$0xff]   ;;  %v4711_v36 = vld [vmem:[#allocation2 + $0x4c] ss:$16 sps:$4 sm:$0xff]  }
  0x19   :  { %616 = vmatpush1.bf16.msra.mxu0 %v4689_v17  ;;  %657 = vmatpush1.bf16.msra.mxu1 %v4690_v18  ;;  %v178_v34 = vld [vmem:[%s8030_s0 + $0x28] sm:$0xff]  ;;  %v4713_v37 = vld [vmem:[#allocation2 + $0x40] ss:$16 sps:$4 sm:$0xff]   ;;  %v5390_v40 = vld [vmem:[#allocation2 + $0x24] ss:$16 sps:$4 sm:$0xff]  }
  0x1a   :  { %303 = vmatprep.mubr.f32.mxu0 %v8037_v0  ;;  %416 = vmatprep.mubr.f32.mxu1 %v8037_v0  ;;  %v4714_v38 = vld [vmem:[#allocation2 + $0x48] ss:$16 sps:$4 sm:$0xff]   ;;  %v179_v39 = vld [vmem:[%s8030_s0 + $0x30] sm:$0xff]  ;;  %v5392_v41 = vld [vmem:[#allocation2 + $0x2c] ss:$16 sps:$4 sm:$0xff]  }
  0x1b   :  { %3731 = vmatmul.mubr.msk.f32.gmra.mxu0 %vm202_vm0, %v175_v19  ;;  %3739 = vmatmul.mubr.msk.f32.gmra.mxu1 %vm202_vm0, %v175_v19  ;;  %v5394_v42 = vld [vmem:[#allocation2 + $0x20] ss:$16 sps:$4 sm:$0xff]   ;;  %v5396_v43 = vld [vmem:[#allocation2 + $0x28] ss:$16 sps:$4 sm:$0xff]   ;;  %v5403_v45 = vld [vmem:[#allocation2 + $0x4] ss:$16 sps:$4 sm:$0xff]  }
  0x1c   :  { %617 = vmatprep.subr.bf16.mxu0 %v4691_v20  ;;  %658 = vmatprep.subr.bf16.mxu1 %v4693_v21  ;;  %v180_v44 = vld [vmem:[%s8030_s0 + $0x38] sm:$0xff]  ;;  %v5409_v47 = vld [vmem:[#allocation2] ss:$16 sps:$4 sm:$0xff]   ;;  %v5431_v50 = vld [vmem:[#allocation2 + $0x1e4] ss:$16 sps:$4 sm:$0xff]  }
  0x1d   :  { %618 = vmatpush1.bf16.msra.mxu0 %v4695_v22  ;;  %659 = vmatpush1.bf16.msra.mxu1 %v4696_v23  ;;  %v5405_v46 = vld [vmem:[#allocation2 + $0xc] ss:$16 sps:$4 sm:$0xff]   ;;  %v5411_v48 = vld [vmem:[#allocation2 + $0x8] ss:$16 sps:$4 sm:$0xff]   ;;  %v5435_v52 = vld [vmem:[#allocation2 + $0x1e0] ss:$16 sps:$4 sm:$0xff]  }
  0x1e   :  { %309 = vmatprep.mubr.f32.mxu0 %v8037_v0  ;;  %422 = vmatprep.mubr.f32.mxu1 %v8037_v0  ;;  %v5433_v51 = vld [vmem:[#allocation2 + $0x1ec] ss:$16 sps:$4 sm:$0xff]   ;;  %v5437_v53 = vld [vmem:[#allocation2 + $0x1e8] ss:$16 sps:$4 sm:$0xff]   ;;  %v5443_v54 = vld [vmem:[#allocation2 + $0x1c4] ss:$16 sps:$4 sm:$0xff]  }
  0x1f   :  { %3732 = vmatmul.mubr.msk.f32.gmra.mxu0 %vm202_vm0, %v176_v24  ;;  %3740 = vmatmul.mubr.msk.f32.gmra.mxu1 %vm202_vm0, %v176_v24  ;;  %v5445_v55 = vld [vmem:[#allocation2 + $0x1cc] ss:$16 sps:$4 sm:$0xff]   ;;  %v5447_v56 = vld [vmem:[#allocation2 + $0x1c0] ss:$16 sps:$4 sm:$0xff]   ;;  %v5449_v57 = vld [vmem:[#allocation2 + $0x1c8] ss:$16 sps:$4 sm:$0xff]  }
  0x20   :  { %619 = vmatprep.subr.bf16.mxu0 %v4697_v25  ;;  %660 = vmatprep.subr.bf16.mxu1 %v4699_v26  ;;  %v5455_v58 = vld [vmem:[#allocation2 + $0x1a4] ss:$16 sps:$4 sm:$0xff]   ;;  %v5457_v59 = vld [vmem:[#allocation2 + $0x1ac] ss:$16 sps:$4 sm:$0xff]   ;;  %v5459_v60 = vld [vmem:[#allocation2 + $0x1a0] ss:$16 sps:$4 sm:$0xff]  }
  0x21   :  { %620 = vmatpush1.bf16.msra.mxu0 %v4701_v27  ;;  %661 = vmatpush1.bf16.msra.mxu1 %v4702_v28  ;;  %v5461_v61 = vld [vmem:[#allocation2 + $0x1a8] ss:$16 sps:$4 sm:$0xff]   ;;  %v5467_v62 = vld [vmem:[#allocation2 + $0x184] ss:$16 sps:$4 sm:$0xff]   ;;  %v5469_v63 = vld [vmem:[#allocation2 + $0x18c] ss:$16 sps:$4 sm:$0xff]  }
  0x22   :  { %315 = vmatprep.mubr.f32.mxu0 %v8037_v0  ;;  %428 = vmatprep.mubr.f32.mxu1 %v8037_v0  ;;  %v5471_v1 = vld [vmem:[#allocation2 + $0x180] ss:$16 sps:$4 sm:$0xff]   ;;  %v5473_v2 = vld [vmem:[#allocation2 + $0x188] ss:$16 sps:$4 sm:$0xff]   ;;  %v5479_v3 = vld [vmem:[#allocation2 + $0x164] ss:$16 sps:$4 sm:$0xff]  }
  0x23   :  { %3733 = vmatmul.mubr.msk.f32.gmra.mxu0 %vm202_vm0, %v177_v29  ;;  %3741 = vmatmul.mubr.msk.f32.gmra.mxu1 %vm202_vm0, %v177_v29  ;;  %v5481_v4 = vld [vmem:[#allocation2 + $0x16c] ss:$16 sps:$4 sm:$0xff]   ;;  %v5483_v5 = vld [vmem:[#allocation2 + $0x160] ss:$16 sps:$4 sm:$0xff]   ;;  %v5485_v6 = vld [vmem:[#allocation2 + $0x168] ss:$16 sps:$4 sm:$0xff]  }
  0x24   :  { %621 = vmatprep.subr.bf16.mxu0 %v4703_v30  ;;  %662 = vmatprep.subr.bf16.mxu1 %v4705_v31  ;;  %v5491_v7 = vld [vmem:[#allocation2 + $0x144] ss:$16 sps:$4 sm:$0xff]   ;;  %v5493_v8 = vld [vmem:[#allocation2 + $0x14c] ss:$16 sps:$4 sm:$0xff]   ;;  %v5495_v9 = vld [vmem:[#allocation2 + $0x140] ss:$16 sps:$4 sm:$0xff]  }
  0x25   :  { %622 = vmatpush1.bf16.msra.mxu0 %v4707_v32  ;;  %663 = vmatpush1.bf16.msra.mxu1 %v4708_v33  ;;  %v5497_v10 = vld [vmem:[#allocation2 + $0x148] ss:$16 sps:$4 sm:$0xff]   ;;  %v5503_v11 = vld [vmem:[#allocation2 + $0x124] ss:$16 sps:$4 sm:$0xff]   ;;  %v5505_v12 = vld [vmem:[#allocation2 + $0x12c] ss:$16 sps:$4 sm:$0xff]  }
  0x26   :  { %321 = vmatprep.mubr.f32.mxu0 %v8037_v0  ;;  %434 = vmatprep.mubr.f32.mxu1 %v8037_v0  ;;  %v5507_v13 = vld [vmem:[#allocation2 + $0x120] ss:$16 sps:$4 sm:$0xff]   ;;  %v5509_v14 = vld [vmem:[#allocation2 + $0x128] ss:$16 sps:$4 sm:$0xff]   ;;  %v5515_v15 = vld [vmem:[#allocation2 + $0x104] ss:$16 sps:$4 sm:$0xff]  }
  0x27   :  { %3734 = vmatmul.mubr.msk.f32.gmra.mxu0 %vm202_vm0, %v178_v34  ;;  %3742 = vmatmul.mubr.msk.f32.gmra.mxu1 %vm202_vm0, %v178_v34  ;;  %v5517_v16 = vld [vmem:[#allocation2 + $0x10c] ss:$16 sps:$4 sm:$0xff]   ;;  %v5519_v17 = vld [vmem:[#allocation2 + $0x100] ss:$16 sps:$4 sm:$0xff]   ;;  %v5521_v18 = vld [vmem:[#allocation2 + $0x108] ss:$16 sps:$4 sm:$0xff]  }
  0x28   :  { %623 = vmatprep.subr.bf16.mxu0 %v4709_v35  ;;  %664 = vmatprep.subr.bf16.mxu1 %v4711_v36  ;;  %8495 = vst [vmem:[#allocation5_spill] sm:$0xff] %v5521_v18  ;;  %v5527_v19 = vld [vmem:[#allocation2 + $0x2e4] ss:$16 sps:$4 sm:$0xff]   ;;  %v5529_v20 = vld [vmem:[#allocation2 + $0x2ec] ss:$16 sps:$4 sm:$0xff]  }
  0x29   :  { %624 = vmatpush1.bf16.msra.mxu0 %v4713_v37  ;;  %665 = vmatpush1.bf16.msra.mxu1 %v4714_v38  ;;  %8496 = vst [vmem:[#allocation6_spill] sm:$0xff] %v5527_v19  ;;  %8497 = vst [vmem:[#allocation7_spill] sm:$0xff] %v5529_v20  ;;  %v5531_v21 = vld [vmem:[#allocation2 + $0x2e0] ss:$16 sps:$4 sm:$0xff]   ;;  %v5533_v22 = vld [vmem:[#allocation2 + $0x2e8] ss:$16 sps:$4 sm:$0xff]  }
  0x2a   :  { %327 = vmatprep.mubr.f32.mxu0 %v8037_v0  ;;  %440 = vmatprep.mubr.f32.mxu1 %v8037_v0  ;;  %8498 = vst [vmem:[#allocation8_spill] sm:$0xff] %v5531_v21  ;;  %8499 = vst [vmem:[#allocation9_spill] sm:$0xff] %v5533_v22  ;;  %v5539_v23 = vld [vmem:[#allocation2 + $0x2c4] ss:$16 sps:$4 sm:$0xff]   ;;  %v5541_v24 = vld [vmem:[#allocation2 + $0x2cc] ss:$16 sps:$4 sm:$0xff]  }
  0x2b   :  { %3735 = vmatmul.mubr.msk.f32.gmra.mxu0 %vm202_vm0, %v179_v39  ;;  %3743 = vmatmul.mubr.msk.f32.gmra.mxu1 %vm202_vm0, %v179_v39  ;;  %8500 = vst [vmem:[#allocation10_spill] sm:$0xff] %v5539_v23  ;;  %8501 = vst [vmem:[#allocation11_spill] sm:$0xff] %v5541_v24  ;;  %v5543_v25 = vld [vmem:[#allocation2 + $0x2c0] ss:$16 sps:$4 sm:$0xff]   ;;  %v5545_v26 = vld [vmem:[#allocation2 + $0x2c8] ss:$16 sps:$4 sm:$0xff]  }
  0x2c   :  { %625 = vmatprep.subr.bf16.mxu0 %v5390_v40  ;;  %666 = vmatprep.subr.bf16.mxu1 %v5392_v41  ;;  %8502 = vst [vmem:[#allocation12_spill] sm:$0xff] %v5543_v25  ;;  %8503 = vst [vmem:[#allocation13_spill] sm:$0xff] %v5545_v26  ;;  %v5551_v27 = vld [vmem:[#allocation2 + $0x2a4] ss:$16 sps:$4 sm:$0xff]   ;;  %v5553_v28 = vld [vmem:[#allocation2 + $0x2ac] ss:$16 sps:$4 sm:$0xff]  }
  0x2d   :  { %626 = vmatpush1.bf16.msra.mxu0 %v5394_v42  ;;  %667 = vmatpush1.bf16.msra.mxu1 %v5396_v43  ;;  %8504 = vst [vmem:[#allocation14_spill] sm:$0xff] %v5551_v27  ;;  %8505 = vst [vmem:[#allocation15_spill] sm:$0xff] %v5553_v28  ;;  %v5555_v29 = vld [vmem:[#allocation2 + $0x2a0] ss:$16 sps:$4 sm:$0xff]   ;;  %v5557_v30 = vld [vmem:[#allocation2 + $0x2a8] ss:$16 sps:$4 sm:$0xff]  }
  0x2e   :  { %333 = vmatprep.mubr.f32.mxu0 %v8037_v0  ;;  %446 = vmatprep.mubr.f32.mxu1 %v8037_v0  ;;  %8506 = vst [vmem:[#allocation16_spill] sm:$0xff] %v5555_v29  ;;  %8507 = vst [vmem:[#allocation17_spill] sm:$0xff] %v5557_v30  ;;  %v5563_v31 = vld [vmem:[#allocation2 + $0x284] ss:$16 sps:$4 sm:$0xff]   ;;  %v5565_v32 = vld [vmem:[#allocation2 + $0x28c] ss:$16 sps:$4 sm:$0xff]  }
  0x2f   :  { %3736 = vmatmul.mubr.msk.f32.gmra.mxu0 %vm202_vm0, %v180_v44  ;;  %3744 = vmatmul.mubr.msk.f32.gmra.mxu1 %vm202_vm0, %v180_v44  ;;  %8508 = vst [vmem:[#allocation18_spill] sm:$0xff] %v5563_v31  ;;  %8509 = vst [vmem:[#allocation19_spill] sm:$0xff] %v5565_v32  ;;  %v5567_v33 = vld [vmem:[#allocation2 + $0x280] ss:$16 sps:$4 sm:$0xff]   ;;  %v5569_v34 = vld [vmem:[#allocation2 + $0x288] ss:$16 sps:$4 sm:$0xff]  }
  0x30   :  { %627 = vmatprep.subr.bf16.mxu0 %v5403_v45  ;;  %668 = vmatprep.subr.bf16.mxu1 %v5405_v46  ;;  %8510 = vst [vmem:[#allocation20_spill] sm:$0xff] %v5567_v33  ;;  %8511 = vst [vmem:[#allocation21_spill] sm:$0xff] %v5569_v34  ;;  %v5575_v35 = vld [vmem:[#allocation2 + $0x264] ss:$16 sps:$4 sm:$0xff]   ;;  %v5577_v36 = vld [vmem:[#allocation2 + $0x26c] ss:$16 sps:$4 sm:$0xff]  }
  0x31   :  { %628 = vmatpush1.bf16.msra.mxu0 %v5409_v47  ;;  %669 = vmatpush1.bf16.msra.mxu1 %v5411_v48  ;;  %8512 = vst [vmem:[#allocation22_spill] sm:$0xff] %v5575_v35  ;;  %8513 = vst [vmem:[#allocation23_spill] sm:$0xff] %v5577_v36  ;;  %v5579_v37 = vld [vmem:[#allocation2 + $0x260] ss:$16 sps:$4 sm:$0xff]   ;;  %v5581_v38 = vld [vmem:[#allocation2 + $0x268] ss:$16 sps:$4 sm:$0xff]  }
  0x32   :  { %645 = vmatprep.mubr.bf16.mxu0 %v8035_v49  ;;  %686 = vmatprep.mubr.bf16.mxu1 %v8035_v49  ;;  %8514 = vst [vmem:[#allocation24_spill] sm:$0xff] %v5579_v37  ;;  %8515 = vst [vmem:[#allocation25_spill] sm:$0xff] %v5581_v38  ;;  %v5587_v39 = vld [vmem:[#allocation2 + $0x244] ss:$16 sps:$4 sm:$0xff]   ;;  %v5589_v44 = vld [vmem:[#allocation2 + $0x24c] ss:$16 sps:$4 sm:$0xff]  }
  0x33   :  { %1056 = vmatprep.subr.bf16.mxu0 %v5431_v50  ;;  %1097 = vmatprep.subr.bf16.mxu1 %v5433_v51  ;;  %8516 = vst [vmem:[#allocation26_spill] sm:$0xff] %v5587_v39  ;;  %8517 = vst [vmem:[#allocation27_spill] sm:$0xff] %v5589_v44  ;;  %v5593_v0 = vld [vmem:[#allocation2 + $0x248] ss:$16 sps:$4 sm:$0xff]  }
  0x34   :  { %646 = vmatmul.mubr.bf16.vlgmr.msra.gmra.mxu0 %v8035_v49  ;;  %687 = vmatmul.mubr.bf16.vlgmr.msra.gmra.mxu1 %v8035_v49  ;;  %8519 = vst [vmem:[#allocation29_spill] sm:$0xff] %v5593_v0 }
  0x35   :  { %1088 = vmatprep.mubr.bf16.mxu0 %v8035_v49  ;;  %1129 = vmatprep.mubr.bf16.mxu1 %v8035_v49  ;;  %v5591_v49 = vld [vmem:[#allocation2 + $0x240] ss:$16 sps:$4 sm:$0xff]  }
  0x36   :  { %1057 = vmatpush1.bf16.msra.mxu0 %v5435_v52  ;;  %1098 = vmatpush1.bf16.msra.mxu1 %v5437_v53  ;;  %8518 = vst [vmem:[#allocation28_spill] sm:$0xff] %v5591_v49 }
  0x37   :  { %1058 = vmatprep.subr.bf16.mxu0 %v5443_v54  ;;  %1099 = vmatprep.subr.bf16.mxu1 %v5445_v55 }
  0x3a   :  { %1059 = vmatpush1.bf16.msra.mxu0 %v5447_v56  ;;  %1100 = vmatpush1.bf16.msra.mxu1 %v5449_v57 }
  0x3b   :  { %1060 = vmatprep.subr.bf16.mxu0 %v5455_v58  ;;  %1101 = vmatprep.subr.bf16.mxu1 %v5457_v59 }
  0x3e   :  { %1061 = vmatpush1.bf16.msra.mxu0 %v5459_v60  ;;  %1102 = vmatpush1.bf16.msra.mxu1 %v5461_v61 }
  0x3f   :  { %1062 = vmatprep.subr.bf16.mxu0 %v5467_v62  ;;  %1103 = vmatprep.subr.bf16.mxu1 %v5469_v63 }
  0x42   :  { %1063 = vmatpush1.bf16.msra.mxu0 %v5471_v1  ;;  %1104 = vmatpush1.bf16.msra.mxu1 %v5473_v2 }
  0x43   :  { %1064 = vmatprep.subr.bf16.mxu0 %v5479_v3  ;;  %1105 = vmatprep.subr.bf16.mxu1 %v5481_v4 }
  0x46   :  { %1065 = vmatpush1.bf16.msra.mxu0 %v5483_v5  ;;  %1106 = vmatpush1.bf16.msra.mxu1 %v5485_v6 }
  0x47   :  { %1066 = vmatprep.subr.bf16.mxu0 %v5491_v7  ;;  %1107 = vmatprep.subr.bf16.mxu1 %v5493_v8 }
  0x4a   :  { %1067 = vmatpush1.bf16.msra.mxu0 %v5495_v9  ;;  %1108 = vmatpush1.bf16.msra.mxu1 %v5497_v10 }
  0x4b   :  { %1068 = vmatprep.subr.bf16.mxu0 %v5503_v11  ;;  %1109 = vmatprep.subr.bf16.mxu1 %v5505_v12 }
  0x4e   :  { %1069 = vmatpush1.bf16.msra.mxu0 %v5507_v13  ;;  %1110 = vmatpush1.bf16.msra.mxu1 %v5509_v14 }
  0x4f   :  { %1070 = vmatprep.subr.bf16.mxu0 %v5515_v15  ;;  %1111 = vmatprep.subr.bf16.mxu1 %v5517_v16 }
  0x52   :  { %1071 = vmatpush1.bf16.msra.mxu0 %v5519_v17  ;;  %1112 = vmatpush1.bf16.msra.mxu1 %v5521_v18 }
  0x53   :  { %1072 = vmatprep.subr.bf16.mxu0 %v5527_v19  ;;  %1113 = vmatprep.subr.bf16.mxu1 %v5529_v20 }
  0x56   :  { %1073 = vmatpush2.bf16.msra.mxu0 %v5531_v21  ;;  %1114 = vmatpush2.bf16.msra.mxu1 %v5533_v22 }
  0x57   :  { %1074 = vmatprep.subr.bf16.mxu0 %v5539_v23  ;;  %1115 = vmatprep.subr.bf16.mxu1 %v5541_v24 }
  0x5a   :  { %1075 = vmatpush2.bf16.msra.mxu0 %v5543_v25  ;;  %1116 = vmatpush2.bf16.msra.mxu1 %v5545_v26 }
  0x5b   :  { %1076 = vmatprep.subr.bf16.mxu0 %v5551_v27  ;;  %1117 = vmatprep.subr.bf16.mxu1 %v5553_v28 }
  0x5e   :  { %1077 = vmatpush2.bf16.msra.mxu0 %v5555_v29  ;;  %1118 = vmatpush2.bf16.msra.mxu1 %v5557_v30 }
  0x5f   :  { %1078 = vmatprep.subr.bf16.mxu0 %v5563_v31  ;;  %1119 = vmatprep.subr.bf16.mxu1 %v5565_v32 }
  0x62   :  { %1079 = vmatpush2.bf16.msra.mxu0 %v5567_v33  ;;  %1120 = vmatpush2.bf16.msra.mxu1 %v5569_v34  ;;  %v5605_v34 = vld [vmem:[#allocation2 + $0x228] ss:$16 sps:$4 sm:$0xff]  }
  0x63   :  { %1080 = vmatprep.subr.bf16.mxu0 %v5575_v35  ;;  %1121 = vmatprep.subr.bf16.mxu1 %v5577_v36  ;;  %v5599_v36 = vld [vmem:[#allocation2 + $0x224] ss:$16 sps:$4 sm:$0xff]   ;;  %8523 = vst [vmem:[#allocation33_spill] sm:$0xff] %v5605_v34 }
  0x64   :  { %8520 = vst [vmem:[#allocation30_spill] sm:$0xff] %v5599_v36 }
  0x66   :  { %1081 = vmatpush2.bf16.msra.mxu0 %v5579_v37  ;;  %1122 = vmatpush2.bf16.msra.mxu1 %v5581_v38  ;;  %v5601_v37 = vld [vmem:[#allocation2 + $0x22c] ss:$16 sps:$4 sm:$0xff]   ;;  %v5603_v38 = vld [vmem:[#allocation2 + $0x220] ss:$16 sps:$4 sm:$0xff]  }
  0x67   :  { %1082 = vmatprep.subr.bf16.mxu0 %v5587_v39  ;;  %1123 = vmatprep.subr.bf16.mxu1 %v5589_v44  ;;  %8521 = vst [vmem:[#allocation31_spill] sm:$0xff] %v5601_v37  ;;  %8522 = vst [vmem:[#allocation32_spill] sm:$0xff] %v5603_v38  ;;  %v5611_v44 = vld [vmem:[#allocation2 + $0x204] ss:$16 sps:$4 sm:$0xff]   ;;  %v5617_v39 = vld [vmem:[#allocation2 + $0x208] ss:$16 sps:$4 sm:$0xff]  }
  0x68   :  { %8524 = vst [vmem:[#allocation34_spill] sm:$0xff] %v5611_v44  ;;  %8527 = vst [vmem:[#allocation37_spill] sm:$0xff] %v5617_v39 }
  0x6a   :  { %1083 = vmatpush2.bf16.msra.mxu0 %v5591_v49  ;;  %1124 = vmatpush2.bf16.msra.mxu1 %v5593_v0  ;;  %v5613_v49 = vld [vmem:[#allocation2 + $0x20c] ss:$16 sps:$4 sm:$0xff]   ;;  %v5615_v0 = vld [vmem:[#allocation2 + $0x200] ss:$16 sps:$4 sm:$0xff]  }
  0x6b   :  { %1084 = vmatprep.subr.bf16.mxu0 %v5599_v36  ;;  %1125 = vmatprep.subr.bf16.mxu1 %v5601_v37  ;;  %8525 = vst [vmem:[#allocation35_spill] sm:$0xff] %v5613_v49  ;;  %8526 = vst [vmem:[#allocation36_spill] sm:$0xff] %v5615_v0  ;;  %v8528_v37 = vmov 0.0  }
  0x6e   :  { %1085 = vmatpush2.bf16.msra.mxu0 %v5603_v38  ;;  %1126 = vmatpush2.bf16.msra.mxu1 %v5605_v34  ;;  %v182_v34 = vlaneseq }
  0x6f   :  { %1086 = vmatprep.subr.bf16.mxu0 %v5611_v44  ;;  %1127 = vmatprep.subr.bf16.mxu1 %v5613_v49  ;;  %v3727_v44 = vld [vmem:[%s8031_s1 + $0x40] ss:$8 sm:$0xf] }
  0x70   :  { %v5625_v38 = vshrl.u32 %v182_v34, 7 }
  0x72   :  { %1087 = vmatpush2.bf16.msra.mxu0 %v5615_v0  ;;  %1128 = vmatpush2.bf16.msra.mxu1 %v5617_v39  ;;  %v8067_v36 = vsub.s32 0, %v5625_v38  ;;  %v8069_v35 = vsub.s32 2, %v5625_v38  ;;  %v8073_v39 = vsub.s32 1, %v5625_v38  ;;  %v8074_v33 = vsub.s32 3, %v5625_v38 }
  0x73   :  { %4113 = vmatprep.subr.mxu0 %v8528_v37  ;;  %4148 = vmatprep.subr.mxu1 %v8528_v37 }
  0x74   :  { %v185_v30 = vrot.slane %v3727_v44, %v8067_v36  ;;  %v5646_v31 = vrot.slane %v3727_v44, %v8069_v35  ;;  %v189_v26 = vrot.slane %v3727_v44, %v8073_v39  ;;  %v5652_v27 = vrot.slane %v3727_v44, %v8074_v33 }
  0xd3   :  { %v5632_v49 = vpop.f32.mrf.mxu0  ;;  %v5634_v0 = vpop.f32.mrf.mxu1 }
  0xd5   :  { %v5638_v32 = vpop.f32.mrf.mxu0  ;;  %v5640_v34 = vpop.f32.mrf.mxu1 }
  0xd7   :  { %v299_v29 = vpop.f32.mrf.mxu0  ;;  %v412_v28 = vpop.f32.mrf.mxu1 }
  0xd8   :  { %v5654_v25 = vadd.f32 %v299_v29, %v185_v30  ;;  %v5657_v24 = vadd.f32 %v412_v28, %v5646_v31 }
  0xd9   :  { %v301_v22 = vpop.f32.mrf.mxu0  ;;  %v414_v36 = vpop.f32.mrf.mxu1 }
  0xda   :  { %8529 = vst [vmem:[#allocation38_spill] sm:$0xff] %v5654_v25  ;;  %8530 = vst [vmem:[#allocation39_spill] sm:$0xff] %v5657_v24  ;;  %v5659_v23 = vadd.f32 %v301_v22, %v189_v26  ;;  %v5662_v35 = vadd.f32 %v414_v36, %v5652_v27 }
  0xdb   :  { %v305_v21 = vpop.f32.mrf.mxu0  ;;  %v418_v20 = vpop.f32.mrf.mxu1 }
  0xdc   :  { %8531 = vst [vmem:[#allocation40_spill] sm:$0xff] %v5659_v23  ;;  %8532 = vst [vmem:[#allocation41_spill] sm:$0xff] %v5662_v35  ;;  %v5664_v18 = vadd.f32 %v305_v21, %v185_v30  ;;  %v5667_v39 = vadd.f32 %v418_v20, %v5646_v31 }
  0xdd   :  { %v307_v44 = vpop.f32.mrf.mxu0  ;;  %v420_v29 = vpop.f32.mrf.mxu1 }
  0xde   :  { %8533 = vst [vmem:[#allocation42_spill] sm:$0xff] %v5664_v18  ;;  %8534 = vst [vmem:[#allocation43_spill] sm:$0xff] %v5667_v39  ;;  %v5669_v33 = vadd.f32 %v307_v44, %v189_v26  ;;  %v5672_v28 = vadd.f32 %v420_v29, %v5652_v27 }
  0xdf   :  { %v311_v24 = vpop.f32.mrf.mxu0  ;;  %v424_v22 = vpop.f32.mrf.mxu1 }
  0xe0   :  { %8535 = vst [vmem:[#allocation44_spill] sm:$0xff] %v5669_v33  ;;  %8536 = vst [vmem:[#allocation45_spill] sm:$0xff] %v5672_v28  ;;  %v5674_v23 = vadd.f32 %v311_v24, %v185_v30  ;;  %v5677_v36 = vadd.f32 %v424_v22, %v5646_v31 }
  0xe1   :  { %v313_v35 = vpop.f32.mrf.mxu0  ;;  %v426_v21 = vpop.f32.mrf.mxu1 }
  0xe2   :  { %8537 = vst [vmem:[#allocation46_spill] sm:$0xff] %v5674_v23  ;;  %8538 = vst [vmem:[#allocation47_spill] sm:$0xff] %v5677_v36  ;;  %v5679_v18 = vadd.f32 %v313_v35, %v189_v26  ;;  %v5682_v20 = vadd.f32 %v426_v21, %v5652_v27 }
  0xe3   :  { %v317_v39 = vpop.f32.mrf.mxu0  ;;  %v430_v44 = vpop.f32.mrf.mxu1 }
  0xe4   :  { %8539 = vst [vmem:[#allocation48_spill] sm:$0xff] %v5679_v18  ;;  %8540 = vst [vmem:[#allocation49_spill] sm:$0xff] %v5682_v20  ;;  %v5684_v33 = vadd.f32 %v317_v39, %v185_v30  ;;  %v5687_v29 = vadd.f32 %v430_v44, %v5646_v31 }
  0xe5   :  { %v319_v28 = vpop.f32.mrf.mxu0  ;;  %v432_v24 = vpop.f32.mrf.mxu1 }
  0xe6   :  { %8541 = vst [vmem:[#allocation50_spill] sm:$0xff] %v5684_v33  ;;  %8542 = vst [vmem:[#allocation51_spill] sm:$0xff] %v5687_v29  ;;  %v5689_v23 = vadd.f32 %v319_v28, %v189_v26  ;;  %v5692_v22 = vadd.f32 %v432_v24, %v5652_v27 }
  0xe7   :  { %v323_v36 = vpop.f32.mrf.mxu0  ;;  %v436_v35 = vpop.f32.mrf.mxu1 }
  0xe8   :  { %8543 = vst [vmem:[#allocation52_spill] sm:$0xff] %v5689_v23  ;;  %8544 = vst [vmem:[#allocation53_spill] sm:$0xff] %v5692_v22  ;;  %v5694_v18 = vadd.f32 %v323_v36, %v185_v30  ;;  %v5697_v21 = vadd.f32 %v436_v35, %v5646_v31 }
  0xe9   :  { %v325_v20 = vpop.f32.mrf.mxu0  ;;  %v438_v39 = vpop.f32.mrf.mxu1 }
  0xea   :  { %8545 = vst [vmem:[#allocation54_spill] sm:$0xff] %v5694_v18  ;;  %8546 = vst [vmem:[#allocation55_spill] sm:$0xff] %v5697_v21  ;;  %v5699_v33 = vadd.f32 %v325_v20, %v189_v26  ;;  %v5702_v44 = vadd.f32 %v438_v39, %v5652_v27 }
  0xeb   :  { %v329_v29 = vpop.f32.mrf.mxu0  ;;  %v442_v28 = vpop.f32.mrf.mxu1 }
  0xec   :  { %8547 = vst [vmem:[#allocation56_spill] sm:$0xff] %v5699_v33  ;;  %8548 = vst [vmem:[#allocation57_spill] sm:$0xff] %v5702_v44  ;;  %v5704_v23 = vadd.f32 %v329_v29, %v185_v30  ;;  %v5707_v24 = vadd.f32 %v442_v28, %v5646_v31 }
  0xed   :  { %v331_v22 = vpop.f32.mrf.mxu0  ;;  %v444_v36 = vpop.f32.mrf.mxu1 }
  0xee   :  { %8549 = vst [vmem:[#allocation58_spill] sm:$0xff] %v5704_v23  ;;  %8550 = vst [vmem:[#allocation59_spill] sm:$0xff] %v5707_v24  ;;  %v5709_v18 = vadd.f32 %v331_v22, %v189_v26  ;;  %v5712_v35 = vadd.f32 %v444_v36, %v5652_v27  ;;  %v294_v22 = vadd.f32 %v5632_v49, %v185_v30 }
  0xef   :  { %v335_v21 = vpop.f32.mrf.mxu0  ;;  %v448_v20 = vpop.f32.mrf.mxu1  ;;  %v296_v36 = vadd.f32 %v5638_v32, %v189_v26  ;;  %v409_v49 = vadd.f32 %v5640_v34, %v5652_v27 }
  0xf0   :  { %8551 = vst [vmem:[#allocation60_spill] sm:$0xff] %v5709_v18  ;;  %8552 = vst [vmem:[#allocation61_spill] sm:$0xff] %v5712_v35  ;;  %v5714_v33 = vadd.f32 %v335_v21, %v185_v30  ;;  %v5717_v39 = vadd.f32 %v448_v20, %v5646_v31  ;;  %v407_v20 = vadd.f32 %v5634_v0, %v5646_v31 }
  0xf1   :  { %v337_v44 = vpop.f32.mrf.mxu0  ;;  %v450_v29 = vpop.f32.mrf.mxu1 }
  0xf2   :  { %8553 = vst [vmem:[#allocation62_spill] sm:$0xff] %v5714_v33  ;;  %8554 = vst [vmem:[#allocation63_spill] sm:$0xff] %v5717_v39  ;;  %v5719_v23 = vadd.f32 %v337_v44, %v189_v26  ;;  %v5722_v28 = vadd.f32 %v450_v29, %v5652_v27 }
  0xf4   :  { %8555 = vst [vmem:[#allocation64_spill] sm:$0xff] %v5719_v23  ;;  %8556 = vst [vmem:[#allocation65_spill] sm:$0xff] %v5722_v28  ;;  %v647_v24 = vpop.f32.mrf.mxu0  ;;  %v688_v18 = vpop.f32.mrf.mxu1 }
  0xf5   :  { %v695_v35 = vadd.f32 %v647_v24, %v294_v22  ;;  %v697_v23 = vadd.f32 %v688_v18, %v407_v20  ;;  %v5761_v20 = vld [vmem:[%s8033_s3 + $0x68] sm:$0xff] }
  0xf6   :  { %v649_v25 = vpop.f32.mrf.mxu0  ;;  %v690_v21 = vpop.f32.mrf.mxu1  ;;  %8559 = vst [vmem:[#allocation68_spill] sm:$0xff] %v5761_v20 }
  0xf7   :  { %4823 = vtanh.f32 %v695_v35  ;;  %v696_v39 = vadd.f32 %v649_v25, %v296_v36  ;;  %v698_v30 = vadd.f32 %v690_v21, %v409_v49  ;;  %v5747_v36 = vld [vmem:[%s8033_s3 + $0x70] sm:$0xff]  ;;  %v5752_v21 = vld [vmem:[%s8033_s3 + $0xf8] sm:$0xff]  ;;  %v5780_v49 = vld [vmem:[%s8033_s3 + $0xe8] sm:$0xff] }
  0xf8   :  { %v651_v33 = vpop.f32.mrf.mxu0  ;;  %v692_v44 = vpop.f32.mrf.mxu1  ;;  %8557 = vst [vmem:[#allocation66_spill] sm:$0xff] %v5747_v36  ;;  %8558 = vst [vmem:[#allocation67_spill] sm:$0xff] %v5752_v21 }
  0xf9   :  { %4825 = vtanh.f32 %v696_v39  ;;  %v5766_v44 = vld [vmem:[%s8033_s3 + $0xf0] sm:$0xff]  ;;  %8562 = vst [vmem:[#allocation71_spill] sm:$0xff] %v5780_v49 }
  0xfa   :  { %v652_v29 = vpop.f32.mrf.mxu0  ;;  %v693_v28 = vpop.f32.mrf.mxu1  ;;  %4827 = vtanh.f32 %v697_v23  ;;  %8560 = vst [vmem:[#allocation69_spill] sm:$0xff] %v5766_v44 }
  0xfb   :  { %4829 = vtanh.f32 %v698_v30  ;;  %v5775_v29 = vld [vmem:[%s8033_s3 + $0x60] sm:$0xff]  ;;  %v5789_v30 = vld [vmem:[%s8033_s3 + $0x58] sm:$0xff] }
  0xfc   :  { %8561 = vst [vmem:[#allocation70_spill] sm:$0xff] %v5775_v29  ;;  %8563 = vst [vmem:[#allocation72_spill] sm:$0xff] %v5789_v30 }
 0x104   :  { %v4824_v26 = vpop.eup %4823 }
 0x105   :  { %v703_v32 = vmul.f32 0.5, %v4824_v26  ;;  %v5794_v26 = vld [vmem:[%s8033_s3 + $0xe0] sm:$0xff] }
 0x106   :  { %v4826_v24 = vpop.eup %4825  ;;  %8564 = vst [vmem:[#allocation73_spill] sm:$0xff] %v5794_v26 }
 0x107   :  { %v704_v22 = vadd.f32 0.5, %v703_v32  ;;  %v705_v19 = vmul.f32 0.5, %v4826_v24  ;;  %v4828_v31 = vpop.eup %4827  ;;  %v5803_v32 = vld [vmem:[%s8033_s3 + $0x50] sm:$0xff]  ;;  %v5808_v24 = vld [vmem:[%s8033_s3 + $0xd8] sm:$0xff] }
 0x108   :  { %v4830_v18 = vpop.eup %4829  ;;  %8565 = vst [vmem:[#allocation74_spill] sm:$0xff] %v5803_v32  ;;  %8566 = vst [vmem:[#allocation75_spill] sm:$0xff] %v5808_v24 }
 0x109   :  { %v706_v0 = vadd.f32 0.5, %v705_v19  ;;  %v710_v33 = vmul.f32 %v4828_v31, %v704_v22  ;;  %v707_v23 = vmul.f32 0.5, %v4830_v18  ;;  %v5740_v19 = vld [vmem:[%s8033_s3 + $0x78] sm:$0xff]  ;;  %v5817_v22 = vld [vmem:[%s8033_s3 + $0x48] sm:$0xff]  ;;  %v5831_v31 = vld [vmem:[%s8033_s3 + $0x40] sm:$0xff] }
 0x10a   :  { %8567 = vst [vmem:[#allocation76_spill] sm:$0xff] %v5817_v22  ;;  %8569 = vst [vmem:[#allocation78_spill] sm:$0xff] %v5831_v31  ;;  %v5850_v18 = vld [vmem:[%s8033_s3 + $0xc0] sm:$0xff] }
 0x10b   :  { %v709_v25 = vmul.f32 0.0, %v706_v0  ;;  %v708_v39 = vadd.f32 0.5, %v707_v23  ;;  %v5822_v0 = vld [vmem:[%s8033_s3 + $0xd0] sm:$0xff]  ;;  %8572 = vst [vmem:[#allocation81_spill] sm:$0xff] %v5850_v18 }
 0x10c   :  { %8568 = vst [vmem:[#allocation77_spill] sm:$0xff] %v5822_v0  ;;  %v5859_v23 = vld [vmem:[%s8033_s3 + $0x30] sm:$0xff] }
 0x10d   :  { %v5730_v35 = vadd.f32 %v710_v33, %v709_v25  ;;  %v5836_v25 = vld [vmem:[%s8033_s3 + $0xc8] sm:$0xff]  ;;  %v5845_v33 = vld [vmem:[%s8033_s3 + $0x38] sm:$0xff]  ;;  %8573 = vst [vmem:[#allocation82_spill] sm:$0xff] %v5859_v23 }
 0x10e   :  { %8570 = vst [vmem:[#allocation79_spill] sm:$0xff] %v5836_v25  ;;  %8571 = vst [vmem:[#allocation80_spill] sm:$0xff] %v5845_v33 }
 0x10f   :  { %4831 = vtanh.f32 %v5730_v35 }
 0x11c   :  { %v4832_v28 = vpop.eup %4831 }
 0x11d   :  { %v713_v27 = vmul.f32 %v4832_v28, %v708_v39  ;;  %v5864_v39 = vld [vmem:[%s8033_s3 + $0xb8] sm:$0xff]  ;;  %v5873_v28 = vld [vmem:[%s8033_s3 + $0x28] sm:$0xff] }
 0x11e   :  { %8574 = vst [vmem:[#allocation83_spill] sm:$0xff] %v5864_v39  ;;  %8575 = vst [vmem:[#allocation84_spill] sm:$0xff] %v5873_v28 }
 0x11f   :  { %v5733_v34 = vpack.c.bf16 %v713_v27, %v713_v27  ;;  %v5878_v27 = vld [vmem:[%s8033_s3 + $0xb0] sm:$0xff] }
 0x120   :  { %8576 = vst [vmem:[#allocation85_spill] sm:$0xff] %v5878_v27 }
 0x121   :  { %1089 = vmatmul.mubr.bf16.vlgmr.msra.gmra.mxu0 %v5733_v34  ;;  %1130 = vmatmul.mubr.bf16.vlgmr.msra.gmra.mxu1 %v5733_v34 }
 0x122   :  { %4114 = vmatpush3.msra.mxu0 %v5740_v19  ;;  %4149 = vmatpush3.msra.mxu1 %v5752_v21 }
 0x123   :  { %4115 = vmatprep.subr.mxu0 %v8528_v37  ;;  %4150 = vmatprep.subr.mxu1 %v8528_v37 }
 0x124   :  { %4116 = vmatpush3.msra.mxu0 %v5747_v36  ;;  %4151 = vmatpush3.msra.mxu1 %v5766_v44 }
 0x125   :  { %4117 = vmatprep.subr.mxu0 %v8528_v37  ;;  %4152 = vmatprep.subr.mxu1 %v8528_v37 }
 0x126   :  { %4118 = vmatpush3.msra.mxu0 %v5761_v20  ;;  %4153 = vmatpush3.msra.mxu1 %v5780_v49  ;;  %v8594_v20 = vsub.s32 3, %v5625_v38 }
 0x127   :  { %4119 = vmatprep.subr.mxu0 %v8528_v37  ;;  %4154 = vmatprep.subr.mxu1 %v8528_v37 }
 0x128   :  { %4120 = vmatpush3.msra.mxu0 %v5775_v29  ;;  %4155 = vmatpush3.msra.mxu1 %v5794_v26 }
 0x129   :  { %4121 = vmatprep.subr.mxu0 %v8528_v37  ;;  %4156 = vmatprep.subr.mxu1 %v8528_v37 }
 0x12a   :  { %4122 = vmatpush3.msra.mxu0 %v5789_v30  ;;  %4157 = vmatpush3.msra.mxu1 %v5808_v24 }
 0x12b   :  { %4123 = vmatprep.subr.mxu0 %v8528_v37  ;;  %4158 = vmatprep.subr.mxu1 %v8528_v37 }
 0x12c   :  { %4124 = vmatpush3.msra.mxu0 %v5803_v32  ;;  %4159 = vmatpush3.msra.mxu1 %v5822_v0  ;;  %v8593_v0 = vsub.s32 2, %v5625_v38 }
 0x12d   :  { %4125 = vmatprep.subr.mxu0 %v8528_v37  ;;  %4160 = vmatprep.subr.mxu1 %v8528_v37 }
 0x12e   :  { %4126 = vmatpush3.msra.mxu0 %v5817_v22  ;;  %4161 = vmatpush3.msra.mxu1 %v5836_v25 }
 0x12f   :  { %4127 = vmatprep.subr.mxu0 %v8528_v37  ;;  %4162 = vmatprep.subr.mxu1 %v8528_v37 }
 0x130   :  { %4128 = vmatpush3.msra.mxu0 %v5831_v31  ;;  %4163 = vmatpush3.msra.mxu1 %v5850_v18  ;;  %v8592_v31 = vsub.s32 1, %v5625_v38 }
 0x131   :  { %4129 = vmatprep.subr.mxu0 %v8528_v37  ;;  %4164 = vmatprep.subr.mxu1 %v8528_v37 }
 0x132   :  { %4130 = vmatpush3.msra.mxu0 %v5845_v33  ;;  %4165 = vmatpush3.msra.mxu1 %v5864_v39  ;;  %v5892_v39 = vld [vmem:[%s8033_s3 + $0xa8] sm:$0xff]  ;;  %v8590_v33 = vsub.s32 0, %v5625_v38 }
 0x133   :  { %4131 = vmatprep.subr.mxu0 %v8528_v37  ;;  %4166 = vmatprep.subr.mxu1 %v8528_v37  ;;  %8578 = vst [vmem:[#allocation87_spill] sm:$0xff] %v5892_v39 }
 0x134   :  { %4132 = vmatpush3.msra.mxu0 %v5859_v23  ;;  %4167 = vmatpush3.msra.mxu1 %v5878_v27  ;;  %v5887_v23 = vld [vmem:[%s8033_s3 + $0x20] sm:$0xff] }
 0x135   :  { %4133 = vmatprep.subr.mxu0 %v8528_v37  ;;  %4168 = vmatprep.subr.mxu1 %v8528_v37  ;;  %8577 = vst [vmem:[#allocation86_spill] sm:$0xff] %v5887_v23  ;;  %v5906_v27 = vld [vmem:[%s8033_s3 + $0xa0] sm:$0xff] }
 0x136   :  { %4134 = vmatpush3.msra.mxu0 %v5873_v28  ;;  %4169 = vmatpush3.msra.mxu1 %v5892_v39  ;;  %v5901_v28 = vld [vmem:[%s8033_s3 + $0x18] sm:$0xff]  ;;  %8580 = vst [vmem:[#allocation89_spill] sm:$0xff] %v5906_v27 }
 0x137   :  { %4135 = vmatprep.subr.mxu0 %v8528_v37  ;;  %4170 = vmatprep.subr.mxu1 %v8528_v37  ;;  %8579 = vst [vmem:[#allocation88_spill] sm:$0xff] %v5901_v28  ;;  %v5920_v39 = vld [vmem:[%s8033_s3 + $0x98] sm:$0xff] }
 0x138   :  { %4136 = vmatpush3.msra.mxu0 %v5887_v23  ;;  %4171 = vmatpush3.msra.mxu1 %v5906_v27  ;;  %v5915_v23 = vld [vmem:[%s8033_s3 + $0x10] sm:$0xff]  ;;  %8582 = vst [vmem:[#allocation91_spill] sm:$0xff] %v5920_v39 }
 0x139   :  { %4137 = vmatprep.subr.mxu0 %v8528_v37  ;;  %4172 = vmatprep.subr.mxu1 %v8528_v37  ;;  %8581 = vst [vmem:[#allocation90_spill] sm:$0xff] %v5915_v23  ;;  %v5934_v27 = vld [vmem:[%s8033_s3 + $0x90] sm:$0xff] }
 0x13a   :  { %4138 = vmatpush3.msra.mxu0 %v5901_v28  ;;  %4173 = vmatpush3.msra.mxu1 %v5920_v39  ;;  %v5929_v28 = vld [vmem:[%s8033_s3 + $0x8] sm:$0xff]  ;;  %8584 = vst [vmem:[#allocation93_spill] sm:$0xff] %v5934_v27 }
 0x13b   :  { %4139 = vmatprep.subr.mxu0 %v8528_v37  ;;  %4174 = vmatprep.subr.mxu1 %v8528_v37  ;;  %8583 = vst [vmem:[#allocation92_spill] sm:$0xff] %v5929_v28  ;;  %v5948_v39 = vld [vmem:[%s8033_s3 + $0x88] sm:$0xff] }
 0x13c   :  { %4140 = vmatpush3.msra.mxu0 %v5915_v23  ;;  %4175 = vmatpush3.msra.mxu1 %v5934_v27  ;;  %v5943_v23 = vld [vmem:[%s8033_s3] sm:$0xff]  ;;  %8586 = vst [vmem:[#allocation95_spill] sm:$0xff] %v5948_v39 }
 0x13d   :  { %4141 = vmatprep.subr.mxu0 %v8528_v37  ;;  %4176 = vmatprep.subr.mxu1 %v8528_v37  ;;  %8585 = vst [vmem:[#allocation94_spill] sm:$0xff] %v5943_v23  ;;  %v5960_v27 = vld [vmem:[#allocation2 + $0xe4] ss:$16 sps:$4 sm:$0xff]  }
 0x13e   :  { %4142 = vmatpush3.msra.mxu0 %v5929_v28  ;;  %4177 = vmatpush3.msra.mxu1 %v5948_v39  ;;  %v5958_v28 = vld [vmem:[%s8033_s3 + $0x80] sm:$0xff]  ;;  %8588 = vst [vmem:[#allocation97_spill] sm:$0xff] %v5960_v27 }
 0x13f   :  { %4143 = vmatprep.subr.mxu0 %v8528_v37  ;;  %4145 = vmatprep.mubr.msk.f32.mxu0 %vm5292_vm1, %v8528_v37  ;;  %8587 = vst [vmem:[#allocation96_spill] sm:$0xff] %v5958_v28  ;;  %v3728_v39 = vld [vmem:[%s8031_s1 + $0x60] ss:$8 sm:$0xf] }
 0x140   :  { %4144 = vmatpush3.msra.mxu0 %v5943_v23  ;;  %4178 = vmatprep.subr.mxu1 %v8528_v37  ;;  %v5966_v23 = vld [vmem:[#allocation2 + $0xec] ss:$16 sps:$4 sm:$0xff]   ;;  %v5974_v18 = vrot.slane %v3728_v39, %v8590_v33  ;;  %v5983_v32 = vrot.slane %v3728_v39, %v8593_v0 }
 0x141   :  { %1301 = vmatprep.subr.bf16.mxu0 %v5960_v27  ;;  %4179 = vmatpush3.msra.mxu1 %v5958_v28  ;;  %8589 = vst [vmem:[#allocation98_spill] sm:$0xff] %v5966_v23  ;;  %v5978_v27 = vrot.slane %v3728_v39, %v8592_v31 }
 0x142   :  { %4180 = vmatprep.mubr.msk.f32.mxu1 %vm5292_vm1, %v8528_v37  ;;  %1342 = vmatprep.subr.bf16.mxu1 %v5966_v23  ;;  %8591 = vst [vmem:[#allocation99_spill] sm:$0xff] %v5974_v18 }
 0x1e1   :  { %v1090_v28 = vpop.f32.mrf.mxu0  ;;  %v1131_v25 = vpop.f32.mrf.mxu1 }
 0x1e2   :  { %v1091_v22 = vadd.f32 %v1090_v28, %v5974_v18  ;;  %v1132_v29 = vadd.f32 %v1131_v25, %v5983_v32  ;;  %v5989_v28 = vrot.slane %v3728_v39, %v8594_v20 }
 0x1e3   :  { %v1092_v23 = vpop.f32.mrf.mxu0  ;;  %v1133_v24 = vpop.f32.mrf.mxu1 }
 0x1e4   :  { %4833 = vtanh.f32 %v1091_v22  ;;  %v1093_v30 = vadd.f32 %v1092_v23, %v5978_v27  ;;  %v1134_v0 = vadd.f32 %v1133_v24, %v5989_v28 }
 0x1e5   :  { %v1094_v26 = vpop.f32.mrf.mxu0  ;;  %v1135_v33 = vpop.f32.mrf.mxu1 }
 0x1e6   :  { %4835 = vtanh.f32 %v1093_v30 }
 0x1e7   :  { %v1095_v31 = vpop.f32.mrf.mxu0  ;;  %v1136_v49 = vpop.f32.mrf.mxu1  ;;  %4837 = vtanh.f32 %v1132_v29 }
 0x1e8   :  { %4839 = vtanh.f32 %v1134_v0  ;;  %v6006_v31 = vld [vmem:[#allocation2 + $0xcc] ss:$16 sps:$4 sm:$0xff]   ;;  %v6009_v0 = vld [vmem:[#allocation2 + $0xc0] ss:$16 sps:$4 sm:$0xff]  }
 0x1f1   :  { %v4834_v18 = vpop.eup %4833 }
 0x1f2   :  { %v1142_v44 = vmul.f32 0.5, %v4834_v18  ;;  %v5995_v18 = vld [vmem:[#allocation2 + $0xe0] ss:$16 sps:$4 sm:$0xff]  }
 0x1f3   :  { %v4836_v36 = vpop.eup %4835 }
 0x1f4   :  { %v1143_v22 = vadd.f32 0.5, %v1142_v44  ;;  %v1144_v21 = vmul.f32 0.5, %v4836_v36  ;;  %v4838_v23 = vpop.eup %4837  ;;  %v8595_v36 = vmov 0   ;;  %v6002_v44 = vld [vmem:[#allocation2 + $0xe8] ss:$16 sps:$4 sm:$0xff]  }
 0x1f5   :  { %v4840_v29 = vpop.eup %4839 }
 0x1f6   :  { %v1145_v26 = vadd.f32 0.5, %v1144_v21  ;;  %v1149_v25 = vmul.f32 %v4838_v23, %v1143_v22  ;;  %v1146_v38 = vmul.f32 0.5, %v4840_v29  ;;  %v5999_v21 = vld [vmem:[#allocation2 + $0xc4] ss:$16 sps:$4 sm:$0xff]   ;;  %v6018_v23 = vld [vmem:[#allocation2 + $0xac] ss:$16 sps:$4 sm:$0xff]  }
 0x1f7   :  { %v6012_v22 = vld [vmem:[#allocation2 + $0xa4] ss:$16 sps:$4 sm:$0xff]   ;;  %v6027_v29 = vld [vmem:[#allocation2 + $0xa8] ss:$16 sps:$4 sm:$0xff]  }
 0x1f8   :  { %v1148_v33 = vmul.f32 0.0, %v1145_v26  ;;  %v1147_v20 = vadd.f32 0.5, %v1146_v38  ;;  %v6015_v26 = vld [vmem:[#allocation2 + $0xc8] ss:$16 sps:$4 sm:$0xff]   ;;  %8597 = vst [vmem:[#allocation101_spill] sm:$0xff] %v6027_v29 }
 0x1f9   :  { %v6030_v38 = vld [vmem:[#allocation2 + $0x8c] ss:$16 sps:$4 sm:$0xff]  }
 0x1fa   :  { %v5992_v30 = vadd.f32 %v1149_v25, %v1148_v33  ;;  %v6021_v33 = vld [vmem:[#allocation2 + $0xa0] ss:$16 sps:$4 sm:$0xff]   ;;  %v6024_v25 = vld [vmem:[#allocation2 + $0x84] ss:$16 sps:$4 sm:$0xff]   ;;  %8598 = vst [vmem:[#allocation102_spill] sm:$0xff] %v6030_v38 }
 0x1fb   :  { %8596 = vst [vmem:[#allocation100_spill] sm:$0xff] %v6024_v25 }
 0x1fc   :  { %4841 = vtanh.f32 %v5992_v30 }
 0x209   :  { %v4842_v49 = vpop.eup %4841 }
 0x20a   :  { %v1152_v39 = vmul.f32 %v4842_v49, %v1147_v20  ;;  %v6033_v20 = vld [vmem:[#allocation2 + $0x80] ss:$16 sps:$4 sm:$0xff]   ;;  %v6036_v49 = vld [vmem:[#allocation2 + $0x64] ss:$16 sps:$4 sm:$0xff]  }
 0x20b   :  { %8599 = vst [vmem:[#allocation103_spill] sm:$0xff] %v6033_v20  ;;  %8600 = vst [vmem:[#allocation104_spill] sm:$0xff] %v6036_v49 }
 0x20c   :  { %4146 = vmatmul.mubr.f32.vlgmr.msra.gmra.mxu0 %v1152_v39  ;;  %v1226_v24 = vrot.slane %v1152_v39, 1 }
 0x20d   :  { %1302 = vmatpush1.bf16.msra.mxu0 %v5995_v18  ;;  %1333 = vmatprep.mubr.bf16.mxu0 %v8595_v36 }
 0x20e   :  { %4181 = vmatmul.mubr.f32.vlgmr.msra.gmra.mxu1 %v1226_v24  ;;  %1303 = vmatprep.subr.bf16.mxu0 %v5999_v21  ;;  %v6039_v24 = vld [vmem:[#allocation2 + $0x88] ss:$16 sps:$4 sm:$0xff]  }
 0x20f   :  { %1343 = vmatpush1.bf16.msra.mxu1 %v6002_v44  ;;  %1374 = vmatprep.mubr.bf16.mxu1 %v8595_v36  ;;  %8601 = vst [vmem:[#allocation105_spill] sm:$0xff] %v6039_v24 }
 0x210   :  { %1344 = vmatprep.subr.bf16.mxu1 %v6006_v31 }
 0x211   :  { %1304 = vmatpush1.bf16.msra.mxu0 %v6009_v0 }
 0x212   :  { %1305 = vmatprep.subr.bf16.mxu0 %v6012_v22 }
 0x213   :  { %1345 = vmatpush1.bf16.msra.mxu1 %v6015_v26 }
 0x214   :  { %1346 = vmatprep.subr.bf16.mxu1 %v6018_v23 }
 0x215   :  { %1306 = vmatpush1.bf16.msra.mxu0 %v6021_v33 }
 0x216   :  { %1307 = vmatprep.subr.bf16.mxu0 %v6024_v25  ;;  %v6042_v25 = vld [vmem:[#allocation2 + $0x6c] ss:$16 sps:$4 sm:$0xff]  }
 0x217   :  { %1347 = vmatpush1.bf16.msra.mxu1 %v6027_v29  ;;  %8602 = vst [vmem:[#allocation106_spill] sm:$0xff] %v6042_v25  ;;  %v6045_v29 = vld [vmem:[#allocation2 + $0x60] ss:$16 sps:$4 sm:$0xff]  }
 0x218   :  { %1348 = vmatprep.subr.bf16.mxu1 %v6030_v38  ;;  %v6048_v38 = vld [vmem:[#allocation2 + $0x44] ss:$16 sps:$4 sm:$0xff]  }
 0x219   :  { %1308 = vmatpush1.bf16.msra.mxu0 %v6033_v20  ;;  %v6051_v20 = vld [vmem:[#allocation2 + $0x68] ss:$16 sps:$4 sm:$0xff]  }
 0x21a   :  { %1309 = vmatprep.subr.bf16.mxu0 %v6036_v49  ;;  %v6054_v49 = vld [vmem:[#allocation2 + $0x4c] ss:$16 sps:$4 sm:$0xff]  }
 0x21b   :  { %1349 = vmatpush1.bf16.msra.mxu1 %v6039_v24  ;;  %v6057_v24 = vld [vmem:[#allocation2 + $0x40] ss:$16 sps:$4 sm:$0xff]  }
 0x21c   :  { %1350 = vmatprep.subr.bf16.mxu1 %v6042_v25  ;;  %v6061_v25 = vld [vmem:[#allocation2 + $0x48] ss:$16 sps:$4 sm:$0xff]  }
 0x21d   :  { %1310 = vmatpush1.bf16.msra.mxu0 %v6045_v29 }
 0x21e   :  { %1311 = vmatprep.subr.bf16.mxu0 %v6048_v38 }
 0x21f   :  { %1351 = vmatpush1.bf16.msra.mxu1 %v6051_v20 }
 0x220   :  { %1352 = vmatprep.subr.bf16.mxu1 %v6054_v49 }
 0x221   :  { %1312 = vmatpush1.bf16.msra.mxu0 %v6057_v24 }
 0x222   :  { %1313 = vmatprep.subr.bf16.mxu0 %v5390_v40  ;;  %v1153_v40 = vpack.c.bf16 %v1152_v39, %v1152_v39 }
 0x223   :  { %1353 = vmatpush1.bf16.msra.mxu1 %v6061_v25 }
 0x224   :  { %1354 = vmatprep.subr.bf16.mxu1 %v5392_v41  ;;  %v8603_v41 = vld [vmem:[#allocation6_spill] sm:$0xff] }
 0x225   :  { %1314 = vmatpush1.bf16.msra.mxu0 %v5394_v42  ;;  %v8604_v42 = vld [vmem:[#allocation5_spill] sm:$0xff] }
 0x226   :  { %1315 = vmatprep.subr.bf16.mxu0 %v5403_v45  ;;  %v8606_v45 = vld [vmem:[#allocation8_spill] sm:$0xff] }
 0x227   :  { %1355 = vmatpush1.bf16.msra.mxu1 %v5396_v43  ;;  %v8605_v43 = vld [vmem:[#allocation7_spill] sm:$0xff] }
 0x228   :  { %1356 = vmatprep.subr.bf16.mxu1 %v5405_v46  ;;  %v8607_v46 = vld [vmem:[#allocation10_spill] sm:$0xff] }
 0x229   :  { %1316 = vmatpush1.bf16.msra.mxu0 %v5409_v47  ;;  %v8608_v47 = vld [vmem:[#allocation9_spill] sm:$0xff] }
 0x22a   :  { %1403 = vmatprep.subr.bf16.mxu0 %v5431_v50  ;;  %v8610_v50 = vld [vmem:[#allocation12_spill] sm:$0xff] }
 0x22b   :  { %1357 = vmatpush1.bf16.msra.mxu1 %v5411_v48  ;;  %v8609_v48 = vld [vmem:[#allocation11_spill] sm:$0xff] }
 0x22c   :  { %1334 = vmatmul.mubr.bf16.vlgmr.msra.gmra.mxu0 %v5733_v34  ;;  %1444 = vmatprep.subr.bf16.mxu1 %v5433_v51  ;;  %v8611_v51 = vld [vmem:[#allocation14_spill] sm:$0xff] }
 0x22d   :  { %1435 = vmatprep.mubr.bf16.mxu0 %v1153_v40  ;;  %1404 = vmatpush1.bf16.msra.mxu0 %v5435_v52  ;;  %v8612_v52 = vld [vmem:[#allocation13_spill] sm:$0xff] }
 0x22e   :  { %1375 = vmatmul.mubr.bf16.vlgmr.msra.gmra.mxu1 %v5733_v34  ;;  %1405 = vmatprep.subr.bf16.mxu0 %v5443_v54  ;;  %v8614_v54 = vld [vmem:[#allocation16_spill] sm:$0xff] }
 0x22f   :  { %1476 = vmatprep.mubr.bf16.mxu1 %v1153_v40  ;;  %1445 = vmatpush1.bf16.msra.mxu1 %v5437_v53  ;;  %v8613_v53 = vld [vmem:[#allocation15_spill] sm:$0xff] }
 0x230   :  { %1446 = vmatprep.subr.bf16.mxu1 %v5445_v55  ;;  %v8615_v55 = vld [vmem:[#allocation18_spill] sm:$0xff] }
 0x231   :  { %1406 = vmatpush1.bf16.msra.mxu0 %v5447_v56  ;;  %v8616_v56 = vld [vmem:[#allocation17_spill] sm:$0xff] }
 0x232   :  { %1407 = vmatprep.subr.bf16.mxu0 %v5455_v58  ;;  %v8618_v58 = vld [vmem:[#allocation20_spill] sm:$0xff] }
 0x233   :  { %1447 = vmatpush1.bf16.msra.mxu1 %v5449_v57  ;;  %v8617_v57 = vld [vmem:[#allocation19_spill] sm:$0xff] }
 0x234   :  { %1448 = vmatprep.subr.bf16.mxu1 %v5457_v59  ;;  %v8619_v59 = vld [vmem:[#allocation22_spill] sm:$0xff] }
 0x235   :  { %1408 = vmatpush1.bf16.msra.mxu0 %v5459_v60  ;;  %v8620_v60 = vld [vmem:[#allocation21_spill] sm:$0xff] }
 0x236   :  { %1409 = vmatprep.subr.bf16.mxu0 %v5467_v62  ;;  %v8622_v62 = vld [vmem:[#allocation24_spill] sm:$0xff] }
 0x237   :  { %1449 = vmatpush1.bf16.msra.mxu1 %v5461_v61  ;;  %v8621_v61 = vld [vmem:[#allocation23_spill] sm:$0xff] }
 0x238   :  { %1450 = vmatprep.subr.bf16.mxu1 %v5469_v63  ;;  %v8623_v63 = vld [vmem:[#allocation26_spill] sm:$0xff] }
 0x239   :  { %1410 = vmatpush1.bf16.msra.mxu0 %v5471_v1  ;;  %v8624_v1 = vld [vmem:[#allocation25_spill] sm:$0xff] }
 0x23a   :  { %1411 = vmatprep.subr.bf16.mxu0 %v5479_v3  ;;  %v8626_v3 = vld [vmem:[#allocation28_spill] sm:$0xff] }
 0x23b   :  { %1451 = vmatpush1.bf16.msra.mxu1 %v5473_v2  ;;  %v8625_v2 = vld [vmem:[#allocation27_spill] sm:$0xff] }
 0x23c   :  { %1452 = vmatprep.subr.bf16.mxu1 %v5481_v4  ;;  %v8627_v4 = vld [vmem:[#allocation30_spill] sm:$0xff] }
 0x23d   :  { %1412 = vmatpush1.bf16.msra.mxu0 %v5483_v5  ;;  %v8628_v5 = vld [vmem:[#allocation29_spill] sm:$0xff] }
 0x23e   :  { %1413 = vmatprep.subr.bf16.mxu0 %v5491_v7  ;;  %v8630_v7 = vld [vmem:[#allocation32_spill] sm:$0xff] }
 0x23f   :  { %1453 = vmatpush1.bf16.msra.mxu1 %v5485_v6  ;;  %v8629_v6 = vld [vmem:[#allocation31_spill] sm:$0xff] }
 0x240   :  { %1454 = vmatprep.subr.bf16.mxu1 %v5493_v8  ;;  %v8631_v8 = vld [vmem:[#allocation34_spill] sm:$0xff] }
 0x241   :  { %1414 = vmatpush1.bf16.msra.mxu0 %v5495_v9  ;;  %v8632_v9 = vld [vmem:[#allocation33_spill] sm:$0xff] }
 0x242   :  { %1415 = vmatprep.subr.bf16.mxu0 %v5503_v11  ;;  %v8634_v11 = vld [vmem:[#allocation36_spill] sm:$0xff] }
 0x243   :  { %1455 = vmatpush1.bf16.msra.mxu1 %v5497_v10  ;;  %v8633_v10 = vld [vmem:[#allocation35_spill] sm:$0xff] }
 0x244   :  { %1456 = vmatprep.subr.bf16.mxu1 %v5505_v12  ;;  %v8635_v12 = vld [vmem:[#allocation37_spill] sm:$0xff] }
 0x245   :  { %1416 = vmatpush1.bf16.msra.mxu0 %v5507_v13  ;;  %v6142_v13 = vld [vmem:[%s8033_s3 + $0x100] sm:$0x1] }
 0x246   :  { %1417 = vmatprep.subr.bf16.mxu0 %v5515_v15  ;;  %8636 = vst [vmem:[#allocation6_spill] sm:$0xff] %v6142_v13 }
 0x247   :  { %1457 = vmatpush1.bf16.msra.mxu1 %v5509_v14 }
 0x248   :  { %1458 = vmatprep.subr.bf16.mxu1 %v5517_v16 }
 0x249   :  { %1418 = vmatpush1.bf16.msra.mxu0 %v5519_v17 }
 0x24a   :  { %1419 = vmatprep.subr.bf16.mxu0 %v8603_v41  ;;  %v8637_v41 = vld [vmem:[#allocation38_spill] sm:$0xff] }
 0x24b   :  { %1459 = vmatpush1.bf16.msra.mxu1 %v8604_v42 }
 0x24c   :  { %1460 = vmatprep.subr.bf16.mxu1 %v8605_v43 }
 0x24d   :  { %1420 = vmatpush2.bf16.msra.mxu0 %v8606_v45 }
 0x24e   :  { %1421 = vmatprep.subr.bf16.mxu0 %v8607_v46  ;;  %v8638_v46 = vld [vmem:[#allocation40_spill] sm:$0xff] }
 0x24f   :  { %1461 = vmatpush2.bf16.msra.mxu1 %v8608_v47 }
 0x250   :  { %1462 = vmatprep.subr.bf16.mxu1 %v8609_v48  ;;  %v8639_v48 = vld [vmem:[#allocation39_spill] sm:$0xff] }
 0x251   :  { %1422 = vmatpush2.bf16.msra.mxu0 %v8610_v50 }
 0x252   :  { %1423 = vmatprep.subr.bf16.mxu0 %v8611_v51 }
 0x253   :  { %1463 = vmatpush2.bf16.msra.mxu1 %v8612_v52 }
 0x254   :  { %1464 = vmatprep.subr.bf16.mxu1 %v8613_v53 }
 0x255   :  { %1424 = vmatpush2.bf16.msra.mxu0 %v8614_v54 }
 0x256   :  { %1425 = vmatprep.subr.bf16.mxu0 %v8615_v55 }
 0x257   :  { %1465 = vmatpush2.bf16.msra.mxu1 %v8616_v56  ;;  %v8640_v56 = vld [vmem:[#allocation41_spill] sm:$0xff] }
 0x258   :  { %1466 = vmatprep.subr.bf16.mxu1 %v8617_v57 }
 0x259   :  { %1426 = vmatpush2.bf16.msra.mxu0 %v8618_v58 }
 0x25a   :  { %1427 = vmatprep.subr.bf16.mxu0 %v8619_v59 }
 0x25b   :  { %1467 = vmatpush2.bf16.msra.mxu1 %v8620_v60 }
 0x25c   :  { %1468 = vmatprep.subr.bf16.mxu1 %v8621_v61 }
 0x25d   :  { %1428 = vmatpush2.bf16.msra.mxu0 %v8622_v62 }
 0x25e   :  { %1429 = vmatprep.subr.bf16.mxu0 %v8623_v63 }
 0x25f   :  { %1469 = vmatpush2.bf16.msra.mxu1 %v8624_v1 }
 0x260   :  { %1470 = vmatprep.subr.bf16.mxu1 %v8625_v2 }
 0x261   :  { %1430 = vmatpush2.bf16.msra.mxu0 %v8626_v3 }
 0x262   :  { %1431 = vmatprep.subr.bf16.mxu0 %v8627_v4 }
 0x263   :  { %1471 = vmatpush2.bf16.msra.mxu1 %v8628_v5 }
 0x264   :  { %1472 = vmatprep.subr.bf16.mxu1 %v8629_v6 }
 0x265   :  { %1432 = vmatpush2.bf16.msra.mxu0 %v8630_v7 }
 0x266   :  { %1433 = vmatprep.subr.bf16.mxu0 %v8631_v8 }
 0x267   :  { %1473 = vmatpush2.bf16.msra.mxu1 %v8632_v9 }
 0x268   :  { %1474 = vmatprep.subr.bf16.mxu1 %v8633_v10 }
 0x269   :  { %1434 = vmatpush2.bf16.msra.mxu0 %v8634_v11  ;;  %v8641_v11 = vld [vmem:[#allocation67_spill] sm:$0xff] }
 0x26a   :  { %4183 = vmatprep.subr.mxu0 %v8528_v37 }
 0x26b   :  { %1475 = vmatpush2.bf16.msra.mxu1 %v8635_v12  ;;  %v8643_v12 = vld [vmem:[#allocation69_spill] sm:$0xff] }
 0x26c   :  { %4218 = vmatprep.subr.mxu1 %v8528_v37 }
 0x2cc   :  { %v1220_v14 = vpop.f32.mrf.mxu0 }
 0x2cd   :  { %v1224_v15 = vadd.f32 %v1220_v14, %v6142_v13  ;;  %v8644_v14 = vld [vmem:[#allocation68_spill] sm:$0xff] }
 0x2ce   :  { %v4147_v16 = vpop.f32.mrf.mxu0  ;;  %v1294_v17 = vpop.f32.mrf.mxu1 }
 0x2cf   :  { %v1298_v34 = vadd.f32 %v1294_v17, %v1224_v15  ;;  %v8645_v15 = vld [vmem:[#allocation71_spill] sm:$0xff]  ;;  %v8647_v16 = vld [vmem:[#allocation73_spill] sm:$0xff]  ;;  %v8648_v17 = vld [vmem:[#allocation72_spill] sm:$0xff] }
 0x2d0   :  { %v4182_v39 = vpop.f32.mrf.mxu1 }
 0x2d1   :  { %1300 = vst.msk [vmem:[%s8034_s4] sm:$0x1] %vm1299_vm2, %v1298_v34  ;;  %v8649_v34 = vld [vmem:[#allocation75_spill] sm:$0xff]  ;;  %v8650_v39 = vld [vmem:[#allocation74_spill] sm:$0xff] }
 0x2ec   :  { %v1335_v40 = vpop.f32.mrf.mxu0 }
 0x2ed   :  { %v1383_v42 = vadd.f32 %v1335_v40, %v8637_v41  ;;  %v8651_v40 = vld [vmem:[#allocation77_spill] sm:$0xff]  ;;  %v8652_v41 = vld [vmem:[#allocation76_spill] sm:$0xff] }
 0x2ee   :  { %v1337_v43 = vpop.f32.mrf.mxu0  ;;  %v1376_v45 = vpop.f32.mrf.mxu1 }
 0x2ef   :  { %4843 = vtanh.f32 %v1383_v42  ;;  %v1384_v47 = vadd.f32 %v1337_v43, %v8638_v46  ;;  %v1385_v50 = vadd.f32 %v1376_v45, %v8639_v48  ;;  %v8653_v42 = vld [vmem:[#allocation79_spill] sm:$0xff]  ;;  %v8654_v43 = vld [vmem:[#allocation78_spill] sm:$0xff]  ;;  %v8655_v45 = vld [vmem:[#allocation81_spill] sm:$0xff] }
 0x2f0   :  { %v1339_v51 = vpop.f32.mrf.mxu0  ;;  %v1378_v52 = vpop.f32.mrf.mxu1  ;;  %v8656_v46 = vld [vmem:[#allocation80_spill] sm:$0xff]  ;;  %v8658_v48 = vld [vmem:[#allocation82_spill] sm:$0xff] }
 0x2f1   :  { %4845 = vtanh.f32 %v1384_v47  ;;  %v1386_v57 = vadd.f32 %v1378_v52, %v8640_v56  ;;  %v8657_v47 = vld [vmem:[#allocation83_spill] sm:$0xff]  ;;  %v8660_v51 = vld [vmem:[#allocation84_spill] sm:$0xff] }
 0x2f2   :  { %v1340_v53 = vpop.f32.mrf.mxu0  ;;  %v1380_v54 = vpop.f32.mrf.mxu1  ;;  %4847 = vtanh.f32 %v1385_v50  ;;  %v8659_v50 = vld [vmem:[#allocation85_spill] sm:$0xff]  ;;  %v8661_v52 = vld [vmem:[#allocation87_spill] sm:$0xff] }
 0x2f3   :  { %4849 = vtanh.f32 %v1386_v57  ;;  %v8662_v53 = vld [vmem:[#allocation86_spill] sm:$0xff]  ;;  %v8663_v54 = vld [vmem:[#allocation89_spill] sm:$0xff]  ;;  %v8665_v56 = vld [vmem:[#allocation91_spill] sm:$0xff] }
 0x2f4   :  { %v1381_v55 = vpop.f32.mrf.mxu1  ;;  %v8666_v57 = vld [vmem:[#allocation90_spill] sm:$0xff] }
 0x2f5   :  { %v8664_v55 = vld [vmem:[#allocation88_spill] sm:$0xff] }
 0x2fc   :  { %v4844_v58 = vpop.eup %4843 }
 0x2fd   :  { %v1391_v59 = vmul.f32 0.5, %v4844_v58  ;;  %v8667_v58 = vld [vmem:[#allocation93_spill] sm:$0xff] }
 0x2fe   :  { %v4846_v60 = vpop.eup %4845 }
 0x2ff   :  { %v1392_v61 = vadd.f32 0.5, %v1391_v59  ;;  %v1393_v62 = vmul.f32 0.5, %v4846_v60  ;;  %v4848_v63 = vpop.eup %4847  ;;  %v8668_v59 = vld [vmem:[#allocation92_spill] sm:$0xff]  ;;  %v8669_v60 = vld [vmem:[#allocation95_spill] sm:$0xff] }
 0x300   :  { %v4850_v5 = vpop.eup %4849 }
 0x301   :  { %v1394_v1 = vadd.f32 0.5, %v1393_v62  ;;  %v1398_v2 = vmul.f32 %v4848_v63, %v1392_v61  ;;  %v1395_v6 = vmul.f32 0.5, %v4850_v5  ;;  %v8670_v61 = vld [vmem:[#allocation94_spill] sm:$0xff]  ;;  %v8671_v62 = vld [vmem:[#allocation97_spill] sm:$0xff]  ;;  %v8672_v63 = vld [vmem:[#allocation96_spill] sm:$0xff] }
 0x302   :  { %v8674_v5 = vld [vmem:[#allocation99_spill] sm:$0xff] }
 0x303   :  { %v1397_v3 = vmul.f32 %v1394_v1, %v5730_v35  ;;  %v1396_v7 = vadd.f32 0.5, %v1395_v6  ;;  %v8642_v35 = vld [vmem:[#allocation66_spill] sm:$0xff] }
 0x304   :  { %v8673_v1 = vld [vmem:[#allocation98_spill] sm:$0xff] }
 0x305   :  { %v6154_v4 = vadd.f32 %v1398_v2, %v1397_v3 }
 0x307   :  { %4851 = vtanh.f32 %v6154_v4 }
 0x314   :  { %v4852_v8 = vpop.eup %4851 }
 0x315   :  { %v1401_v9 = vmul.f32 %v4852_v8, %v1396_v7 }
 0x317   :  { %v6157_v10 = vpack.c.bf16 %v1401_v9, %v1401_v9 }
 0x319   :  { %1436 = vmatmul.mubr.bf16.vlgmr.msra.gmra.mxu0 %v6157_v10  ;;  %1477 = vmatmul.mubr.bf16.vlgmr.msra.gmra.mxu1 %v6157_v10 }
 0x31a   :  { %4184 = vmatpush3.msra.mxu0 %v5740_v19  ;;  %4219 = vmatpush3.msra.mxu1 %v8641_v11  ;;  %v8646_v19 = vld [vmem:[#allocation70_spill] sm:$0xff] }
 0x31b   :  { %4185 = vmatprep.subr.mxu0 %v8528_v37  ;;  %4220 = vmatprep.subr.mxu1 %v8528_v37 }
 0x31c   :  { %4186 = vmatpush3.msra.mxu0 %v8642_v35  ;;  %4221 = vmatpush3.msra.mxu1 %v8643_v12 }
 0x31d   :  { %4187 = vmatprep.subr.mxu0 %v8528_v37  ;;  %4222 = vmatprep.subr.mxu1 %v8528_v37 }
 0x31e   :  { %4188 = vmatpush3.msra.mxu0 %v8644_v14  ;;  %4223 = vmatpush3.msra.mxu1 %v8645_v15 }
 0x31f   :  { %4189 = vmatprep.subr.mxu0 %v8528_v37  ;;  %4224 = vmatprep.subr.mxu1 %v8528_v37 }
 0x320   :  { %4190 = vmatpush3.msra.mxu0 %v8646_v19  ;;  %4225 = vmatpush3.msra.mxu1 %v8647_v16 }
 0x321   :  { %4191 = vmatprep.subr.mxu0 %v8528_v37  ;;  %4226 = vmatprep.subr.mxu1 %v8528_v37 }
 0x322   :  { %4192 = vmatpush3.msra.mxu0 %v8648_v17  ;;  %4227 = vmatpush3.msra.mxu1 %v8649_v34 }
 0x323   :  { %4193 = vmatprep.subr.mxu0 %v8528_v37  ;;  %4228 = vmatprep.subr.mxu1 %v8528_v37 }
 0x324   :  { %4194 = vmatpush3.msra.mxu0 %v8650_v39  ;;  %4229 = vmatpush3.msra.mxu1 %v8651_v40 }
 0x325   :  { %4195 = vmatprep.subr.mxu0 %v8528_v37  ;;  %4230 = vmatprep.subr.mxu1 %v8528_v37 }
 0x326   :  { %4196 = vmatpush3.msra.mxu0 %v8652_v41  ;;  %4231 = vmatpush3.msra.mxu1 %v8653_v42 }
 0x327   :  { %4197 = vmatprep.subr.mxu0 %v8528_v37  ;;  %4232 = vmatprep.subr.mxu1 %v8528_v37 }
 0x328   :  { %4198 = vmatpush3.msra.mxu0 %v8654_v43  ;;  %4233 = vmatpush3.msra.mxu1 %v8655_v45 }
 0x329   :  { %4199 = vmatprep.subr.mxu0 %v8528_v37  ;;  %4234 = vmatprep.subr.mxu1 %v8528_v37 }
 0x32a   :  { %4200 = vmatpush3.msra.mxu0 %v8656_v46  ;;  %4235 = vmatpush3.msra.mxu1 %v8657_v47 }
 0x32b   :  { %4201 = vmatprep.subr.mxu0 %v8528_v37  ;;  %4236 = vmatprep.subr.mxu1 %v8528_v37 }
 0x32c   :  { %4202 = vmatpush3.msra.mxu0 %v8658_v48  ;;  %4237 = vmatpush3.msra.mxu1 %v8659_v50 }
 0x32d   :  { %4203 = vmatprep.subr.mxu0 %v8528_v37  ;;  %4238 = vmatprep.subr.mxu1 %v8528_v37 }
 0x32e   :  { %4204 = vmatpush3.msra.mxu0 %v8660_v51  ;;  %4239 = vmatpush3.msra.mxu1 %v8661_v52 }
 0x32f   :  { %4205 = vmatprep.subr.mxu0 %v8528_v37  ;;  %4240 = vmatprep.subr.mxu1 %v8528_v37 }
 0x330   :  { %4206 = vmatpush3.msra.mxu0 %v8662_v53  ;;  %4241 = vmatpush3.msra.mxu1 %v8663_v54 }
 0x331   :  { %4207 = vmatprep.subr.mxu0 %v8528_v37  ;;  %4242 = vmatprep.subr.mxu1 %v8528_v37 }
 0x332   :  { %4208 = vmatpush3.msra.mxu0 %v8664_v55  ;;  %4243 = vmatpush3.msra.mxu1 %v8665_v56 }
 0x333   :  { %4209 = vmatprep.subr.mxu0 %v8528_v37  ;;  %4244 = vmatprep.subr.mxu1 %v8528_v37 }
 0x334   :  { %4210 = vmatpush3.msra.mxu0 %v8666_v57  ;;  %4245 = vmatpush3.msra.mxu1 %v8667_v58 }
 0x335   :  { %4211 = vmatprep.subr.mxu0 %v8528_v37  ;;  %4246 = vmatprep.subr.mxu1 %v8528_v37 }
 0x336   :  { %4212 = vmatpush3.msra.mxu0 %v8668_v59  ;;  %4247 = vmatpush3.msra.mxu1 %v8669_v60 }
 0x337   :  { %4213 = vmatprep.subr.mxu0 %v8528_v37  ;;  %4215 = vmatprep.mubr.msk.f32.mxu0 %vm5292_vm1, %v8528_v37 }
 0x338   :  { %4214 = vmatpush3.msra.mxu0 %v8670_v61  ;;  %4248 = vmatprep.subr.mxu1 %v8528_v37 }
 0x339   :  { %1647 = vmatprep.subr.bf16.mxu0 %v8671_v62  ;;  %4249 = vmatpush3.msra.mxu1 %v8672_v63 }
 0x33a   :  { %4250 = vmatprep.mubr.msk.f32.mxu1 %vm5292_vm1, %v8528_v37  ;;  %1688 = vmatprep.subr.bf16.mxu1 %v8673_v1 }
 0x3d9   :  { %v1437_v2 = vpop.f32.mrf.mxu0  ;;  %v1478_v3 = vpop.f32.mrf.mxu1 }
 0x3da   :  { %v1438_v6 = vadd.f32 %v1437_v2, %v8674_v5  ;;  %v1479_v12 = vadd.f32 %v1478_v3, %v5983_v32 }
 0x3db   :  { %v1439_v7 = vpop.f32.mrf.mxu0  ;;  %v1480_v8 = vpop.f32.mrf.mxu1 }
 0x3dc   :  { %4853 = vtanh.f32 %v1438_v6  ;;  %v1440_v9 = vadd.f32 %v1439_v7, %v5978_v27  ;;  %v1481_v19 = vadd.f32 %v1480_v8, %v5989_v28  ;;  %v8676_v6 = vld [vmem:[#allocation101_spill] sm:$0xff]  ;;  %v8677_v7 = vld [vmem:[#allocation102_spill] sm:$0xff]  ;;  %v8678_v8 = vld [vmem:[#allocation103_spill] sm:$0xff] }
 0x3dd   :  { %v1441_v11 = vpop.f32.mrf.mxu0  ;;  %v1482_v35 = vpop.f32.mrf.mxu1 }
 0x3de   :  { %4855 = vtanh.f32 %v1440_v9  ;;  %v8679_v9 = vld [vmem:[#allocation104_spill] sm:$0xff]  ;;  %v8680_v11 = vld [vmem:[#allocation105_spill] sm:$0xff]  ;;  %v8681_v35 = vld [vmem:[#allocation106_spill] sm:$0xff] }
 0x3df   :  { %v1442_v14 = vpop.f32.mrf.mxu0  ;;  %v1483_v15 = vpop.f32.mrf.mxu1  ;;  %4857 = vtanh.f32 %v1479_v12  ;;  %v6260_v12 = vld [vmem:[#allocation2 + $0x24] ss:$16 sps:$4 sm:$0xff]  }
 0x3e0   :  { %4859 = vtanh.f32 %v1481_v19  ;;  %v6264_v14 = vld [vmem:[#allocation2 + $0x2c] ss:$16 sps:$4 sm:$0xff]   ;;  %v6267_v15 = vld [vmem:[#allocation2 + $0x20] ss:$16 sps:$4 sm:$0xff]   ;;  %v6270_v19 = vld [vmem:[#allocation2 + $0x4] ss:$16 sps:$4 sm:$0xff]  }
 0x3e1   :  { %8682 = vst [vmem:[#allocation5_spill] sm:$0xff] %v6264_v14  ;;  %8683 = vst [vmem:[#allocation7_spill] sm:$0xff] %v6267_v15 }
 0x3e2   :  { %8684 = vst [vmem:[#allocation8_spill] sm:$0xff] %v6270_v19 }
 0x3e9   :  { %v4854_v16 = vpop.eup %4853 }
 0x3ea   :  { %v1489_v17 = vmul.f32 0.5, %v4854_v16  ;;  %v6273_v16 = vld [vmem:[#allocation2 + $0x28] ss:$16 sps:$4 sm:$0xff]  }
 0x3eb   :  { %v4856_v34 = vpop.eup %4855  ;;  %8685 = vst [vmem:[#allocation10_spill] sm:$0xff] %v6273_v16 }
 0x3ec   :  { %v1490_v39 = vadd.f32 0.5, %v1489_v17  ;;  %v1491_v40 = vmul.f32 0.5, %v4856_v34  ;;  %v4858_v42 = vpop.eup %4857  ;;  %v6276_v17 = vld [vmem:[#allocation2 + $0xc] ss:$16 sps:$4 sm:$0xff]   ;;  %v6279_v34 = vld [vmem:[#allocation2] ss:$16 sps:$4 sm:$0xff]  }
 0x3ed   :  { %v4860_v47 = vpop.eup %4859  ;;  %8686 = vst [vmem:[#allocation9_spill] sm:$0xff] %v6276_v17  ;;  %8687 = vst [vmem:[#allocation11_spill] sm:$0xff] %v6279_v34 }
 0x3ee   :  { %v1492_v41 = vadd.f32 0.5, %v1491_v40  ;;  %v1496_v45 = vmul.f32 %v4858_v42, %v1490_v39  ;;  %v1493_v48 = vmul.f32 0.5, %v4860_v47  ;;  %v6282_v39 = vld [vmem:[#allocation2 + $0x1e4] ss:$16 sps:$4 sm:$0xff]   ;;  %v6285_v40 = vld [vmem:[#allocation2 + $0x8] ss:$16 sps:$4 sm:$0xff]  }
 0x3ef   :  { %8688 = vst [vmem:[#allocation12_spill] sm:$0xff] %v6282_v39  ;;  %8689 = vst [vmem:[#allocation14_spill] sm:$0xff] %v6285_v40  ;;  %v6289_v42 = vld [vmem:[#allocation2 + $0x1ec] ss:$16 sps:$4 sm:$0xff]   ;;  %v6299_v47 = vld [vmem:[#allocation2 + $0x1e8] ss:$16 sps:$4 sm:$0xff]  }
 0x3f0   :  { %v1495_v43 = vmul.f32 %v1492_v41, %v5992_v30  ;;  %v1494_v51 = vadd.f32 0.5, %v1493_v48  ;;  %v8675_v30 = vld [vmem:[#allocation100_spill] sm:$0xff]  ;;  %8690 = vst [vmem:[#allocation13_spill] sm:$0xff] %v6289_v42  ;;  %8693 = vst [vmem:[#allocation18_spill] sm:$0xff] %v6299_v47 }
 0x3f1   :  { %v6302_v48 = vld [vmem:[#allocation2 + $0x1cc] ss:$16 sps:$4 sm:$0xff]  }
 0x3f2   :  { %v6234_v46 = vadd.f32 %v1496_v45, %v1495_v43  ;;  %v6292_v43 = vld [vmem:[#allocation2 + $0x1e0] ss:$16 sps:$4 sm:$0xff]   ;;  %v6296_v45 = vld [vmem:[#allocation2 + $0x1c4] ss:$16 sps:$4 sm:$0xff]   ;;  %8694 = vst [vmem:[#allocation17_spill] sm:$0xff] %v6302_v48 }
 0x3f3   :  { %8691 = vst [vmem:[#allocation15_spill] sm:$0xff] %v6292_v43  ;;  %8692 = vst [vmem:[#allocation16_spill] sm:$0xff] %v6296_v45 }
 0x3f4   :  { %4861 = vtanh.f32 %v6234_v46 }
 0x401   :  { %v4862_v53 = vpop.eup %4861 }
 0x402   :  { %v1499_v2 = vmul.f32 %v4862_v53, %v1494_v51  ;;  %v6305_v51 = vld [vmem:[#allocation2 + $0x1c0] ss:$16 sps:$4 sm:$0xff]   ;;  %v6308_v53 = vld [vmem:[#allocation2 + $0x1a4] ss:$16 sps:$4 sm:$0xff]  }
 0x403   :  { %8695 = vst [vmem:[#allocation19_spill] sm:$0xff] %v6305_v51  ;;  %8696 = vst [vmem:[#allocation20_spill] sm:$0xff] %v6308_v53 }
 0x404   :  { %4216 = vmatmul.mubr.f32.vlgmr.msra.gmra.mxu0 %v1499_v2  ;;  %v1573_v3 = vrot.slane %v1499_v2, 1  ;;  %v1500_v41 = vpack.c.bf16 %v1499_v2, %v1499_v2  ;;  %v6314_v2 = vld [vmem:[#allocation2 + $0x1ac] ss:$16 sps:$4 sm:$0xff]  }
 0x405   :  { %1648 = vmatpush1.bf16.msra.mxu0 %v5995_v18  ;;  %1679 = vmatprep.mubr.bf16.mxu0 %v8595_v36  ;;  %8698 = vst [vmem:[#allocation21_spill] sm:$0xff] %v6314_v2 }
 0x406   :  { %4251 = vmatmul.mubr.f32.vlgmr.msra.gmra.mxu1 %v1573_v3  ;;  %1649 = vmatprep.subr.bf16.mxu0 %v5999_v21  ;;  %v6317_v3 = vld [vmem:[#allocation2 + $0x1a0] ss:$16 sps:$4 sm:$0xff]  }
 0x407   :  { %1689 = vmatpush1.bf16.msra.mxu1 %v6002_v44  ;;  %1720 = vmatprep.mubr.bf16.mxu1 %v8595_v36  ;;  %8699 = vst [vmem:[#allocation23_spill] sm:$0xff] %v6317_v3 }
 0x408   :  { %1690 = vmatprep.subr.bf16.mxu1 %v6006_v31 }
 0x409   :  { %1650 = vmatpush1.bf16.msra.mxu0 %v6009_v0 }
 0x40a   :  { %1651 = vmatprep.subr.bf16.mxu0 %v6012_v22 }
 0x40b   :  { %1691 = vmatpush1.bf16.msra.mxu1 %v6015_v26 }
 0x40c   :  { %1692 = vmatprep.subr.bf16.mxu1 %v6018_v23 }
 0x40d   :  { %1652 = vmatpush1.bf16.msra.mxu0 %v6021_v33 }
 0x40e   :  { %1653 = vmatprep.subr.bf16.mxu0 %v8675_v30 }
 0x40f   :  { %1693 = vmatpush1.bf16.msra.mxu1 %v8676_v6 }
 0x410   :  { %1694 = vmatprep.subr.bf16.mxu1 %v8677_v7 }
 0x411   :  { %1654 = vmatpush1.bf16.msra.mxu0 %v8678_v8 }
 0x412   :  { %1655 = vmatprep.subr.bf16.mxu0 %v8679_v9 }
 0x413   :  { %1695 = vmatpush1.bf16.msra.mxu1 %v8680_v11 }
 0x414   :  { %1696 = vmatprep.subr.bf16.mxu1 %v8681_v35 }
 0x415   :  { %1656 = vmatpush1.bf16.msra.mxu0 %v6045_v29 }
 0x416   :  { %1657 = vmatprep.subr.bf16.mxu0 %v6048_v38 }
 0x417   :  { %1697 = vmatpush1.bf16.msra.mxu1 %v6051_v20 }
 0x418   :  { %1698 = vmatprep.subr.bf16.mxu1 %v6054_v49 }
 0x419   :  { %1658 = vmatpush1.bf16.msra.mxu0 %v6057_v24 }
 0x41a   :  { %1659 = vmatprep.subr.bf16.mxu0 %v6260_v12 }
 0x41b   :  { %1699 = vmatpush1.bf16.msra.mxu1 %v6061_v25 }
 0x41c   :  { %1700 = vmatprep.subr.bf16.mxu1 %v6264_v14 }
 0x41d   :  { %1660 = vmatpush1.bf16.msra.mxu0 %v6267_v15 }
 0x41e   :  { %1661 = vmatprep.subr.bf16.mxu0 %v6270_v19 }
 0x41f   :  { %1701 = vmatpush1.bf16.msra.mxu1 %v6273_v16 }
 0x420   :  { %1702 = vmatprep.subr.bf16.mxu1 %v6276_v17 }
 0x421   :  { %1662 = vmatpush1.bf16.msra.mxu0 %v6279_v34  ;;  %v8755_v34 = vld [vmem:[#allocation43_spill] sm:$0xff] }
 0x422   :  { %1749 = vmatprep.subr.bf16.mxu0 %v6282_v39 }
 0x423   :  { %1703 = vmatpush1.bf16.msra.mxu1 %v6285_v40 }
 0x424   :  { %1680 = vmatmul.mubr.bf16.vlgmr.msra.gmra.mxu0 %v6157_v10  ;;  %1790 = vmatprep.subr.bf16.mxu1 %v6289_v42 }
 0x425   :  { %1781 = vmatprep.mubr.bf16.mxu0 %v1500_v41  ;;  %1750 = vmatpush1.bf16.msra.mxu0 %v6292_v43 }
 0x426   :  { %1721 = vmatmul.mubr.bf16.vlgmr.msra.gmra.mxu1 %v6157_v10  ;;  %1751 = vmatprep.subr.bf16.mxu0 %v6296_v45  ;;  %v6311_v10 = vld [vmem:[#allocation2 + $0x1c8] ss:$16 sps:$4 sm:$0xff]  }
 0x427   :  { %1822 = vmatprep.mubr.bf16.mxu1 %v1500_v41  ;;  %1791 = vmatpush1.bf16.msra.mxu1 %v6299_v47  ;;  %8697 = vst [vmem:[#allocation22_spill] sm:$0xff] %v6311_v10  ;;  %v6320_v41 = vld [vmem:[#allocation2 + $0x184] ss:$16 sps:$4 sm:$0xff]  }
 0x428   :  { %1792 = vmatprep.subr.bf16.mxu1 %v6302_v48  ;;  %8700 = vst [vmem:[#allocation24_spill] sm:$0xff] %v6320_v41 }
 0x429   :  { %1752 = vmatpush1.bf16.msra.mxu0 %v6305_v51  ;;  %v6323_v51 = vld [vmem:[#allocation2 + $0x1a8] ss:$16 sps:$4 sm:$0xff]  }
 0x42a   :  { %1753 = vmatprep.subr.bf16.mxu0 %v6308_v53  ;;  %8701 = vst [vmem:[#allocation26_spill] sm:$0xff] %v6323_v51  ;;  %v6326_v53 = vld [vmem:[#allocation2 + $0x18c] ss:$16 sps:$4 sm:$0xff]  }
 0x42b   :  { %1793 = vmatpush1.bf16.msra.mxu1 %v6311_v10  ;;  %8702 = vst [vmem:[#allocation25_spill] sm:$0xff] %v6326_v53  ;;  %v6329_v10 = vld [vmem:[#allocation2 + $0x180] ss:$16 sps:$4 sm:$0xff]  }
 0x42c   :  { %1794 = vmatprep.subr.bf16.mxu1 %v6314_v2  ;;  %8703 = vst [vmem:[#allocation27_spill] sm:$0xff] %v6329_v10  ;;  %v6332_v2 = vld [vmem:[#allocation2 + $0x164] ss:$16 sps:$4 sm:$0xff]  }
 0x42d   :  { %1754 = vmatpush1.bf16.msra.mxu0 %v6317_v3  ;;  %8704 = vst [vmem:[#allocation28_spill] sm:$0xff] %v6332_v2  ;;  %v6335_v3 = vld [vmem:[#allocation2 + $0x188] ss:$16 sps:$4 sm:$0xff]  }
 0x42e   :  { %1755 = vmatprep.subr.bf16.mxu0 %v6320_v41  ;;  %8705 = vst [vmem:[#allocation30_spill] sm:$0xff] %v6335_v3  ;;  %v6338_v41 = vld [vmem:[#allocation2 + $0x16c] ss:$16 sps:$4 sm:$0xff]  }
 0x42f   :  { %1795 = vmatpush1.bf16.msra.mxu1 %v6323_v51  ;;  %8706 = vst [vmem:[#allocation29_spill] sm:$0xff] %v6338_v41  ;;  %v6341_v51 = vld [vmem:[#allocation2 + $0x160] ss:$16 sps:$4 sm:$0xff]  }
 0x430   :  { %1796 = vmatprep.subr.bf16.mxu1 %v6326_v53  ;;  %8707 = vst [vmem:[#allocation31_spill] sm:$0xff] %v6341_v51  ;;  %v6344_v53 = vld [vmem:[#allocation2 + $0x144] ss:$16 sps:$4 sm:$0xff]  }
 0x431   :  { %1756 = vmatpush1.bf16.msra.mxu0 %v6329_v10  ;;  %8708 = vst [vmem:[#allocation32_spill] sm:$0xff] %v6344_v53  ;;  %v6347_v10 = vld [vmem:[#allocation2 + $0x168] ss:$16 sps:$4 sm:$0xff]  }
 0x432   :  { %1757 = vmatprep.subr.bf16.mxu0 %v6332_v2  ;;  %8709 = vst [vmem:[#allocation34_spill] sm:$0xff] %v6347_v10  ;;  %v6350_v2 = vld [vmem:[#allocation2 + $0x14c] ss:$16 sps:$4 sm:$0xff]  }
 0x433   :  { %1797 = vmatpush1.bf16.msra.mxu1 %v6335_v3  ;;  %8710 = vst [vmem:[#allocation33_spill] sm:$0xff] %v6350_v2  ;;  %v6353_v3 = vld [vmem:[#allocation2 + $0x140] ss:$16 sps:$4 sm:$0xff]  }
 0x434   :  { %1798 = vmatprep.subr.bf16.mxu1 %v6338_v41  ;;  %8711 = vst [vmem:[#allocation35_spill] sm:$0xff] %v6353_v3  ;;  %v6356_v41 = vld [vmem:[#allocation2 + $0x124] ss:$16 sps:$4 sm:$0xff]  }
 0x435   :  { %1758 = vmatpush1.bf16.msra.mxu0 %v6341_v51  ;;  %8712 = vst [vmem:[#allocation36_spill] sm:$0xff] %v6356_v41  ;;  %v6359_v51 = vld [vmem:[#allocation2 + $0x148] ss:$16 sps:$4 sm:$0xff]  }
 0x436   :  { %1759 = vmatprep.subr.bf16.mxu0 %v6344_v53  ;;  %8713 = vst [vmem:[#allocation37_spill] sm:$0xff] %v6359_v51  ;;  %v6362_v53 = vld [vmem:[#allocation2 + $0x12c] ss:$16 sps:$4 sm:$0xff]  }
 0x437   :  { %1799 = vmatpush1.bf16.msra.mxu1 %v6347_v10  ;;  %8714 = vst [vmem:[#allocation38_spill] sm:$0xff] %v6362_v53  ;;  %v6365_v10 = vld [vmem:[#allocation2 + $0x120] ss:$16 sps:$4 sm:$0xff]  }
 0x438   :  { %1800 = vmatprep.subr.bf16.mxu1 %v6350_v2  ;;  %8715 = vst [vmem:[#allocation40_spill] sm:$0xff] %v6365_v10  ;;  %v6368_v2 = vld [vmem:[#allocation2 + $0x104] ss:$16 sps:$4 sm:$0xff]  }
 0x439   :  { %1760 = vmatpush1.bf16.msra.mxu0 %v6353_v3  ;;  %8716 = vst [vmem:[#allocation39_spill] sm:$0xff] %v6368_v2  ;;  %v6371_v3 = vld [vmem:[#allocation2 + $0x128] ss:$16 sps:$4 sm:$0xff]  }
 0x43a   :  { %1761 = vmatprep.subr.bf16.mxu0 %v6356_v41  ;;  %8717 = vst [vmem:[#allocation41_spill] sm:$0xff] %v6371_v3  ;;  %v6374_v41 = vld [vmem:[#allocation2 + $0x10c] ss:$16 sps:$4 sm:$0xff]  }
 0x43b   :  { %1801 = vmatpush1.bf16.msra.mxu1 %v6359_v51  ;;  %8718 = vst [vmem:[#allocation67_spill] sm:$0xff] %v6374_v41  ;;  %v6377_v51 = vld [vmem:[#allocation2 + $0x100] ss:$16 sps:$4 sm:$0xff]  }
 0x43c   :  { %1802 = vmatprep.subr.bf16.mxu1 %v6362_v53  ;;  %8719 = vst [vmem:[#allocation66_spill] sm:$0xff] %v6377_v51  ;;  %v6380_v53 = vld [vmem:[#allocation2 + $0x2e4] ss:$16 sps:$4 sm:$0xff]  }
 0x43d   :  { %1762 = vmatpush1.bf16.msra.mxu0 %v6365_v10  ;;  %8720 = vst [vmem:[#allocation69_spill] sm:$0xff] %v6380_v53  ;;  %v6383_v10 = vld [vmem:[#allocation2 + $0x108] ss:$16 sps:$4 sm:$0xff]  }
 0x43e   :  { %1763 = vmatprep.subr.bf16.mxu0 %v6368_v2  ;;  %8721 = vst [vmem:[#allocation68_spill] sm:$0xff] %v6383_v10  ;;  %v6386_v2 = vld [vmem:[#allocation2 + $0x2ec] ss:$16 sps:$4 sm:$0xff]  }
 0x43f   :  { %1803 = vmatpush1.bf16.msra.mxu1 %v6371_v3  ;;  %8722 = vst [vmem:[#allocation71_spill] sm:$0xff] %v6386_v2  ;;  %v6389_v3 = vld [vmem:[#allocation2 + $0x2e0] ss:$16 sps:$4 sm:$0xff]  }
 0x440   :  { %1804 = vmatprep.subr.bf16.mxu1 %v6374_v41  ;;  %8723 = vst [vmem:[#allocation70_spill] sm:$0xff] %v6389_v3  ;;  %v6392_v41 = vld [vmem:[#allocation2 + $0x2c4] ss:$16 sps:$4 sm:$0xff]  }
 0x441   :  { %1764 = vmatpush1.bf16.msra.mxu0 %v6377_v51  ;;  %8724 = vst [vmem:[#allocation73_spill] sm:$0xff] %v6392_v41  ;;  %v6395_v51 = vld [vmem:[#allocation2 + $0x2e8] ss:$16 sps:$4 sm:$0xff]  }
 0x442   :  { %1765 = vmatprep.subr.bf16.mxu0 %v6380_v53  ;;  %8725 = vst [vmem:[#allocation72_spill] sm:$0xff] %v6395_v51  ;;  %v6398_v53 = vld [vmem:[#allocation2 + $0x2cc] ss:$16 sps:$4 sm:$0xff]  }
 0x443   :  { %1805 = vmatpush1.bf16.msra.mxu1 %v6383_v10  ;;  %8726 = vst [vmem:[#allocation75_spill] sm:$0xff] %v6398_v53  ;;  %v6401_v10 = vld [vmem:[#allocation2 + $0x2c0] ss:$16 sps:$4 sm:$0xff]  }
 0x444   :  { %1806 = vmatprep.subr.bf16.mxu1 %v6386_v2  ;;  %8727 = vst [vmem:[#allocation74_spill] sm:$0xff] %v6401_v10  ;;  %v6404_v2 = vld [vmem:[#allocation2 + $0x2a4] ss:$16 sps:$4 sm:$0xff]  }
 0x445   :  { %1766 = vmatpush2.bf16.msra.mxu0 %v6389_v3  ;;  %8728 = vst [vmem:[#allocation77_spill] sm:$0xff] %v6404_v2  ;;  %v6407_v3 = vld [vmem:[#allocation2 + $0x2c8] ss:$16 sps:$4 sm:$0xff]  }
 0x446   :  { %1767 = vmatprep.subr.bf16.mxu0 %v6392_v41  ;;  %8729 = vst [vmem:[#allocation76_spill] sm:$0xff] %v6407_v3  ;;  %v6410_v41 = vld [vmem:[#allocation2 + $0x2ac] ss:$16 sps:$4 sm:$0xff]  }
 0x447   :  { %1807 = vmatpush2.bf16.msra.mxu1 %v6395_v51  ;;  %8730 = vst [vmem:[#allocation79_spill] sm:$0xff] %v6410_v41  ;;  %v6413_v51 = vld [vmem:[#allocation2 + $0x2a0] ss:$16 sps:$4 sm:$0xff]  }
 0x448   :  { %1808 = vmatprep.subr.bf16.mxu1 %v6398_v53  ;;  %8731 = vst [vmem:[#allocation78_spill] sm:$0xff] %v6413_v51  ;;  %v6416_v53 = vld [vmem:[#allocation2 + $0x284] ss:$16 sps:$4 sm:$0xff]  }
 0x449   :  { %1768 = vmatpush2.bf16.msra.mxu0 %v6401_v10  ;;  %8732 = vst [vmem:[#allocation81_spill] sm:$0xff] %v6416_v53  ;;  %v6419_v10 = vld [vmem:[#allocation2 + $0x2a8] ss:$16 sps:$4 sm:$0xff]  }
 0x44a   :  { %1769 = vmatprep.subr.bf16.mxu0 %v6404_v2  ;;  %8733 = vst [vmem:[#allocation80_spill] sm:$0xff] %v6419_v10  ;;  %v6422_v2 = vld [vmem:[#allocation2 + $0x28c] ss:$16 sps:$4 sm:$0xff]  }
 0x44b   :  { %1809 = vmatpush2.bf16.msra.mxu1 %v6407_v3  ;;  %8734 = vst [vmem:[#allocation83_spill] sm:$0xff] %v6422_v2  ;;  %v6425_v3 = vld [vmem:[#allocation2 + $0x280] ss:$16 sps:$4 sm:$0xff]  }
 0x44c   :  { %1810 = vmatprep.subr.bf16.mxu1 %v6410_v41  ;;  %8735 = vst [vmem:[#allocation82_spill] sm:$0xff] %v6425_v3  ;;  %v6428_v41 = vld [vmem:[#allocation2 + $0x264] ss:$16 sps:$4 sm:$0xff]  }
 0x44d   :  { %1770 = vmatpush2.bf16.msra.mxu0 %v6413_v51  ;;  %8736 = vst [vmem:[#allocation85_spill] sm:$0xff] %v6428_v41  ;;  %v6431_v51 = vld [vmem:[#allocation2 + $0x288] ss:$16 sps:$4 sm:$0xff]  }
 0x44e   :  { %1771 = vmatprep.subr.bf16.mxu0 %v6416_v53  ;;  %8737 = vst [vmem:[#allocation84_spill] sm:$0xff] %v6431_v51  ;;  %v6434_v53 = vld [vmem:[#allocation2 + $0x26c] ss:$16 sps:$4 sm:$0xff]  }
 0x44f   :  { %1811 = vmatpush2.bf16.msra.mxu1 %v6419_v10  ;;  %8738 = vst [vmem:[#allocation87_spill] sm:$0xff] %v6434_v53  ;;  %v6437_v10 = vld [vmem:[#allocation2 + $0x260] ss:$16 sps:$4 sm:$0xff]  }
 0x450   :  { %1812 = vmatprep.subr.bf16.mxu1 %v6422_v2  ;;  %8739 = vst [vmem:[#allocation86_spill] sm:$0xff] %v6437_v10  ;;  %v6440_v2 = vld [vmem:[#allocation2 + $0x244] ss:$16 sps:$4 sm:$0xff]  }
 0x451   :  { %1772 = vmatpush2.bf16.msra.mxu0 %v6425_v3  ;;  %8740 = vst [vmem:[#allocation89_spill] sm:$0xff] %v6440_v2  ;;  %v6443_v3 = vld [vmem:[#allocation2 + $0x268] ss:$16 sps:$4 sm:$0xff]  }
 0x452   :  { %1773 = vmatprep.subr.bf16.mxu0 %v6428_v41  ;;  %8741 = vst [vmem:[#allocation88_spill] sm:$0xff] %v6443_v3  ;;  %v6446_v41 = vld [vmem:[#allocation2 + $0x24c] ss:$16 sps:$4 sm:$0xff]  }
 0x453   :  { %1813 = vmatpush2.bf16.msra.mxu1 %v6431_v51  ;;  %8742 = vst [vmem:[#allocation91_spill] sm:$0xff] %v6446_v41  ;;  %v6449_v51 = vld [vmem:[#allocation2 + $0x240] ss:$16 sps:$4 sm:$0xff]  }
 0x454   :  { %1814 = vmatprep.subr.bf16.mxu1 %v6434_v53  ;;  %8743 = vst [vmem:[#allocation90_spill] sm:$0xff] %v6449_v51  ;;  %v6452_v53 = vld [vmem:[#allocation2 + $0x224] ss:$16 sps:$4 sm:$0xff]  }
 0x455   :  { %1774 = vmatpush2.bf16.msra.mxu0 %v6437_v10  ;;  %8744 = vst [vmem:[#allocation93_spill] sm:$0xff] %v6452_v53  ;;  %v6455_v10 = vld [vmem:[#allocation2 + $0x248] ss:$16 sps:$4 sm:$0xff]  }
 0x456   :  { %1775 = vmatprep.subr.bf16.mxu0 %v6440_v2  ;;  %8745 = vst [vmem:[#allocation92_spill] sm:$0xff] %v6455_v10  ;;  %v6458_v2 = vld [vmem:[#allocation2 + $0x22c] ss:$16 sps:$4 sm:$0xff]  }
 0x457   :  { %1815 = vmatpush2.bf16.msra.mxu1 %v6443_v3  ;;  %8746 = vst [vmem:[#allocation95_spill] sm:$0xff] %v6458_v2  ;;  %v6461_v3 = vld [vmem:[#allocation2 + $0x220] ss:$16 sps:$4 sm:$0xff]  }
 0x458   :  { %1816 = vmatprep.subr.bf16.mxu1 %v6446_v41  ;;  %8747 = vst [vmem:[#allocation94_spill] sm:$0xff] %v6461_v3  ;;  %v6464_v41 = vld [vmem:[#allocation2 + $0x204] ss:$16 sps:$4 sm:$0xff]  }
 0x459   :  { %1776 = vmatpush2.bf16.msra.mxu0 %v6449_v51  ;;  %8748 = vst [vmem:[#allocation97_spill] sm:$0xff] %v6464_v41  ;;  %v6467_v51 = vld [vmem:[#allocation2 + $0x228] ss:$16 sps:$4 sm:$0xff]  }
 0x45a   :  { %1777 = vmatprep.subr.bf16.mxu0 %v6452_v53  ;;  %8749 = vst [vmem:[#allocation96_spill] sm:$0xff] %v6467_v51  ;;  %v6470_v53 = vld [vmem:[#allocation2 + $0x20c] ss:$16 sps:$4 sm:$0xff]  }
 0x45b   :  { %1817 = vmatpush2.bf16.msra.mxu1 %v6455_v10  ;;  %8750 = vst [vmem:[#allocation98_spill] sm:$0xff] %v6470_v53  ;;  %v6473_v10 = vld [vmem:[#allocation2 + $0x200] ss:$16 sps:$4 sm:$0xff]  }
 0x45c   :  { %1818 = vmatprep.subr.bf16.mxu1 %v6458_v2  ;;  %8751 = vst [vmem:[#allocation100_spill] sm:$0xff] %v6473_v10  ;;  %v6477_v2 = vld [vmem:[#allocation2 + $0x208] ss:$16 sps:$4 sm:$0xff]  }
 0x45d   :  { %1778 = vmatpush2.bf16.msra.mxu0 %v6461_v3  ;;  %8752 = vst [vmem:[#allocation101_spill] sm:$0xff] %v6477_v2 }
 0x45e   :  { %1779 = vmatprep.subr.bf16.mxu0 %v6464_v41 }
 0x45f   :  { %1819 = vmatpush2.bf16.msra.mxu1 %v6467_v51 }
 0x460   :  { %1820 = vmatprep.subr.bf16.mxu1 %v6470_v53  ;;  %v8753_v53 = vld [vmem:[#allocation42_spill] sm:$0xff] }
 0x461   :  { %1780 = vmatpush2.bf16.msra.mxu0 %v6473_v10 }
 0x462   :  { %4253 = vmatprep.subr.mxu0 %v8528_v37 }
 0x463   :  { %1821 = vmatpush2.bf16.msra.mxu1 %v6477_v2  ;;  %v8754_v2 = vld [vmem:[#allocation44_spill] sm:$0xff] }
 0x464   :  { %4288 = vmatprep.subr.mxu1 %v8528_v37 }
 0x4c4   :  { %v1567_v41 = vpop.f32.mrf.mxu0 }
 0x4c5   :  { %v1571_v3 = vadd.f32 %v1567_v41, %v6142_v13  ;;  %v8756_v13 = vld [vmem:[#allocation45_spill] sm:$0xff] }
 0x4c6   :  { %v4217_v51 = vpop.f32.mrf.mxu0  ;;  %v1641_v48 = vpop.f32.mrf.mxu1 }
 0x4c7   :  { %v1645_v47 = vadd.f32 %v1641_v48, %v1571_v3 }
 0x4c8   :  { %v4252_v45 = vpop.f32.mrf.mxu1 }
 0x4c9   :  { %1646 = vst.msk [vmem:[%s8034_s4 + $0x1] sm:$0x1] %vm1299_vm2, %v1645_v47 }
 0x4e4   :  { %v1681_v10 = vpop.f32.mrf.mxu0 }
 0x4e5   :  { %v1729_v43 = vadd.f32 %v1681_v10, %v8753_v53 }
 0x4e6   :  { %v1683_v42 = vpop.f32.mrf.mxu0  ;;  %v1722_v40 = vpop.f32.mrf.mxu1 }
 0x4e7   :  { %4863 = vtanh.f32 %v1729_v43  ;;  %v1730_v39 = vadd.f32 %v1683_v42, %v8754_v2  ;;  %v1731_v17 = vadd.f32 %v1722_v40, %v8755_v34 }
 0x4e8   :  { %v1685_v41 = vpop.f32.mrf.mxu0  ;;  %v1724_v51 = vpop.f32.mrf.mxu1 }
 0x4e9   :  { %4865 = vtanh.f32 %v1730_v39  ;;  %v1732_v16 = vadd.f32 %v1724_v51, %v8756_v13 }
 0x4ea   :  { %v1686_v48 = vpop.f32.mrf.mxu0  ;;  %v1726_v45 = vpop.f32.mrf.mxu1  ;;  %4867 = vtanh.f32 %v1731_v17 }
 0x4eb   :  { %4869 = vtanh.f32 %v1732_v16  ;;  %v6529_v16 = vld [vmem:[%s8033_s3 + $0x68] sm:$0xff]  ;;  %v6543_v45 = vld [vmem:[%s8033_s3 + $0x60] sm:$0xff] }
 0x4ec   :  { %v1727_v3 = vpop.f32.mrf.mxu1  ;;  %v6535_v48 = vld [vmem:[%s8033_s3 + $0xe8] sm:$0xff] }
 0x4ed   :  { %v6549_v3 = vld [vmem:[%s8033_s3 + $0xe0] sm:$0xff] }
 0x4f4   :  { %v4864_v47 = vpop.eup %4863 }
 0x4f5   :  { %v1737_v19 = vmul.f32 0.5, %v4864_v47  ;;  %v6557_v47 = vld [vmem:[%s8033_s3 + $0x58] sm:$0xff] }
 0x4f6   :  { %v4866_v15 = vpop.eup %4865 }
 0x4f7   :  { %v1738_v53 = vadd.f32 0.5, %v1737_v19  ;;  %v1739_v10 = vmul.f32 0.5, %v4866_v15  ;;  %v4868_v43 = vpop.eup %4867  ;;  %v6501_v15 = vld [vmem:[%s8033_s3 + $0x78] sm:$0xff]  ;;  %v6521_v19 = vld [vmem:[%s8033_s3 + $0xf0] sm:$0xff] }
 0x4f8   :  { %v4870_v39 = vpop.eup %4869 }
 0x4f9   :  { %v1740_v14 = vadd.f32 0.5, %v1739_v10  ;;  %v1744_v42 = vmul.f32 %v4868_v43, %v1738_v53  ;;  %v1741_v17 = vmul.f32 0.5, %v4870_v39  ;;  %v6563_v53 = vld [vmem:[%s8033_s3 + $0xd8] sm:$0xff]  ;;  %v6571_v10 = vld [vmem:[%s8033_s3 + $0x50] sm:$0xff]  ;;  %v6599_v39 = vld [vmem:[%s8033_s3 + $0x40] sm:$0xff] }
 0x4fa   :  { %v6577_v43 = vld [vmem:[%s8033_s3 + $0xd0] sm:$0xff] }
 0x4fb   :  { %v1743_v34 = vmul.f32 %v1740_v14, %v6154_v4  ;;  %v1742_v2 = vadd.f32 0.5, %v1741_v17  ;;  %v6507_v4 = vld [vmem:[%s8033_s3 + $0xf8] sm:$0xff]  ;;  %v6515_v14 = vld [vmem:[%s8033_s3 + $0x70] sm:$0xff]  ;;  %v6605_v17 = vld [vmem:[%s8033_s3 + $0xc0] sm:$0xff] }
 0x4fd   :  { %v6491_v40 = vadd.f32 %v1744_v42, %v1743_v34  ;;  %v6585_v42 = vld [vmem:[%s8033_s3 + $0x48] sm:$0xff] }
 0x4fe   :  { %v6591_v34 = vld [vmem:[%s8033_s3 + $0xc8] sm:$0xff] }
 0x4ff   :  { %4871 = vtanh.f32 %v6491_v40 }
 0x50c   :  { %v4872_v41 = vpop.eup %4871 }
 0x50d   :  { %v1747_v13 = vmul.f32 %v4872_v41, %v1742_v2  ;;  %v6613_v2 = vld [vmem:[%s8033_s3 + $0x38] sm:$0xff] }
 0x50e   :  { %8757 = vst [vmem:[#allocation102_spill] sm:$0xff] %v6613_v2  ;;  %v6619_v41 = vld [vmem:[%s8033_s3 + $0xb8] sm:$0xff] }
 0x50f   :  { %v6494_v51 = vpack.c.bf16 %v1747_v13, %v1747_v13  ;;  %8758 = vst [vmem:[#allocation103_spill] sm:$0xff] %v6619_v41  ;;  %v6627_v13 = vld [vmem:[%s8033_s3 + $0x30] sm:$0xff] }
 0x510   :  { %8759 = vst [vmem:[#allocation104_spill] sm:$0xff] %v6627_v13 }
 0x511   :  { %1782 = vmatmul.mubr.bf16.vlgmr.msra.gmra.mxu0 %v6494_v51  ;;  %1823 = vmatmul.mubr.bf16.vlgmr.msra.gmra.mxu1 %v6494_v51 }
 0x512   :  { %4254 = vmatpush3.msra.mxu0 %v6501_v15  ;;  %4289 = vmatpush3.msra.mxu1 %v6507_v4 }
 0x513   :  { %4255 = vmatprep.subr.mxu0 %v8528_v37  ;;  %4290 = vmatprep.subr.mxu1 %v8528_v37 }
 0x514   :  { %4256 = vmatpush3.msra.mxu0 %v6515_v14  ;;  %4291 = vmatpush3.msra.mxu1 %v6521_v19 }
 0x515   :  { %4257 = vmatprep.subr.mxu0 %v8528_v37  ;;  %4292 = vmatprep.subr.mxu1 %v8528_v37 }
 0x516   :  { %4258 = vmatpush3.msra.mxu0 %v6529_v16  ;;  %4293 = vmatpush3.msra.mxu1 %v6535_v48 }
 0x517   :  { %4259 = vmatprep.subr.mxu0 %v8528_v37  ;;  %4294 = vmatprep.subr.mxu1 %v8528_v37 }
 0x518   :  { %4260 = vmatpush3.msra.mxu0 %v6543_v45  ;;  %4295 = vmatpush3.msra.mxu1 %v6549_v3 }
 0x519   :  { %4261 = vmatprep.subr.mxu0 %v8528_v37  ;;  %4296 = vmatprep.subr.mxu1 %v8528_v37 }
 0x51a   :  { %4262 = vmatpush3.msra.mxu0 %v6557_v47  ;;  %4297 = vmatpush3.msra.mxu1 %v6563_v53 }
 0x51b   :  { %4263 = vmatprep.subr.mxu0 %v8528_v37  ;;  %4298 = vmatprep.subr.mxu1 %v8528_v37 }
 0x51c   :  { %4264 = vmatpush3.msra.mxu0 %v6571_v10  ;;  %4299 = vmatpush3.msra.mxu1 %v6577_v43 }
 0x51d   :  { %4265 = vmatprep.subr.mxu0 %v8528_v37  ;;  %4300 = vmatprep.subr.mxu1 %v8528_v37 }
 0x51e   :  { %4266 = vmatpush3.msra.mxu0 %v6585_v42  ;;  %4301 = vmatpush3.msra.mxu1 %v6591_v34 }
 0x51f   :  { %4267 = vmatprep.subr.mxu0 %v8528_v37  ;;  %4302 = vmatprep.subr.mxu1 %v8528_v37 }
 0x520   :  { %4268 = vmatpush3.msra.mxu0 %v6599_v39  ;;  %4303 = vmatpush3.msra.mxu1 %v6605_v17 }
 0x521   :  { %4269 = vmatprep.subr.mxu0 %v8528_v37  ;;  %4304 = vmatprep.subr.mxu1 %v8528_v37 }
 0x522   :  { %4270 = vmatpush3.msra.mxu0 %v6613_v2  ;;  %4305 = vmatpush3.msra.mxu1 %v6619_v41  ;;  %v6636_v41 = vld [vmem:[%s8033_s3 + $0x28] sm:$0xff] }
 0x523   :  { %4271 = vmatprep.subr.mxu0 %v8528_v37  ;;  %4306 = vmatprep.subr.mxu1 %v8528_v37  ;;  %8760 = vst [vmem:[#allocation105_spill] sm:$0xff] %v6636_v41 }
 0x524   :  { %4272 = vmatpush3.msra.mxu0 %v6627_v13  ;;  %4307 = vmatpush3.msra.mxu1 %v8659_v50  ;;  %v6645_v50 = vld [vmem:[%s8033_s3 + $0x20] sm:$0xff] }
 0x525   :  { %4273 = vmatprep.subr.mxu0 %v8528_v37  ;;  %4308 = vmatprep.subr.mxu1 %v8528_v37  ;;  %8761 = vst [vmem:[#allocation106_spill] sm:$0xff] %v6645_v50 }
 0x526   :  { %4274 = vmatpush3.msra.mxu0 %v6636_v41  ;;  %4309 = vmatpush3.msra.mxu1 %v8661_v52 }
 0x527   :  { %4275 = vmatprep.subr.mxu0 %v8528_v37  ;;  %4310 = vmatprep.subr.mxu1 %v8528_v37 }
 0x528   :  { %4276 = vmatpush3.msra.mxu0 %v6645_v50  ;;  %4311 = vmatpush3.msra.mxu1 %v8663_v54 }
 0x529   :  { %4277 = vmatprep.subr.mxu0 %v8528_v37  ;;  %4312 = vmatprep.subr.mxu1 %v8528_v37 }
 0x52a   :  { %4278 = vmatpush3.msra.mxu0 %v8664_v55  ;;  %4313 = vmatpush3.msra.mxu1 %v8665_v56 }
 0x52b   :  { %4279 = vmatprep.subr.mxu0 %v8528_v37  ;;  %4314 = vmatprep.subr.mxu1 %v8528_v37 }
 0x52c   :  { %4280 = vmatpush3.msra.mxu0 %v8666_v57  ;;  %4315 = vmatpush3.msra.mxu1 %v8667_v58 }
 0x52d   :  { %4281 = vmatprep.subr.mxu0 %v8528_v37  ;;  %4316 = vmatprep.subr.mxu1 %v8528_v37 }
 0x52e   :  { %4282 = vmatpush3.msra.mxu0 %v8668_v59  ;;  %4317 = vmatpush3.msra.mxu1 %v8669_v60 }
 0x52f   :  { %4283 = vmatprep.subr.mxu0 %v8528_v37  ;;  %4285 = vmatprep.mubr.msk.f32.mxu0 %vm5292_vm1, %v8528_v37 }
 0x530   :  { %4284 = vmatpush3.msra.mxu0 %v8670_v61  ;;  %4318 = vmatprep.subr.mxu1 %v8528_v37 }
 0x531   :  { %1993 = vmatprep.subr.bf16.mxu0 %v8671_v62  ;;  %4319 = vmatpush3.msra.mxu1 %v8672_v63 }
 0x532   :  { %4320 = vmatprep.mubr.msk.f32.mxu1 %vm5292_vm1, %v8528_v37  ;;  %2034 = vmatprep.subr.bf16.mxu1 %v8673_v1 }
 0x5d1   :  { %v1783_v52 = vpop.f32.mrf.mxu0  ;;  %v1824_v54 = vpop.f32.mrf.mxu1 }
 0x5d2   :  { %v1784_v55 = vadd.f32 %v1783_v52, %v8674_v5  ;;  %v1825_v61 = vadd.f32 %v1824_v54, %v5983_v32 }
 0x5d3   :  { %v1785_v56 = vpop.f32.mrf.mxu0  ;;  %v1826_v57 = vpop.f32.mrf.mxu1 }
 0x5d4   :  { %4873 = vtanh.f32 %v1784_v55  ;;  %v1786_v58 = vadd.f32 %v1785_v56, %v5978_v27  ;;  %v1827_v50 = vadd.f32 %v1826_v57, %v5989_v28 }
 0x5d5   :  { %v1787_v59 = vpop.f32.mrf.mxu0  ;;  %v1828_v60 = vpop.f32.mrf.mxu1 }
 0x5d6   :  { %4875 = vtanh.f32 %v1786_v58 }
 0x5d7   :  { %v1788_v62 = vpop.f32.mrf.mxu0  ;;  %v1829_v63 = vpop.f32.mrf.mxu1  ;;  %4877 = vtanh.f32 %v1825_v61 }
 0x5d8   :  { %4879 = vtanh.f32 %v1827_v50  ;;  %v8789_v50 = vld [vmem:[#allocation34_spill] sm:$0xff] }
 0x5e1   :  { %v4874_v1 = vpop.eup %4873 }
 0x5e2   :  { %v1835_v41 = vmul.f32 0.5, %v4874_v1  ;;  %v8790_v1 = vld [vmem:[#allocation33_spill] sm:$0xff] }
 0x5e3   :  { %v4876_v13 = vpop.eup %4875 }
 0x5e4   :  { %v1836_v2 = vadd.f32 0.5, %v1835_v41  ;;  %v1837_v52 = vmul.f32 0.5, %v4876_v13  ;;  %v4878_v55 = vpop.eup %4877  ;;  %v8787_v41 = vld [vmem:[#allocation31_spill] sm:$0xff]  ;;  %v8788_v13 = vld [vmem:[#allocation32_spill] sm:$0xff] }
 0x5e5   :  { %v4880_v54 = vpop.eup %4879 }
 0x5e6   :  { %v1838_v5 = vadd.f32 0.5, %v1837_v52  ;;  %v1842_v59 = vmul.f32 %v4878_v55, %v1836_v2  ;;  %v1839_v58 = vmul.f32 0.5, %v4880_v54  ;;  %v8786_v2 = vld [vmem:[#allocation29_spill] sm:$0xff]  ;;  %v8791_v52 = vld [vmem:[#allocation35_spill] sm:$0xff]  ;;  %v8792_v55 = vld [vmem:[#allocation36_spill] sm:$0xff] }
 0x5e7   :  { %v8795_v54 = vld [vmem:[#allocation40_spill] sm:$0xff] }
 0x5e8   :  { %v1841_v56 = vmul.f32 %v1838_v5, %v6234_v46  ;;  %v1840_v61 = vadd.f32 0.5, %v1839_v58  ;;  %v8776_v5 = vld [vmem:[#allocation20_spill] sm:$0xff]  ;;  %v8777_v46 = vld [vmem:[#allocation22_spill] sm:$0xff]  ;;  %v8796_v58 = vld [vmem:[#allocation39_spill] sm:$0xff] }
 0x5ea   :  { %v6676_v60 = vadd.f32 %v1842_v59, %v1841_v56  ;;  %v8793_v56 = vld [vmem:[#allocation37_spill] sm:$0xff]  ;;  %v8794_v59 = vld [vmem:[#allocation38_spill] sm:$0xff] }
 0x5ec   :  { %4881 = vtanh.f32 %v6676_v60 }
 0x5f9   :  { %v4882_v62 = vpop.eup %4881 }
 0x5fa   :  { %v1845_v57 = vmul.f32 %v4882_v62, %v1840_v61  ;;  %v8797_v61 = vld [vmem:[#allocation41_spill] sm:$0xff]  ;;  %v8798_v62 = vld [vmem:[#allocation67_spill] sm:$0xff] }
 0x5fc   :  { %4286 = vmatmul.mubr.f32.vlgmr.msra.gmra.mxu0 %v1845_v57  ;;  %v1919_v63 = vrot.slane %v1845_v57, 1 }
 0x5fd   :  { %1994 = vmatpush1.bf16.msra.mxu0 %v5995_v18  ;;  %2025 = vmatprep.mubr.bf16.mxu0 %v8595_v36  ;;  %v8762_v18 = vld [vmem:[#allocation5_spill] sm:$0xff] }
 0x5fe   :  { %4321 = vmatmul.mubr.f32.vlgmr.msra.gmra.mxu1 %v1919_v63  ;;  %1995 = vmatprep.subr.bf16.mxu0 %v5999_v21  ;;  %v8763_v21 = vld [vmem:[#allocation7_spill] sm:$0xff]  ;;  %v8800_v63 = vld [vmem:[#allocation69_spill] sm:$0xff] }
 0x5ff   :  { %2035 = vmatpush1.bf16.msra.mxu1 %v6002_v44  ;;  %2066 = vmatprep.mubr.bf16.mxu1 %v8595_v36  ;;  %v8764_v44 = vld [vmem:[#allocation8_spill] sm:$0xff] }
 0x600   :  { %2036 = vmatprep.subr.bf16.mxu1 %v6006_v31  ;;  %v8765_v31 = vld [vmem:[#allocation10_spill] sm:$0xff] }
 0x601   :  { %1996 = vmatpush1.bf16.msra.mxu0 %v6009_v0  ;;  %v8766_v0 = vld [vmem:[#allocation9_spill] sm:$0xff] }
 0x602   :  { %1997 = vmatprep.subr.bf16.mxu0 %v6012_v22  ;;  %v8767_v22 = vld [vmem:[#allocation11_spill] sm:$0xff] }
 0x603   :  { %2037 = vmatpush1.bf16.msra.mxu1 %v6015_v26  ;;  %v8768_v26 = vld [vmem:[#allocation12_spill] sm:$0xff] }
 0x604   :  { %2038 = vmatprep.subr.bf16.mxu1 %v6018_v23  ;;  %v8769_v23 = vld [vmem:[#allocation14_spill] sm:$0xff] }
 0x605   :  { %1998 = vmatpush1.bf16.msra.mxu0 %v6021_v33  ;;  %v1846_v33 = vpack.c.bf16 %v1845_v57, %v1845_v57  ;;  %v8799_v57 = vld [vmem:[#allocation66_spill] sm:$0xff] }
 0x606   :  { %1999 = vmatprep.subr.bf16.mxu0 %v8675_v30  ;;  %v8778_v30 = vld [vmem:[#allocation21_spill] sm:$0xff] }
 0x607   :  { %2039 = vmatpush1.bf16.msra.mxu1 %v8676_v6  ;;  %v8779_v6 = vld [vmem:[#allocation23_spill] sm:$0xff] }
 0x608   :  { %2040 = vmatprep.subr.bf16.mxu1 %v8677_v7  ;;  %v8780_v7 = vld [vmem:[#allocation24_spill] sm:$0xff] }
 0x609   :  { %2000 = vmatpush1.bf16.msra.mxu0 %v8678_v8  ;;  %v8781_v8 = vld [vmem:[#allocation26_spill] sm:$0xff] }
 0x60a   :  { %2001 = vmatprep.subr.bf16.mxu0 %v8679_v9  ;;  %v8782_v9 = vld [vmem:[#allocation25_spill] sm:$0xff] }
 0x60b   :  { %2041 = vmatpush1.bf16.msra.mxu1 %v8680_v11  ;;  %v8783_v11 = vld [vmem:[#allocation27_spill] sm:$0xff] }
 0x60c   :  { %2042 = vmatprep.subr.bf16.mxu1 %v8681_v35  ;;  %v8784_v35 = vld [vmem:[#allocation28_spill] sm:$0xff] }
 0x60d   :  { %2002 = vmatpush1.bf16.msra.mxu0 %v6045_v29  ;;  %v8771_v29 = vld [vmem:[#allocation15_spill] sm:$0xff] }
 0x60e   :  { %2003 = vmatprep.subr.bf16.mxu0 %v6048_v38  ;;  %v8772_v38 = vld [vmem:[#allocation16_spill] sm:$0xff] }
 0x60f   :  { %2043 = vmatpush1.bf16.msra.mxu1 %v6051_v20  ;;  %v8773_v20 = vld [vmem:[#allocation18_spill] sm:$0xff] }
 0x610   :  { %2044 = vmatprep.subr.bf16.mxu1 %v6054_v49  ;;  %v8774_v49 = vld [vmem:[#allocation17_spill] sm:$0xff] }
 0x611   :  { %2004 = vmatpush1.bf16.msra.mxu0 %v6057_v24  ;;  %v8775_v24 = vld [vmem:[#allocation19_spill] sm:$0xff] }
 0x612   :  { %2005 = vmatprep.subr.bf16.mxu0 %v6260_v12 }
 0x613   :  { %2045 = vmatpush1.bf16.msra.mxu1 %v6061_v25  ;;  %v8770_v25 = vld [vmem:[#allocation13_spill] sm:$0xff] }
 0x614   :  { %2046 = vmatprep.subr.bf16.mxu1 %v8762_v18 }
 0x615   :  { %2006 = vmatpush1.bf16.msra.mxu0 %v8763_v21 }
 0x616   :  { %2007 = vmatprep.subr.bf16.mxu0 %v8764_v44 }
 0x617   :  { %2047 = vmatpush1.bf16.msra.mxu1 %v8765_v31 }
 0x618   :  { %2048 = vmatprep.subr.bf16.mxu1 %v8766_v0 }
 0x619   :  { %2008 = vmatpush1.bf16.msra.mxu0 %v8767_v22 }
 0x61a   :  { %2095 = vmatprep.subr.bf16.mxu0 %v8768_v26 }
 0x61b   :  { %2049 = vmatpush1.bf16.msra.mxu1 %v8769_v23 }
 0x61c   :  { %2026 = vmatmul.mubr.bf16.vlgmr.msra.gmra.mxu0 %v6494_v51  ;;  %2136 = vmatprep.subr.bf16.mxu1 %v8770_v25 }
 0x61d   :  { %2127 = vmatprep.mubr.bf16.mxu0 %v1846_v33  ;;  %2096 = vmatpush1.bf16.msra.mxu0 %v8771_v29 }
 0x61e   :  { %2067 = vmatmul.mubr.bf16.vlgmr.msra.gmra.mxu1 %v6494_v51  ;;  %2097 = vmatprep.subr.bf16.mxu0 %v8772_v38  ;;  %v8785_v51 = vld [vmem:[#allocation30_spill] sm:$0xff] }
 0x61f   :  { %2168 = vmatprep.mubr.bf16.mxu1 %v1846_v33  ;;  %2137 = vmatpush1.bf16.msra.mxu1 %v8773_v20  ;;  %v8801_v33 = vld [vmem:[#allocation68_spill] sm:$0xff] }
 0x620   :  { %2138 = vmatprep.subr.bf16.mxu1 %v8774_v49 }
 0x621   :  { %2098 = vmatpush1.bf16.msra.mxu0 %v8775_v24 }
 0x622   :  { %2099 = vmatprep.subr.bf16.mxu0 %v8776_v5 }
 0x623   :  { %2139 = vmatpush1.bf16.msra.mxu1 %v8777_v46 }
 0x624   :  { %2140 = vmatprep.subr.bf16.mxu1 %v8778_v30 }
 0x625   :  { %2100 = vmatpush1.bf16.msra.mxu0 %v8779_v6 }
 0x626   :  { %2101 = vmatprep.subr.bf16.mxu0 %v8780_v7 }
 0x627   :  { %2141 = vmatpush1.bf16.msra.mxu1 %v8781_v8 }
 0x628   :  { %2142 = vmatprep.subr.bf16.mxu1 %v8782_v9 }
 0x629   :  { %2102 = vmatpush1.bf16.msra.mxu0 %v8783_v11 }
 0x62a   :  { %2103 = vmatprep.subr.bf16.mxu0 %v8784_v35 }
 0x62b   :  { %2143 = vmatpush1.bf16.msra.mxu1 %v8785_v51 }
 0x62c   :  { %2144 = vmatprep.subr.bf16.mxu1 %v8786_v2 }
 0x62d   :  { %2104 = vmatpush1.bf16.msra.mxu0 %v8787_v41  ;;  %v8836_v41 = vld [vmem:[#allocation47_spill] sm:$0xff] }
 0x62e   :  { %2105 = vmatprep.subr.bf16.mxu0 %v8788_v13 }
 0x62f   :  { %2145 = vmatpush1.bf16.msra.mxu1 %v8789_v50 }
 0x630   :  { %2146 = vmatprep.subr.bf16.mxu1 %v8790_v1 }
 0x631   :  { %2106 = vmatpush1.bf16.msra.mxu0 %v8791_v52  ;;  %v8802_v52 = vld [vmem:[#allocation71_spill] sm:$0xff] }
 0x632   :  { %2107 = vmatprep.subr.bf16.mxu0 %v8792_v55  ;;  %v8803_v55 = vld [vmem:[#allocation70_spill] sm:$0xff] }
 0x633   :  { %2147 = vmatpush1.bf16.msra.mxu1 %v8793_v56  ;;  %v8804_v56 = vld [vmem:[#allocation73_spill] sm:$0xff] }
 0x634   :  { %2148 = vmatprep.subr.bf16.mxu1 %v8794_v59  ;;  %v8805_v59 = vld [vmem:[#allocation72_spill] sm:$0xff] }
 0x635   :  { %2108 = vmatpush1.bf16.msra.mxu0 %v8795_v54  ;;  %v8806_v54 = vld [vmem:[#allocation75_spill] sm:$0xff] }
 0x636   :  { %2109 = vmatprep.subr.bf16.mxu0 %v8796_v58  ;;  %v8807_v58 = vld [vmem:[#allocation74_spill] sm:$0xff] }
 0x637   :  { %2149 = vmatpush1.bf16.msra.mxu1 %v8797_v61  ;;  %v8808_v61 = vld [vmem:[#allocation77_spill] sm:$0xff] }
 0x638   :  { %2150 = vmatprep.subr.bf16.mxu1 %v8798_v62  ;;  %v8809_v62 = vld [vmem:[#allocation76_spill] sm:$0xff] }
 0x639   :  { %2110 = vmatpush1.bf16.msra.mxu0 %v8799_v57  ;;  %v8810_v57 = vld [vmem:[#allocation79_spill] sm:$0xff] }
 0x63a   :  { %2111 = vmatprep.subr.bf16.mxu0 %v8800_v63  ;;  %v8811_v63 = vld [vmem:[#allocation78_spill] sm:$0xff] }
 0x63b   :  { %2151 = vmatpush1.bf16.msra.mxu1 %v8801_v33  ;;  %v8812_v33 = vld [vmem:[#allocation81_spill] sm:$0xff] }
 0x63c   :  { %2152 = vmatprep.subr.bf16.mxu1 %v8802_v52  ;;  %v8813_v52 = vld [vmem:[#allocation80_spill] sm:$0xff] }
 0x63d   :  { %2112 = vmatpush2.bf16.msra.mxu0 %v8803_v55  ;;  %v8814_v55 = vld [vmem:[#allocation83_spill] sm:$0xff] }
 0x63e   :  { %2113 = vmatprep.subr.bf16.mxu0 %v8804_v56  ;;  %v8815_v56 = vld [vmem:[#allocation82_spill] sm:$0xff] }
 0x63f   :  { %2153 = vmatpush2.bf16.msra.mxu1 %v8805_v59  ;;  %v8816_v59 = vld [vmem:[#allocation85_spill] sm:$0xff] }
 0x640   :  { %2154 = vmatprep.subr.bf16.mxu1 %v8806_v54  ;;  %v8817_v54 = vld [vmem:[#allocation84_spill] sm:$0xff] }
 0x641   :  { %2114 = vmatpush2.bf16.msra.mxu0 %v8807_v58  ;;  %v8818_v58 = vld [vmem:[#allocation87_spill] sm:$0xff] }
 0x642   :  { %2115 = vmatprep.subr.bf16.mxu0 %v8808_v61  ;;  %v8819_v61 = vld [vmem:[#allocation86_spill] sm:$0xff] }
 0x643   :  { %2155 = vmatpush2.bf16.msra.mxu1 %v8809_v62  ;;  %v8820_v62 = vld [vmem:[#allocation89_spill] sm:$0xff] }
 0x644   :  { %2156 = vmatprep.subr.bf16.mxu1 %v8810_v57  ;;  %v8821_v57 = vld [vmem:[#allocation88_spill] sm:$0xff] }
 0x645   :  { %2116 = vmatpush2.bf16.msra.mxu0 %v8811_v63  ;;  %v8822_v63 = vld [vmem:[#allocation91_spill] sm:$0xff] }
 0x646   :  { %2117 = vmatprep.subr.bf16.mxu0 %v8812_v33  ;;  %v8823_v33 = vld [vmem:[#allocation90_spill] sm:$0xff] }
 0x647   :  { %2157 = vmatpush2.bf16.msra.mxu1 %v8813_v52  ;;  %v8824_v52 = vld [vmem:[#allocation93_spill] sm:$0xff] }
 0x648   :  { %2158 = vmatprep.subr.bf16.mxu1 %v8814_v55  ;;  %v8825_v55 = vld [vmem:[#allocation92_spill] sm:$0xff] }
 0x649   :  { %2118 = vmatpush2.bf16.msra.mxu0 %v8815_v56  ;;  %v8826_v56 = vld [vmem:[#allocation95_spill] sm:$0xff] }
 0x64a   :  { %2119 = vmatprep.subr.bf16.mxu0 %v8816_v59  ;;  %v8827_v59 = vld [vmem:[#allocation94_spill] sm:$0xff] }
 0x64b   :  { %2159 = vmatpush2.bf16.msra.mxu1 %v8817_v54  ;;  %v8828_v54 = vld [vmem:[#allocation97_spill] sm:$0xff] }
 0x64c   :  { %2160 = vmatprep.subr.bf16.mxu1 %v8818_v58  ;;  %v8829_v58 = vld [vmem:[#allocation96_spill] sm:$0xff] }
 0x64d   :  { %2120 = vmatpush2.bf16.msra.mxu0 %v8819_v61  ;;  %v8830_v61 = vld [vmem:[#allocation98_spill] sm:$0xff] }
 0x64e   :  { %2121 = vmatprep.subr.bf16.mxu0 %v8820_v62  ;;  %v8831_v62 = vld [vmem:[#allocation100_spill] sm:$0xff] }
 0x64f   :  { %2161 = vmatpush2.bf16.msra.mxu1 %v8821_v57 }
 0x650   :  { %2162 = vmatprep.subr.bf16.mxu1 %v8822_v63  ;;  %v8832_v63 = vld [vmem:[#allocation101_spill] sm:$0xff] }
 0x651   :  { %2122 = vmatpush2.bf16.msra.mxu0 %v8823_v33 }
 0x652   :  { %2123 = vmatprep.subr.bf16.mxu0 %v8824_v52 }
 0x653   :  { %2163 = vmatpush2.bf16.msra.mxu1 %v8825_v55  ;;  %v8833_v55 = vld [vmem:[#allocation6_spill] sm:$0xff] }
 0x654   :  { %2164 = vmatprep.subr.bf16.mxu1 %v8826_v56 }
 0x655   :  { %2124 = vmatpush2.bf16.msra.mxu0 %v8827_v59 }
 0x656   :  { %2125 = vmatprep.subr.bf16.mxu0 %v8828_v54 }
 0x657   :  { %2165 = vmatpush2.bf16.msra.mxu1 %v8829_v58 }
 0x658   :  { %2166 = vmatprep.subr.bf16.mxu1 %v8830_v61 }
 0x659   :  { %2126 = vmatpush2.bf16.msra.mxu0 %v8831_v62  ;;  %v8834_v62 = vld [vmem:[#allocation46_spill] sm:$0xff] }
 0x65a   :  { %4323 = vmatprep.subr.mxu0 %v8528_v37 }
 0x65b   :  { %2167 = vmatpush2.bf16.msra.mxu1 %v8832_v63  ;;  %v8835_v63 = vld [vmem:[#allocation48_spill] sm:$0xff] }
 0x65c   :  { %4358 = vmatprep.subr.mxu1 %v8528_v37 }
 0x6bc   :  { %v1913_v52 = vpop.f32.mrf.mxu0 }
 0x6bd   :  { %v1917_v33 = vadd.f32 %v1913_v52, %v8833_v55 }
 0x6be   :  { %v4287_v56 = vpop.f32.mrf.mxu0  ;;  %v1987_v57 = vpop.f32.mrf.mxu1 }
 0x6bf   :  { %v1991_v59 = vadd.f32 %v1987_v57, %v1917_v33  ;;  %v8837_v33 = vld [vmem:[#allocation49_spill] sm:$0xff] }
 0x6c0   :  { %v4322_v1 = vpop.f32.mrf.mxu1 }
 0x6c1   :  { %1992 = vst.msk [vmem:[%s8034_s4 + $0x2] sm:$0x1] %vm1299_vm2, %v1991_v59 }
 0x6dc   :  { %v2027_v61 = vpop.f32.mrf.mxu0 }
 0x6dd   :  { %v2075_v58 = vadd.f32 %v2027_v61, %v8834_v62 }
 0x6de   :  { %v2029_v54 = vpop.f32.mrf.mxu0  ;;  %v2068_v50 = vpop.f32.mrf.mxu1 }
 0x6df   :  { %4883 = vtanh.f32 %v2075_v58  ;;  %v2076_v13 = vadd.f32 %v2029_v54, %v8835_v63  ;;  %v2077_v2 = vadd.f32 %v2068_v50, %v8836_v41 }
 0x6e0   :  { %v2031_v52 = vpop.f32.mrf.mxu0  ;;  %v2070_v55 = vpop.f32.mrf.mxu1 }
 0x6e1   :  { %4885 = vtanh.f32 %v2076_v13  ;;  %v2078_v51 = vadd.f32 %v2070_v55, %v8837_v33  ;;  %v6854_v33 = vld [vmem:[%s8033_s3 + $0xa0] sm:$0xff] }
 0x6e2   :  { %v2032_v56 = vpop.f32.mrf.mxu0  ;;  %v2072_v1 = vpop.f32.mrf.mxu1  ;;  %4887 = vtanh.f32 %v2077_v2  ;;  %8845 = vst [vmem:[#allocation43_spill] sm:$0xff] %v6854_v33 }
 0x6e3   :  { %4889 = vtanh.f32 %v2078_v51  ;;  %v8842_v51 = vld [vmem:[#allocation105_spill] sm:$0xff]  ;;  %v6845_v1 = vld [vmem:[%s8033_s3 + $0xa8] sm:$0xff] }
 0x6e4   :  { %v2073_v57 = vpop.f32.mrf.mxu1  ;;  %8843 = vst [vmem:[#allocation44_spill] sm:$0xff] %v6845_v1 }
 0x6e5   :  { %v8844_v57 = vld [vmem:[#allocation106_spill] sm:$0xff] }
 0x6ec   :  { %v4884_v59 = vpop.eup %4883 }
 0x6ed   :  { %v2083_v35 = vmul.f32 0.5, %v4884_v59  ;;  %v6862_v59 = vld [vmem:[%s8033_s3 + $0x18] sm:$0xff] }
 0x6ee   :  { %v4886_v11 = vpop.eup %4885  ;;  %8846 = vst [vmem:[#allocation45_spill] sm:$0xff] %v6862_v59 }
 0x6ef   :  { %v2084_v61 = vadd.f32 0.5, %v2083_v35  ;;  %v2085_v62 = vmul.f32 0.5, %v4886_v11  ;;  %v4888_v58 = vpop.eup %4887  ;;  %v8840_v11 = vld [vmem:[#allocation104_spill] sm:$0xff]  ;;  %v6836_v35 = vld [vmem:[%s8033_s3 + $0xb0] sm:$0xff] }
 0x6f0   :  { %v4890_v13 = vpop.eup %4889  ;;  %8841 = vst [vmem:[#allocation42_spill] sm:$0xff] %v6836_v35 }
 0x6f1   :  { %v2086_v9 = vadd.f32 0.5, %v2085_v62  ;;  %v2090_v54 = vmul.f32 %v4888_v58, %v2084_v61  ;;  %v2087_v2 = vmul.f32 0.5, %v4890_v13  ;;  %v6868_v61 = vld [vmem:[%s8033_s3 + $0x98] sm:$0xff]  ;;  %v6876_v62 = vld [vmem:[%s8033_s3 + $0x10] sm:$0xff]  ;;  %v6905_v13 = vld [vmem:[%s8033_s3] sm:$0xff] }
 0x6f2   :  { %8847 = vst [vmem:[#allocation5_spill] sm:$0xff] %v6868_v61  ;;  %8848 = vst [vmem:[#allocation7_spill] sm:$0xff] %v6876_v62  ;;  %v6882_v58 = vld [vmem:[%s8033_s3 + $0x90] sm:$0xff] }
 0x6f3   :  { %v2089_v41 = vmul.f32 %v2086_v9, %v6491_v40  ;;  %v2088_v63 = vadd.f32 0.5, %v2087_v2  ;;  %v8838_v40 = vld [vmem:[#allocation102_spill] sm:$0xff]  ;;  %v8839_v9 = vld [vmem:[#allocation103_spill] sm:$0xff]  ;;  %8849 = vst [vmem:[#allocation8_spill] sm:$0xff] %v6882_v58  ;;  %8852 = vst [vmem:[#allocation11_spill] sm:$0xff] %v6905_v13 }
 0x6f4   :  { %v6909_v2 = vld [vmem:[#allocation2 + $0xe4] ss:$16 sps:$4 sm:$0xff]  }
 0x6f5   :  { %v6789_v50 = vadd.f32 %v2090_v54, %v2089_v41  ;;  %v6890_v54 = vld [vmem:[%s8033_s3 + $0x8] sm:$0xff]  ;;  %8853 = vst [vmem:[#allocation12_spill] sm:$0xff] %v6909_v2 }
 0x6f6   :  { %8850 = vst [vmem:[#allocation10_spill] sm:$0xff] %v6890_v54  ;;  %v6896_v41 = vld [vmem:[%s8033_s3 + $0x88] sm:$0xff] }
 0x6f7   :  { %4891 = vtanh.f32 %v6789_v50  ;;  %8851 = vst [vmem:[#allocation9_spill] sm:$0xff] %v6896_v41 }
 0x704   :  { %v4892_v52 = vpop.eup %4891 }
 0x705   :  { %v2093_v55 = vmul.f32 %v4892_v52, %v2088_v63  ;;  %v6915_v63 = vld [vmem:[%s8033_s3 + $0x80] sm:$0xff]  ;;  %v6920_v52 = vld [vmem:[#allocation2 + $0xec] ss:$16 sps:$4 sm:$0xff]  }
 0x706   :  { %8854 = vst [vmem:[#allocation14_spill] sm:$0xff] %v6915_v63  ;;  %8855 = vst [vmem:[#allocation13_spill] sm:$0xff] %v6920_v52 }
 0x707   :  { %v6792_v56 = vpack.c.bf16 %v2093_v55, %v2093_v55 }
 0x709   :  { %2128 = vmatmul.mubr.bf16.vlgmr.msra.gmra.mxu0 %v6792_v56  ;;  %2169 = vmatmul.mubr.bf16.vlgmr.msra.gmra.mxu1 %v6792_v56 }
 0x70a   :  { %4324 = vmatpush3.msra.mxu0 %v6501_v15  ;;  %4359 = vmatpush3.msra.mxu1 %v6507_v4 }
 0x70b   :  { %4325 = vmatprep.subr.mxu0 %v8528_v37  ;;  %4360 = vmatprep.subr.mxu1 %v8528_v37 }
 0x70c   :  { %4326 = vmatpush3.msra.mxu0 %v6515_v14  ;;  %4361 = vmatpush3.msra.mxu1 %v6521_v19 }
 0x70d   :  { %4327 = vmatprep.subr.mxu0 %v8528_v37  ;;  %4362 = vmatprep.subr.mxu1 %v8528_v37 }
 0x70e   :  { %4328 = vmatpush3.msra.mxu0 %v6529_v16  ;;  %4363 = vmatpush3.msra.mxu1 %v6535_v48 }
 0x70f   :  { %4329 = vmatprep.subr.mxu0 %v8528_v37  ;;  %4364 = vmatprep.subr.mxu1 %v8528_v37 }
 0x710   :  { %4330 = vmatpush3.msra.mxu0 %v6543_v45  ;;  %4365 = vmatpush3.msra.mxu1 %v6549_v3 }
 0x711   :  { %4331 = vmatprep.subr.mxu0 %v8528_v37  ;;  %4366 = vmatprep.subr.mxu1 %v8528_v37 }
 0x712   :  { %4332 = vmatpush3.msra.mxu0 %v6557_v47  ;;  %4367 = vmatpush3.msra.mxu1 %v6563_v53 }
 0x713   :  { %4333 = vmatprep.subr.mxu0 %v8528_v37  ;;  %4368 = vmatprep.subr.mxu1 %v8528_v37 }
 0x714   :  { %4334 = vmatpush3.msra.mxu0 %v6571_v10  ;;  %4369 = vmatpush3.msra.mxu1 %v6577_v43 }
 0x715   :  { %4335 = vmatprep.subr.mxu0 %v8528_v37  ;;  %4370 = vmatprep.subr.mxu1 %v8528_v37 }
 0x716   :  { %4336 = vmatpush3.msra.mxu0 %v6585_v42  ;;  %4371 = vmatpush3.msra.mxu1 %v6591_v34 }
 0x717   :  { %4337 = vmatprep.subr.mxu0 %v8528_v37  ;;  %4372 = vmatprep.subr.mxu1 %v8528_v37 }
 0x718   :  { %4338 = vmatpush3.msra.mxu0 %v6599_v39  ;;  %4373 = vmatpush3.msra.mxu1 %v6605_v17 }
 0x719   :  { %4339 = vmatprep.subr.mxu0 %v8528_v37  ;;  %4374 = vmatprep.subr.mxu1 %v8528_v37 }
 0x71a   :  { %4340 = vmatpush3.msra.mxu0 %v8838_v40  ;;  %4375 = vmatpush3.msra.mxu1 %v8839_v9 }
 0x71b   :  { %4341 = vmatprep.subr.mxu0 %v8528_v37  ;;  %4376 = vmatprep.subr.mxu1 %v8528_v37 }
 0x71c   :  { %4342 = vmatpush3.msra.mxu0 %v8840_v11  ;;  %4377 = vmatpush3.msra.mxu1 %v6836_v35 }
 0x71d   :  { %4343 = vmatprep.subr.mxu0 %v8528_v37  ;;  %4378 = vmatprep.subr.mxu1 %v8528_v37 }
 0x71e   :  { %4344 = vmatpush3.msra.mxu0 %v8842_v51  ;;  %4379 = vmatpush3.msra.mxu1 %v6845_v1 }
 0x71f   :  { %4345 = vmatprep.subr.mxu0 %v8528_v37  ;;  %4380 = vmatprep.subr.mxu1 %v8528_v37 }
 0x720   :  { %4346 = vmatpush3.msra.mxu0 %v8844_v57  ;;  %4381 = vmatpush3.msra.mxu1 %v6854_v33 }
 0x721   :  { %4347 = vmatprep.subr.mxu0 %v8528_v37  ;;  %4382 = vmatprep.subr.mxu1 %v8528_v37 }
 0x722   :  { %4348 = vmatpush3.msra.mxu0 %v6862_v59  ;;  %4383 = vmatpush3.msra.mxu1 %v6868_v61 }
 0x723   :  { %4349 = vmatprep.subr.mxu0 %v8528_v37  ;;  %4384 = vmatprep.subr.mxu1 %v8528_v37 }
 0x724   :  { %4350 = vmatpush3.msra.mxu0 %v6876_v62  ;;  %4385 = vmatpush3.msra.mxu1 %v6882_v58 }
 0x725   :  { %4351 = vmatprep.subr.mxu0 %v8528_v37  ;;  %4386 = vmatprep.subr.mxu1 %v8528_v37 }
 0x726   :  { %4352 = vmatpush3.msra.mxu0 %v6890_v54  ;;  %4387 = vmatpush3.msra.mxu1 %v6896_v41  ;;  %v8856_v41 = vld [vmem:[#allocation99_spill] sm:$0xff] }
 0x727   :  { %4353 = vmatprep.subr.mxu0 %v8528_v37  ;;  %4355 = vmatprep.mubr.msk.f32.mxu0 %vm5292_vm1, %v8528_v37 }
 0x728   :  { %4354 = vmatpush3.msra.mxu0 %v6905_v13  ;;  %4388 = vmatprep.subr.mxu1 %v8528_v37 }
 0x729   :  { %2339 = vmatprep.subr.bf16.mxu0 %v6909_v2  ;;  %4389 = vmatpush3.msra.mxu1 %v6915_v63 }
 0x72a   :  { %4390 = vmatprep.mubr.msk.f32.mxu1 %vm5292_vm1, %v8528_v37  ;;  %2380 = vmatprep.subr.bf16.mxu1 %v6920_v52 }
 0x7c9   :  { %v2129_v55 = vpop.f32.mrf.mxu0  ;;  %v2170_v13 = vpop.f32.mrf.mxu1 }
 0x7ca   :  { %v2130_v54 = vadd.f32 %v2129_v55, %v8856_v41  ;;  %v2171_v63 = vadd.f32 %v2170_v13, %v5983_v32 }
 0x7cb   :  { %v2131_v58 = vpop.f32.mrf.mxu0  ;;  %v2172_v2 = vpop.f32.mrf.mxu1 }
 0x7cc   :  { %4893 = vtanh.f32 %v2130_v54  ;;  %v2132_v62 = vadd.f32 %v2131_v58, %v5978_v27  ;;  %v2173_v1 = vadd.f32 %v2172_v2, %v5989_v28 }
 0x7cd   :  { %v2133_v61 = vpop.f32.mrf.mxu0  ;;  %v2174_v59 = vpop.f32.mrf.mxu1 }
 0x7ce   :  { %4895 = vtanh.f32 %v2132_v62 }
 0x7cf   :  { %v2134_v33 = vpop.f32.mrf.mxu0  ;;  %v2175_v57 = vpop.f32.mrf.mxu1  ;;  %4897 = vtanh.f32 %v2171_v63 }
 0x7d0   :  { %4899 = vtanh.f32 %v2173_v1  ;;  %v6948_v1 = vld [vmem:[#allocation2 + $0xa4] ss:$16 sps:$4 sm:$0xff]  }
 0x7d9   :  { %v4894_v52 = vpop.eup %4893 }
 0x7da   :  { %v2181_v51 = vmul.f32 0.5, %v4894_v52  ;;  %v6931_v52 = vld [vmem:[#allocation2 + $0xe0] ss:$16 sps:$4 sm:$0xff]  }
 0x7db   :  { %v4896_v35 = vpop.eup %4895 }
 0x7dc   :  { %v2182_v11 = vadd.f32 0.5, %v2181_v51  ;;  %v2183_v55 = vmul.f32 0.5, %v4896_v35  ;;  %v4898_v54 = vpop.eup %4897  ;;  %v6942_v35 = vld [vmem:[#allocation2 + $0xcc] ss:$16 sps:$4 sm:$0xff]   ;;  %v6945_v51 = vld [vmem:[#allocation2 + $0xc0] ss:$16 sps:$4 sm:$0xff]  }
 0x7dd   :  { %v4900_v33 = vpop.eup %4899 }
 0x7de   :  { %v2184_v41 = vadd.f32 0.5, %v2183_v55  ;;  %v2188_v61 = vmul.f32 %v4898_v54, %v2182_v11  ;;  %v2185_v57 = vmul.f32 0.5, %v4900_v33  ;;  %v6938_v11 = vld [vmem:[#allocation2 + $0xe8] ss:$16 sps:$4 sm:$0xff]   ;;  %v6954_v55 = vld [vmem:[#allocation2 + $0xac] ss:$16 sps:$4 sm:$0xff]  }
 0x7df   :  { %v6957_v54 = vld [vmem:[#allocation2 + $0xa0] ss:$16 sps:$4 sm:$0xff]   ;;  %v6966_v33 = vld [vmem:[#allocation2 + $0x8c] ss:$16 sps:$4 sm:$0xff]  }
 0x7e0   :  { %v2187_v58 = vmul.f32 %v2184_v41, %v6676_v60  ;;  %v2186_v62 = vadd.f32 0.5, %v2185_v57  ;;  %v6935_v60 = vld [vmem:[#allocation2 + $0xc4] ss:$16 sps:$4 sm:$0xff]   ;;  %v6951_v41 = vld [vmem:[#allocation2 + $0xc8] ss:$16 sps:$4 sm:$0xff]   ;;  %8858 = vst [vmem:[#allocation16_spill] sm:$0xff] %v6966_v33 }
 0x7e1   :  { %v6969_v57 = vld [vmem:[#allocation2 + $0x80] ss:$16 sps:$4 sm:$0xff]  }
 0x7e2   :  { %v6928_v59 = vadd.f32 %v2188_v61, %v2187_v58  ;;  %v6960_v58 = vld [vmem:[#allocation2 + $0x84] ss:$16 sps:$4 sm:$0xff]   ;;  %v6963_v61 = vld [vmem:[#allocation2 + $0xa8] ss:$16 sps:$4 sm:$0xff]   ;;  %8859 = vst [vmem:[#allocation18_spill] sm:$0xff] %v6969_v57 }
 0x7e3   :  { %8857 = vst [vmem:[#allocation15_spill] sm:$0xff] %v6963_v61 }
 0x7e4   :  { %4901 = vtanh.f32 %v6928_v59 }
 0x7f1   :  { %v4902_v13 = vpop.eup %4901 }
 0x7f2   :  { %v2191_v2 = vmul.f32 %v4902_v13, %v2186_v62  ;;  %v6972_v62 = vld [vmem:[#allocation2 + $0x64] ss:$16 sps:$4 sm:$0xff]   ;;  %v6975_v13 = vld [vmem:[#allocation2 + $0x88] ss:$16 sps:$4 sm:$0xff]  }
 0x7f3   :  { %8860 = vst [vmem:[#allocation17_spill] sm:$0xff] %v6972_v62  ;;  %8861 = vst [vmem:[#allocation19_spill] sm:$0xff] %v6975_v13 }
 0x7f4   :  { %4356 = vmatmul.mubr.f32.vlgmr.msra.gmra.mxu0 %v2191_v2  ;;  %v2265_v63 = vrot.slane %v2191_v2, 1 }
 0x7f5   :  { %2340 = vmatpush1.bf16.msra.mxu0 %v6931_v52  ;;  %2371 = vmatprep.mubr.bf16.mxu0 %v8595_v36 }
 0x7f6   :  { %4391 = vmatmul.mubr.f32.vlgmr.msra.gmra.mxu1 %v2265_v63  ;;  %2341 = vmatprep.subr.bf16.mxu0 %v6935_v60  ;;  %v6978_v63 = vld [vmem:[#allocation2 + $0x6c] ss:$16 sps:$4 sm:$0xff]  }
 0x7f7   :  { %2381 = vmatpush1.bf16.msra.mxu1 %v6938_v11  ;;  %2412 = vmatprep.mubr.bf16.mxu1 %v8595_v36  ;;  %8862 = vst [vmem:[#allocation20_spill] sm:$0xff] %v6978_v63 }
 0x7f8   :  { %2382 = vmatprep.subr.bf16.mxu1 %v6942_v35 }
 0x7f9   :  { %2342 = vmatpush1.bf16.msra.mxu0 %v6945_v51 }
 0x7fa   :  { %2343 = vmatprep.subr.bf16.mxu0 %v6948_v1 }
 0x7fb   :  { %2383 = vmatpush1.bf16.msra.mxu1 %v6951_v41 }
 0x7fc   :  { %2384 = vmatprep.subr.bf16.mxu1 %v6954_v55 }
 0x7fd   :  { %2344 = vmatpush1.bf16.msra.mxu0 %v6957_v54 }
 0x7fe   :  { %2345 = vmatprep.subr.bf16.mxu0 %v6960_v58 }
 0x7ff   :  { %2385 = vmatpush1.bf16.msra.mxu1 %v6963_v61  ;;  %v6981_v61 = vld [vmem:[#allocation2 + $0x60] ss:$16 sps:$4 sm:$0xff]  }
 0x800   :  { %2386 = vmatprep.subr.bf16.mxu1 %v6966_v33  ;;  %v6984_v33 = vld [vmem:[#allocation2 + $0x44] ss:$16 sps:$4 sm:$0xff]  }
 0x801   :  { %2346 = vmatpush1.bf16.msra.mxu0 %v6969_v57  ;;  %v6987_v57 = vld [vmem:[#allocation2 + $0x68] ss:$16 sps:$4 sm:$0xff]  }
 0x802   :  { %2347 = vmatprep.subr.bf16.mxu0 %v6972_v62  ;;  %v6990_v62 = vld [vmem:[#allocation2 + $0x4c] ss:$16 sps:$4 sm:$0xff]  }
 0x803   :  { %2387 = vmatpush1.bf16.msra.mxu1 %v6975_v13  ;;  %v6993_v13 = vld [vmem:[#allocation2 + $0x40] ss:$16 sps:$4 sm:$0xff]  }
 0x804   :  { %2388 = vmatprep.subr.bf16.mxu1 %v6978_v63  ;;  %v6997_v63 = vld [vmem:[#allocation2 + $0x48] ss:$16 sps:$4 sm:$0xff]  }
 0x805   :  { %2348 = vmatpush1.bf16.msra.mxu0 %v6981_v61 }
 0x806   :  { %2349 = vmatprep.subr.bf16.mxu0 %v6984_v33 }
 0x807   :  { %2389 = vmatpush1.bf16.msra.mxu1 %v6987_v57 }
 0x808   :  { %2390 = vmatprep.subr.bf16.mxu1 %v6990_v62 }
 0x809   :  { %2350 = vmatpush1.bf16.msra.mxu0 %v6993_v13 }
 0x80a   :  { %2351 = vmatprep.subr.bf16.mxu0 %v6260_v12  ;;  %v2192_v12 = vpack.c.bf16 %v2191_v2, %v2191_v2  ;;  %v8884_v2 = vld [vmem:[#allocation70_spill] sm:$0xff] }
 0x80b   :  { %2391 = vmatpush1.bf16.msra.mxu1 %v6997_v63 }
 0x80c   :  { %2392 = vmatprep.subr.bf16.mxu1 %v8762_v18  ;;  %v8863_v18 = vld [vmem:[#allocation25_spill] sm:$0xff] }
 0x80d   :  { %2352 = vmatpush1.bf16.msra.mxu0 %v8763_v21  ;;  %v8864_v21 = vld [vmem:[#allocation27_spill] sm:$0xff] }
 0x80e   :  { %2353 = vmatprep.subr.bf16.mxu0 %v8764_v44  ;;  %v8865_v44 = vld [vmem:[#allocation28_spill] sm:$0xff] }
 0x80f   :  { %2393 = vmatpush1.bf16.msra.mxu1 %v8765_v31  ;;  %v8866_v31 = vld [vmem:[#allocation30_spill] sm:$0xff] }
 0x810   :  { %2394 = vmatprep.subr.bf16.mxu1 %v8766_v0  ;;  %v8867_v0 = vld [vmem:[#allocation29_spill] sm:$0xff] }
 0x811   :  { %2354 = vmatpush1.bf16.msra.mxu0 %v8767_v22  ;;  %v8868_v22 = vld [vmem:[#allocation31_spill] sm:$0xff] }
 0x812   :  { %2441 = vmatprep.subr.bf16.mxu0 %v8768_v26  ;;  %v8869_v26 = vld [vmem:[#allocation32_spill] sm:$0xff] }
 0x813   :  { %2395 = vmatpush1.bf16.msra.mxu1 %v8769_v23  ;;  %v8870_v23 = vld [vmem:[#allocation34_spill] sm:$0xff] }
 0x814   :  { %2372 = vmatmul.mubr.bf16.vlgmr.msra.gmra.mxu0 %v6792_v56  ;;  %2482 = vmatprep.subr.bf16.mxu1 %v8770_v25  ;;  %v8871_v25 = vld [vmem:[#allocation33_spill] sm:$0xff] }
 0x815   :  { %2473 = vmatprep.mubr.bf16.mxu0 %v2192_v12  ;;  %2442 = vmatpush1.bf16.msra.mxu0 %v8771_v29  ;;  %v8872_v29 = vld [vmem:[#allocation35_spill] sm:$0xff] }
 0x816   :  { %2413 = vmatmul.mubr.bf16.vlgmr.msra.gmra.mxu1 %v6792_v56  ;;  %2443 = vmatprep.subr.bf16.mxu0 %v8772_v38  ;;  %v8873_v38 = vld [vmem:[#allocation36_spill] sm:$0xff]  ;;  %v8883_v56 = vld [vmem:[#allocation71_spill] sm:$0xff] }
 0x817   :  { %2514 = vmatprep.mubr.bf16.mxu1 %v2192_v12  ;;  %2483 = vmatpush1.bf16.msra.mxu1 %v8773_v20  ;;  %v8874_v20 = vld [vmem:[#allocation37_spill] sm:$0xff] }
 0x818   :  { %2484 = vmatprep.subr.bf16.mxu1 %v8774_v49  ;;  %v8875_v49 = vld [vmem:[#allocation38_spill] sm:$0xff]  ;;  %v8885_v12 = vld [vmem:[#allocation73_spill] sm:$0xff] }
 0x819   :  { %2444 = vmatpush1.bf16.msra.mxu0 %v8775_v24  ;;  %v8876_v24 = vld [vmem:[#allocation40_spill] sm:$0xff] }
 0x81a   :  { %2445 = vmatprep.subr.bf16.mxu0 %v8776_v5  ;;  %v8877_v5 = vld [vmem:[#allocation39_spill] sm:$0xff] }
 0x81b   :  { %2485 = vmatpush1.bf16.msra.mxu1 %v8777_v46  ;;  %v8878_v46 = vld [vmem:[#allocation41_spill] sm:$0xff] }
 0x81c   :  { %2486 = vmatprep.subr.bf16.mxu1 %v8778_v30  ;;  %v8879_v30 = vld [vmem:[#allocation67_spill] sm:$0xff] }
 0x81d   :  { %2446 = vmatpush1.bf16.msra.mxu0 %v8779_v6  ;;  %v8880_v6 = vld [vmem:[#allocation66_spill] sm:$0xff] }
 0x81e   :  { %2447 = vmatprep.subr.bf16.mxu0 %v8780_v7  ;;  %v8881_v7 = vld [vmem:[#allocation69_spill] sm:$0xff] }
 0x81f   :  { %2487 = vmatpush1.bf16.msra.mxu1 %v8781_v8  ;;  %v8882_v8 = vld [vmem:[#allocation68_spill] sm:$0xff] }
 0x820   :  { %2488 = vmatprep.subr.bf16.mxu1 %v8863_v18  ;;  %v8886_v18 = vld [vmem:[#allocation72_spill] sm:$0xff] }
 0x821   :  { %2448 = vmatpush1.bf16.msra.mxu0 %v8864_v21  ;;  %v8887_v21 = vld [vmem:[#allocation75_spill] sm:$0xff] }
 0x822   :  { %2449 = vmatprep.subr.bf16.mxu0 %v8865_v44  ;;  %v8888_v44 = vld [vmem:[#allocation74_spill] sm:$0xff] }
 0x823   :  { %2489 = vmatpush1.bf16.msra.mxu1 %v8866_v31  ;;  %v8889_v31 = vld [vmem:[#allocation77_spill] sm:$0xff] }
 0x824   :  { %2490 = vmatprep.subr.bf16.mxu1 %v8867_v0  ;;  %v8890_v0 = vld [vmem:[#allocation76_spill] sm:$0xff] }
 0x825   :  { %2450 = vmatpush1.bf16.msra.mxu0 %v8868_v22  ;;  %v8891_v22 = vld [vmem:[#allocation79_spill] sm:$0xff] }
 0x826   :  { %2451 = vmatprep.subr.bf16.mxu0 %v8869_v26  ;;  %v8892_v26 = vld [vmem:[#allocation78_spill] sm:$0xff] }
 0x827   :  { %2491 = vmatpush1.bf16.msra.mxu1 %v8870_v23  ;;  %v8893_v23 = vld [vmem:[#allocation81_spill] sm:$0xff] }
 0x828   :  { %2492 = vmatprep.subr.bf16.mxu1 %v8871_v25  ;;  %v8894_v25 = vld [vmem:[#allocation80_spill] sm:$0xff] }
 0x829   :  { %2452 = vmatpush1.bf16.msra.mxu0 %v8872_v29  ;;  %v8895_v29 = vld [vmem:[#allocation83_spill] sm:$0xff] }
 0x82a   :  { %2453 = vmatprep.subr.bf16.mxu0 %v8873_v38  ;;  %v8896_v38 = vld [vmem:[#allocation82_spill] sm:$0xff] }
 0x82b   :  { %2493 = vmatpush1.bf16.msra.mxu1 %v8874_v20  ;;  %v8897_v20 = vld [vmem:[#allocation85_spill] sm:$0xff] }
 0x82c   :  { %2494 = vmatprep.subr.bf16.mxu1 %v8875_v49  ;;  %v8898_v49 = vld [vmem:[#allocation84_spill] sm:$0xff] }
 0x82d   :  { %2454 = vmatpush1.bf16.msra.mxu0 %v8876_v24  ;;  %v8899_v24 = vld [vmem:[#allocation87_spill] sm:$0xff] }
 0x82e   :  { %2455 = vmatprep.subr.bf16.mxu0 %v8877_v5  ;;  %v8900_v5 = vld [vmem:[#allocation86_spill] sm:$0xff] }
 0x82f   :  { %2495 = vmatpush1.bf16.msra.mxu1 %v8878_v46  ;;  %v8901_v46 = vld [vmem:[#allocation89_spill] sm:$0xff] }
 0x830   :  { %2496 = vmatprep.subr.bf16.mxu1 %v8879_v30  ;;  %v8902_v30 = vld [vmem:[#allocation88_spill] sm:$0xff] }
 0x831   :  { %2456 = vmatpush1.bf16.msra.mxu0 %v8880_v6  ;;  %v8903_v6 = vld [vmem:[#allocation91_spill] sm:$0xff] }
 0x832   :  { %2457 = vmatprep.subr.bf16.mxu0 %v8881_v7  ;;  %v8904_v7 = vld [vmem:[#allocation90_spill] sm:$0xff] }
 0x833   :  { %2497 = vmatpush1.bf16.msra.mxu1 %v8882_v8  ;;  %v8905_v8 = vld [vmem:[#allocation93_spill] sm:$0xff] }
 0x834   :  { %2498 = vmatprep.subr.bf16.mxu1 %v8883_v56  ;;  %v8906_v56 = vld [vmem:[#allocation92_spill] sm:$0xff] }
 0x835   :  { %2458 = vmatpush2.bf16.msra.mxu0 %v8884_v2  ;;  %v8907_v2 = vld [vmem:[#allocation95_spill] sm:$0xff] }
 0x836   :  { %2459 = vmatprep.subr.bf16.mxu0 %v8885_v12  ;;  %v8908_v12 = vld [vmem:[#allocation94_spill] sm:$0xff] }
 0x837   :  { %2499 = vmatpush2.bf16.msra.mxu1 %v8886_v18  ;;  %v8909_v18 = vld [vmem:[#allocation97_spill] sm:$0xff] }
 0x838   :  { %2500 = vmatprep.subr.bf16.mxu1 %v8887_v21  ;;  %v8910_v21 = vld [vmem:[#allocation96_spill] sm:$0xff] }
 0x839   :  { %2460 = vmatpush2.bf16.msra.mxu0 %v8888_v44  ;;  %v8911_v44 = vld [vmem:[#allocation98_spill] sm:$0xff] }
 0x83a   :  { %2461 = vmatprep.subr.bf16.mxu0 %v8889_v31  ;;  %v8912_v31 = vld [vmem:[#allocation100_spill] sm:$0xff] }
 0x83b   :  { %2501 = vmatpush2.bf16.msra.mxu1 %v8890_v0  ;;  %v8913_v0 = vld [vmem:[#allocation101_spill] sm:$0xff] }
 0x83c   :  { %2502 = vmatprep.subr.bf16.mxu1 %v8891_v22 }
 0x83d   :  { %2462 = vmatpush2.bf16.msra.mxu0 %v8892_v26  ;;  %v7078_v26 = vld [vmem:[%s8033_s3 + $0x100] sm:$0x1] }
 0x83e   :  { %2463 = vmatprep.subr.bf16.mxu0 %v8893_v23  ;;  %8914 = vst [vmem:[#allocation22_spill] sm:$0xff] %v7078_v26 }
 0x83f   :  { %2503 = vmatpush2.bf16.msra.mxu1 %v8894_v25 }
 0x840   :  { %2504 = vmatprep.subr.bf16.mxu1 %v8895_v29 }
 0x841   :  { %2464 = vmatpush2.bf16.msra.mxu0 %v8896_v38 }
 0x842   :  { %2465 = vmatprep.subr.bf16.mxu0 %v8897_v20 }
 0x843   :  { %2505 = vmatpush2.bf16.msra.mxu1 %v8898_v49 }
 0x844   :  { %2506 = vmatprep.subr.bf16.mxu1 %v8899_v24  ;;  %v8915_v24 = vld [vmem:[#allocation50_spill] sm:$0xff] }
 0x845   :  { %2466 = vmatpush2.bf16.msra.mxu0 %v8900_v5 }
 0x846   :  { %2467 = vmatprep.subr.bf16.mxu0 %v8901_v46 }
 0x847   :  { %2507 = vmatpush2.bf16.msra.mxu1 %v8902_v30 }
 0x848   :  { %2508 = vmatprep.subr.bf16.mxu1 %v8903_v6  ;;  %v8916_v6 = vld [vmem:[#allocation52_spill] sm:$0xff] }
 0x849   :  { %2468 = vmatpush2.bf16.msra.mxu0 %v8904_v7 }
 0x84a   :  { %2469 = vmatprep.subr.bf16.mxu0 %v8905_v8  ;;  %v8917_v8 = vld [vmem:[#allocation51_spill] sm:$0xff] }
 0x84b   :  { %2509 = vmatpush2.bf16.msra.mxu1 %v8906_v56 }
 0x84c   :  { %2510 = vmatprep.subr.bf16.mxu1 %v8907_v2 }
 0x84d   :  { %2470 = vmatpush2.bf16.msra.mxu0 %v8908_v12 }
 0x84e   :  { %2471 = vmatprep.subr.bf16.mxu0 %v8909_v18 }
 0x84f   :  { %2511 = vmatpush2.bf16.msra.mxu1 %v8910_v21 }
 0x850   :  { %2512 = vmatprep.subr.bf16.mxu1 %v8911_v44 }
 0x851   :  { %2472 = vmatpush2.bf16.msra.mxu0 %v8912_v31  ;;  %v8918_v31 = vld [vmem:[#allocation53_spill] sm:$0xff] }
 0x852   :  { %4393 = vmatprep.subr.mxu0 %v8528_v37 }
 0x853   :  { %2513 = vmatpush2.bf16.msra.mxu1 %v8913_v0 }
 0x854   :  { %4428 = vmatprep.subr.mxu1 %v8528_v37 }
 0x8b4   :  { %v2259_v22 = vpop.f32.mrf.mxu0 }
 0x8b5   :  { %v2263_v23 = vadd.f32 %v7078_v26, %v2259_v22 }
 0x8b6   :  { %v4357_v25 = vpop.f32.mrf.mxu0  ;;  %v2333_v29 = vpop.f32.mrf.mxu1 }
 0x8b7   :  { %v2337_v38 = vadd.f32 %v2333_v29, %v2263_v23 }
 0x8b8   :  { %v4392_v20 = vpop.f32.mrf.mxu1 }
 0x8b9   :  { %2338 = vst.msk [vmem:[%s8034_s4 + $0x3] sm:$0x1] %vm1299_vm2, %v2337_v38 }
 0x8d4   :  { %v2373_v49 = vpop.f32.mrf.mxu0 }
 0x8d5   :  { %v2421_v5 = vadd.f32 %v2373_v49, %v8915_v24 }
 0x8d6   :  { %v2375_v46 = vpop.f32.mrf.mxu0  ;;  %v2414_v30 = vpop.f32.mrf.mxu1 }
 0x8d7   :  { %4903 = vtanh.f32 %v2421_v5  ;;  %v2422_v7 = vadd.f32 %v2375_v46, %v8916_v6  ;;  %v2423_v56 = vadd.f32 %v2414_v30, %v8917_v8 }
 0x8d8   :  { %v2377_v2 = vpop.f32.mrf.mxu0  ;;  %v2416_v12 = vpop.f32.mrf.mxu1 }
 0x8d9   :  { %4905 = vtanh.f32 %v2422_v7  ;;  %v2424_v0 = vadd.f32 %v2416_v12, %v8918_v31 }
 0x8da   :  { %v2378_v18 = vpop.f32.mrf.mxu0  ;;  %v2418_v21 = vpop.f32.mrf.mxu1  ;;  %4907 = vtanh.f32 %v2423_v56 }
 0x8db   :  { %4909 = vtanh.f32 %v2424_v0 }
 0x8dc   :  { %v2419_v44 = vpop.f32.mrf.mxu1 }
 0x8e4   :  { %v4904_v22 = vpop.eup %4903 }
 0x8e5   :  { %v2429_v23 = vmul.f32 0.5, %v4904_v22 }
 0x8e6   :  { %v4906_v25 = vpop.eup %4905 }
 0x8e7   :  { %v2430_v29 = vadd.f32 0.5, %v2429_v23  ;;  %v2431_v38 = vmul.f32 0.5, %v4906_v25  ;;  %v4908_v20 = vpop.eup %4907 }
 0x8e8   :  { %v4910_v30 = vpop.eup %4909 }
 0x8e9   :  { %v2432_v49 = vadd.f32 0.5, %v2431_v38  ;;  %v2436_v24 = vmul.f32 %v4908_v20, %v2430_v29  ;;  %v2433_v6 = vmul.f32 0.5, %v4910_v30 }
 0x8eb   :  { %v2435_v5 = vmul.f32 %v2432_v49, %v6789_v50  ;;  %v2434_v7 = vadd.f32 0.5, %v2433_v6 }
 0x8ed   :  { %v7090_v46 = vadd.f32 %v2436_v24, %v2435_v5 }
 0x8ef   :  { %4911 = vtanh.f32 %v7090_v46 }
 0x8fc   :  { %v4912_v8 = vpop.eup %4911 }
 0x8fd   :  { %v2439_v56 = vmul.f32 %v4912_v8, %v2434_v7 }
 0x8ff   :  { %v7093_v2 = vpack.c.bf16 %v2439_v56, %v2439_v56 }
 0x901   :  { %2474 = vmatmul.mubr.bf16.vlgmr.msra.gmra.mxu0 %v7093_v2  ;;  %2515 = vmatmul.mubr.bf16.vlgmr.msra.gmra.mxu1 %v7093_v2 }
 0x902   :  { %4394 = vmatpush3.msra.mxu0 %v6501_v15  ;;  %4429 = vmatpush3.msra.mxu1 %v6507_v4  ;;  %v8919_v15 = vld [vmem:[#allocation104_spill] sm:$0xff]  ;;  %v8920_v4 = vld [vmem:[#allocation42_spill] sm:$0xff] }
 0x903   :  { %4395 = vmatprep.subr.mxu0 %v8528_v37  ;;  %4430 = vmatprep.subr.mxu1 %v8528_v37 }
 0x904   :  { %4396 = vmatpush3.msra.mxu0 %v6515_v14  ;;  %4431 = vmatpush3.msra.mxu1 %v6521_v19  ;;  %v8921_v14 = vld [vmem:[#allocation105_spill] sm:$0xff]  ;;  %v8922_v19 = vld [vmem:[#allocation44_spill] sm:$0xff] }
 0x905   :  { %4397 = vmatprep.subr.mxu0 %v8528_v37  ;;  %4432 = vmatprep.subr.mxu1 %v8528_v37 }
 0x906   :  { %4398 = vmatpush3.msra.mxu0 %v6529_v16  ;;  %4433 = vmatpush3.msra.mxu1 %v6535_v48  ;;  %v8923_v16 = vld [vmem:[#allocation106_spill] sm:$0xff]  ;;  %v8924_v48 = vld [vmem:[#allocation43_spill] sm:$0xff] }
 0x907   :  { %4399 = vmatprep.subr.mxu0 %v8528_v37  ;;  %4434 = vmatprep.subr.mxu1 %v8528_v37 }
 0x908   :  { %4400 = vmatpush3.msra.mxu0 %v6543_v45  ;;  %4435 = vmatpush3.msra.mxu1 %v6549_v3  ;;  %v8925_v45 = vld [vmem:[#allocation45_spill] sm:$0xff] }
 0x909   :  { %4401 = vmatprep.subr.mxu0 %v8528_v37  ;;  %4436 = vmatprep.subr.mxu1 %v8528_v37  ;;  %v8926_v3 = vld [vmem:[#allocation5_spill] sm:$0xff] }
 0x90a   :  { %4402 = vmatpush3.msra.mxu0 %v6557_v47  ;;  %4437 = vmatpush3.msra.mxu1 %v6563_v53  ;;  %v8927_v47 = vld [vmem:[#allocation7_spill] sm:$0xff]  ;;  %v8928_v53 = vld [vmem:[#allocation8_spill] sm:$0xff] }
 0x90b   :  { %4403 = vmatprep.subr.mxu0 %v8528_v37  ;;  %4438 = vmatprep.subr.mxu1 %v8528_v37 }
 0x90c   :  { %4404 = vmatpush3.msra.mxu0 %v6571_v10  ;;  %4439 = vmatpush3.msra.mxu1 %v6577_v43  ;;  %v8929_v10 = vld [vmem:[#allocation10_spill] sm:$0xff]  ;;  %v8930_v43 = vld [vmem:[#allocation9_spill] sm:$0xff] }
 0x90d   :  { %4405 = vmatprep.subr.mxu0 %v8528_v37  ;;  %4440 = vmatprep.subr.mxu1 %v8528_v37 }
 0x90e   :  { %4406 = vmatpush3.msra.mxu0 %v6585_v42  ;;  %4441 = vmatpush3.msra.mxu1 %v6591_v34  ;;  %v8931_v42 = vld [vmem:[#allocation11_spill] sm:$0xff]  ;;  %v8932_v34 = vld [vmem:[#allocation12_spill] sm:$0xff] }
 0x90f   :  { %4407 = vmatprep.subr.mxu0 %v8528_v37  ;;  %4442 = vmatprep.subr.mxu1 %v8528_v37 }
 0x910   :  { %4408 = vmatpush3.msra.mxu0 %v6599_v39  ;;  %4443 = vmatpush3.msra.mxu1 %v6605_v17  ;;  %v8933_v39 = vld [vmem:[#allocation14_spill] sm:$0xff]  ;;  %v8934_v17 = vld [vmem:[#allocation13_spill] sm:$0xff] }
 0x911   :  { %4409 = vmatprep.subr.mxu0 %v8528_v37  ;;  %4444 = vmatprep.subr.mxu1 %v8528_v37 }
 0x912   :  { %4410 = vmatpush3.msra.mxu0 %v8838_v40  ;;  %4445 = vmatpush3.msra.mxu1 %v8839_v9  ;;  %v8935_v9 = vld [vmem:[#allocation99_spill] sm:$0xff] }
 0x913   :  { %4411 = vmatprep.subr.mxu0 %v8528_v37  ;;  %4446 = vmatprep.subr.mxu1 %v8528_v37 }
 0x914   :  { %4412 = vmatpush3.msra.mxu0 %v8919_v15  ;;  %4447 = vmatpush3.msra.mxu1 %v8920_v4 }
 0x915   :  { %4413 = vmatprep.subr.mxu0 %v8528_v37  ;;  %4448 = vmatprep.subr.mxu1 %v8528_v37 }
 0x916   :  { %4414 = vmatpush3.msra.mxu0 %v8921_v14  ;;  %4449 = vmatpush3.msra.mxu1 %v8922_v19 }
 0x917   :  { %4415 = vmatprep.subr.mxu0 %v8528_v37  ;;  %4450 = vmatprep.subr.mxu1 %v8528_v37 }
 0x918   :  { %4416 = vmatpush3.msra.mxu0 %v8923_v16  ;;  %4451 = vmatpush3.msra.mxu1 %v8924_v48 }
 0x919   :  { %4417 = vmatprep.subr.mxu0 %v8528_v37  ;;  %4452 = vmatprep.subr.mxu1 %v8528_v37 }
 0x91a   :  { %4418 = vmatpush3.msra.mxu0 %v8925_v45  ;;  %4453 = vmatpush3.msra.mxu1 %v8926_v3 }
 0x91b   :  { %4419 = vmatprep.subr.mxu0 %v8528_v37  ;;  %4454 = vmatprep.subr.mxu1 %v8528_v37 }
 0x91c   :  { %4420 = vmatpush3.msra.mxu0 %v8927_v47  ;;  %4455 = vmatpush3.msra.mxu1 %v8928_v53 }
 0x91d   :  { %4421 = vmatprep.subr.mxu0 %v8528_v37  ;;  %4456 = vmatprep.subr.mxu1 %v8528_v37 }
 0x91e   :  { %4422 = vmatpush3.msra.mxu0 %v8929_v10  ;;  %4457 = vmatpush3.msra.mxu1 %v8930_v43 }
 0x91f   :  { %4423 = vmatprep.subr.mxu0 %v8528_v37  ;;  %4425 = vmatprep.mubr.msk.f32.mxu0 %vm5292_vm1, %v8528_v37 }
 0x920   :  { %4424 = vmatpush3.msra.mxu0 %v8931_v42  ;;  %4458 = vmatprep.subr.mxu1 %v8528_v37 }
 0x921   :  { %2685 = vmatprep.subr.bf16.mxu0 %v8932_v34  ;;  %4459 = vmatpush3.msra.mxu1 %v8933_v39 }
 0x922   :  { %4460 = vmatprep.mubr.msk.f32.mxu1 %vm5292_vm1, %v8528_v37  ;;  %2726 = vmatprep.subr.bf16.mxu1 %v8934_v17 }
 0x9c1   :  { %v2475_v50 = vpop.f32.mrf.mxu0  ;;  %v2516_v40 = vpop.f32.mrf.mxu1 }
 0x9c2   :  { %v2476_v12 = vadd.f32 %v2475_v50, %v8935_v9  ;;  %v2517_v22 = vadd.f32 %v2516_v40, %v5983_v32 }
 0x9c3   :  { %v2477_v18 = vpop.f32.mrf.mxu0  ;;  %v2518_v21 = vpop.f32.mrf.mxu1 }
 0x9c4   :  { %4913 = vtanh.f32 %v2476_v12  ;;  %v2478_v44 = vadd.f32 %v2477_v18, %v5978_v27  ;;  %v2519_v29 = vadd.f32 %v2518_v21, %v5989_v28  ;;  %v8937_v18 = vld [vmem:[#allocation16_spill] sm:$0xff]  ;;  %v8938_v21 = vld [vmem:[#allocation18_spill] sm:$0xff] }
 0x9c5   :  { %v2479_v31 = vpop.f32.mrf.mxu0  ;;  %v2520_v0 = vpop.f32.mrf.mxu1 }
 0x9c6   :  { %4915 = vtanh.f32 %v2478_v44  ;;  %v8939_v44 = vld [vmem:[#allocation17_spill] sm:$0xff]  ;;  %v8940_v31 = vld [vmem:[#allocation19_spill] sm:$0xff]  ;;  %v8941_v0 = vld [vmem:[#allocation20_spill] sm:$0xff] }
 0x9c7   :  { %v2480_v23 = vpop.f32.mrf.mxu0  ;;  %v2521_v25 = vpop.f32.mrf.mxu1  ;;  %4917 = vtanh.f32 %v2517_v22  ;;  %v7196_v22 = vld [vmem:[#allocation2 + $0x24] ss:$16 sps:$4 sm:$0xff]  }
 0x9c8   :  { %4919 = vtanh.f32 %v2519_v29  ;;  %v7200_v23 = vld [vmem:[#allocation2 + $0x2c] ss:$16 sps:$4 sm:$0xff]   ;;  %v7203_v25 = vld [vmem:[#allocation2 + $0x20] ss:$16 sps:$4 sm:$0xff]   ;;  %v7206_v29 = vld [vmem:[#allocation2 + $0x4] ss:$16 sps:$4 sm:$0xff]  }
 0x9c9   :  { %8942 = vst [vmem:[#allocation21_spill] sm:$0xff] %v7200_v23  ;;  %8943 = vst [vmem:[#allocation23_spill] sm:$0xff] %v7203_v25 }
 0x9ca   :  { %8944 = vst [vmem:[#allocation24_spill] sm:$0xff] %v7206_v29 }
 0x9d1   :  { %v4914_v38 = vpop.eup %4913 }
 0x9d2   :  { %v2527_v20 = vmul.f32 0.5, %v4914_v38  ;;  %v7209_v38 = vld [vmem:[#allocation2 + $0x28] ss:$16 sps:$4 sm:$0xff]  }
 0x9d3   :  { %v4916_v49 = vpop.eup %4915  ;;  %8945 = vst [vmem:[#allocation26_spill] sm:$0xff] %v7209_v38 }
 0x9d4   :  { %v2528_v24 = vadd.f32 0.5, %v2527_v20  ;;  %v2529_v5 = vmul.f32 0.5, %v4916_v49  ;;  %v4918_v6 = vpop.eup %4917  ;;  %v7212_v20 = vld [vmem:[#allocation2 + $0xc] ss:$16 sps:$4 sm:$0xff]   ;;  %v7215_v49 = vld [vmem:[#allocation2] ss:$16 sps:$4 sm:$0xff]  }
 0x9d5   :  { %v4920_v15 = vpop.eup %4919  ;;  %8946 = vst [vmem:[#allocation6_spill] sm:$0xff] %v7212_v20  ;;  %8947 = vst [vmem:[#allocation46_spill] sm:$0xff] %v7215_v49 }
 0x9d6   :  { %v2530_v30 = vadd.f32 0.5, %v2529_v5  ;;  %v2534_v8 = vmul.f32 %v4918_v6, %v2528_v24  ;;  %v2531_v14 = vmul.f32 0.5, %v4920_v15  ;;  %v7218_v24 = vld [vmem:[#allocation2 + $0x1e4] ss:$16 sps:$4 sm:$0xff]   ;;  %v7221_v5 = vld [vmem:[#allocation2 + $0x8] ss:$16 sps:$4 sm:$0xff]  }
 0x9d7   :  { %8948 = vst [vmem:[#allocation48_spill] sm:$0xff] %v7218_v24  ;;  %8949 = vst [vmem:[#allocation47_spill] sm:$0xff] %v7221_v5  ;;  %v7225_v6 = vld [vmem:[#allocation2 + $0x1ec] ss:$16 sps:$4 sm:$0xff]   ;;  %v7235_v15 = vld [vmem:[#allocation2 + $0x1e8] ss:$16 sps:$4 sm:$0xff]  }
 0x9d8   :  { %v2533_v7 = vmul.f32 %v2530_v30, %v6928_v59  ;;  %v2532_v16 = vadd.f32 0.5, %v2531_v14  ;;  %v8936_v59 = vld [vmem:[#allocation15_spill] sm:$0xff]  ;;  %8950 = vst [vmem:[#allocation49_spill] sm:$0xff] %v7225_v6  ;;  %8953 = vst [vmem:[#allocation25_spill] sm:$0xff] %v7235_v15  ;;  %v7238_v14 = vld [vmem:[#allocation2 + $0x1cc] ss:$16 sps:$4 sm:$0xff]  }
 0x9d9   :  { %8954 = vst [vmem:[#allocation27_spill] sm:$0xff] %v7238_v14 }
 0x9da   :  { %v7170_v56 = vadd.f32 %v2534_v8, %v2533_v7  ;;  %v7228_v7 = vld [vmem:[#allocation2 + $0x1e0] ss:$16 sps:$4 sm:$0xff]   ;;  %v7232_v8 = vld [vmem:[#allocation2 + $0x1c4] ss:$16 sps:$4 sm:$0xff]  }
 0x9db   :  { %8951 = vst [vmem:[#allocation102_spill] sm:$0xff] %v7228_v7  ;;  %8952 = vst [vmem:[#allocation103_spill] sm:$0xff] %v7232_v8 }
 0x9dc   :  { %4921 = vtanh.f32 %v7170_v56 }
 0x9e9   :  { %v4922_v50 = vpop.eup %4921 }
 0x9ea   :  { %v2537_v40 = vmul.f32 %v4922_v50, %v2532_v16  ;;  %v7241_v16 = vld [vmem:[#allocation2 + $0x1c0] ss:$16 sps:$4 sm:$0xff]   ;;  %v7244_v50 = vld [vmem:[#allocation2 + $0x1a4] ss:$16 sps:$4 sm:$0xff]  }
 0x9eb   :  { %8955 = vst [vmem:[#allocation28_spill] sm:$0xff] %v7241_v16  ;;  %8956 = vst [vmem:[#allocation30_spill] sm:$0xff] %v7244_v50 }
 0x9ec   :  { %4426 = vmatmul.mubr.f32.vlgmr.msra.gmra.mxu0 %v2537_v40  ;;  %v2611_v12 = vrot.slane %v2537_v40, 1  ;;  %v2538_v30 = vpack.c.bf16 %v2537_v40, %v2537_v40  ;;  %v7250_v40 = vld [vmem:[#allocation2 + $0x1ac] ss:$16 sps:$4 sm:$0xff]  }
 0x9ed   :  { %2686 = vmatpush1.bf16.msra.mxu0 %v6931_v52  ;;  %2717 = vmatprep.mubr.bf16.mxu0 %v8595_v36  ;;  %8958 = vst [vmem:[#allocation31_spill] sm:$0xff] %v7250_v40 }
 0x9ee   :  { %4461 = vmatmul.mubr.f32.vlgmr.msra.gmra.mxu1 %v2611_v12  ;;  %2687 = vmatprep.subr.bf16.mxu0 %v6935_v60  ;;  %v7253_v12 = vld [vmem:[#allocation2 + $0x1a0] ss:$16 sps:$4 sm:$0xff]  }
 0x9ef   :  { %2727 = vmatpush1.bf16.msra.mxu1 %v6938_v11  ;;  %2758 = vmatprep.mubr.bf16.mxu1 %v8595_v36  ;;  %8959 = vst [vmem:[#allocation32_spill] sm:$0xff] %v7253_v12 }
 0x9f0   :  { %2728 = vmatprep.subr.bf16.mxu1 %v6942_v35 }
 0x9f1   :  { %2688 = vmatpush1.bf16.msra.mxu0 %v6945_v51 }
 0x9f2   :  { %2689 = vmatprep.subr.bf16.mxu0 %v6948_v1 }
 0x9f3   :  { %2729 = vmatpush1.bf16.msra.mxu1 %v6951_v41 }
 0x9f4   :  { %2730 = vmatprep.subr.bf16.mxu1 %v6954_v55 }
 0x9f5   :  { %2690 = vmatpush1.bf16.msra.mxu0 %v6957_v54 }
 0x9f6   :  { %2691 = vmatprep.subr.bf16.mxu0 %v6960_v58 }
 0x9f7   :  { %2731 = vmatpush1.bf16.msra.mxu1 %v8936_v59 }
 0x9f8   :  { %2732 = vmatprep.subr.bf16.mxu1 %v8937_v18 }
 0x9f9   :  { %2692 = vmatpush1.bf16.msra.mxu0 %v8938_v21 }
 0x9fa   :  { %2693 = vmatprep.subr.bf16.mxu0 %v8939_v44 }
 0x9fb   :  { %2733 = vmatpush1.bf16.msra.mxu1 %v8940_v31 }
 0x9fc   :  { %2734 = vmatprep.subr.bf16.mxu1 %v8941_v0 }
 0x9fd   :  { %2694 = vmatpush1.bf16.msra.mxu0 %v6981_v61 }
 0x9fe   :  { %2695 = vmatprep.subr.bf16.mxu0 %v6984_v33 }
 0x9ff   :  { %2735 = vmatpush1.bf16.msra.mxu1 %v6987_v57 }
 0xa00   :  { %2736 = vmatprep.subr.bf16.mxu1 %v6990_v62 }
 0xa01   :  { %2696 = vmatpush1.bf16.msra.mxu0 %v6993_v13 }
 0xa02   :  { %2697 = vmatprep.subr.bf16.mxu0 %v7196_v22 }
 0xa03   :  { %2737 = vmatpush1.bf16.msra.mxu1 %v6997_v63 }
 0xa04   :  { %2738 = vmatprep.subr.bf16.mxu1 %v7200_v23 }
 0xa05   :  { %2698 = vmatpush1.bf16.msra.mxu0 %v7203_v25 }
 0xa06   :  { %2699 = vmatprep.subr.bf16.mxu0 %v7206_v29 }
 0xa07   :  { %2739 = vmatpush1.bf16.msra.mxu1 %v7209_v38 }
 0xa08   :  { %2740 = vmatprep.subr.bf16.mxu1 %v7212_v20 }
 0xa09   :  { %2700 = vmatpush1.bf16.msra.mxu0 %v7215_v49  ;;  %v9015_v49 = vld [vmem:[#allocation55_spill] sm:$0xff] }
 0xa0a   :  { %2787 = vmatprep.subr.bf16.mxu0 %v7218_v24 }
 0xa0b   :  { %2741 = vmatpush1.bf16.msra.mxu1 %v7221_v5 }
 0xa0c   :  { %2718 = vmatmul.mubr.bf16.vlgmr.msra.gmra.mxu0 %v7093_v2  ;;  %2828 = vmatprep.subr.bf16.mxu1 %v7225_v6 }
 0xa0d   :  { %2819 = vmatprep.mubr.bf16.mxu0 %v2538_v30  ;;  %2788 = vmatpush1.bf16.msra.mxu0 %v7228_v7 }
 0xa0e   :  { %2759 = vmatmul.mubr.bf16.vlgmr.msra.gmra.mxu1 %v7093_v2  ;;  %2789 = vmatprep.subr.bf16.mxu0 %v7232_v8  ;;  %v7247_v2 = vld [vmem:[#allocation2 + $0x1c8] ss:$16 sps:$4 sm:$0xff]  }
 0xa0f   :  { %2860 = vmatprep.mubr.bf16.mxu1 %v2538_v30  ;;  %2829 = vmatpush1.bf16.msra.mxu1 %v7235_v15  ;;  %8957 = vst [vmem:[#allocation29_spill] sm:$0xff] %v7247_v2  ;;  %v7256_v30 = vld [vmem:[#allocation2 + $0x184] ss:$16 sps:$4 sm:$0xff]  }
 0xa10   :  { %2830 = vmatprep.subr.bf16.mxu1 %v7238_v14  ;;  %8960 = vst [vmem:[#allocation34_spill] sm:$0xff] %v7256_v30 }
 0xa11   :  { %2790 = vmatpush1.bf16.msra.mxu0 %v7241_v16  ;;  %v7259_v16 = vld [vmem:[#allocation2 + $0x1a8] ss:$16 sps:$4 sm:$0xff]  }
 0xa12   :  { %2791 = vmatprep.subr.bf16.mxu0 %v7244_v50  ;;  %8961 = vst [vmem:[#allocation33_spill] sm:$0xff] %v7259_v16  ;;  %v7262_v50 = vld [vmem:[#allocation2 + $0x18c] ss:$16 sps:$4 sm:$0xff]  }
 0xa13   :  { %2831 = vmatpush1.bf16.msra.mxu1 %v7247_v2  ;;  %8962 = vst [vmem:[#allocation35_spill] sm:$0xff] %v7262_v50  ;;  %v7265_v2 = vld [vmem:[#allocation2 + $0x180] ss:$16 sps:$4 sm:$0xff]  }
 0xa14   :  { %2832 = vmatprep.subr.bf16.mxu1 %v7250_v40  ;;  %8963 = vst [vmem:[#allocation36_spill] sm:$0xff] %v7265_v2  ;;  %v7268_v40 = vld [vmem:[#allocation2 + $0x164] ss:$16 sps:$4 sm:$0xff]  }
 0xa15   :  { %2792 = vmatpush1.bf16.msra.mxu0 %v7253_v12  ;;  %8964 = vst [vmem:[#allocation37_spill] sm:$0xff] %v7268_v40  ;;  %v7271_v12 = vld [vmem:[#allocation2 + $0x188] ss:$16 sps:$4 sm:$0xff]  }
 0xa16   :  { %2793 = vmatprep.subr.bf16.mxu0 %v7256_v30  ;;  %8965 = vst [vmem:[#allocation38_spill] sm:$0xff] %v7271_v12  ;;  %v7274_v30 = vld [vmem:[#allocation2 + $0x16c] ss:$16 sps:$4 sm:$0xff]  }
 0xa17   :  { %2833 = vmatpush1.bf16.msra.mxu1 %v7259_v16  ;;  %8966 = vst [vmem:[#allocation40_spill] sm:$0xff] %v7274_v30  ;;  %v7277_v16 = vld [vmem:[#allocation2 + $0x160] ss:$16 sps:$4 sm:$0xff]  }
 0xa18   :  { %2834 = vmatprep.subr.bf16.mxu1 %v7262_v50  ;;  %8967 = vst [vmem:[#allocation39_spill] sm:$0xff] %v7277_v16  ;;  %v7280_v50 = vld [vmem:[#allocation2 + $0x144] ss:$16 sps:$4 sm:$0xff]  }
 0xa19   :  { %2794 = vmatpush1.bf16.msra.mxu0 %v7265_v2  ;;  %8968 = vst [vmem:[#allocation41_spill] sm:$0xff] %v7280_v50  ;;  %v7283_v2 = vld [vmem:[#allocation2 + $0x168] ss:$16 sps:$4 sm:$0xff]  }
 0xa1a   :  { %2795 = vmatprep.subr.bf16.mxu0 %v7268_v40  ;;  %8969 = vst [vmem:[#allocation67_spill] sm:$0xff] %v7283_v2  ;;  %v7286_v40 = vld [vmem:[#allocation2 + $0x14c] ss:$16 sps:$4 sm:$0xff]  }
 0xa1b   :  { %2835 = vmatpush1.bf16.msra.mxu1 %v7271_v12  ;;  %8970 = vst [vmem:[#allocation66_spill] sm:$0xff] %v7286_v40  ;;  %v7289_v12 = vld [vmem:[#allocation2 + $0x140] ss:$16 sps:$4 sm:$0xff]  }
 0xa1c   :  { %2836 = vmatprep.subr.bf16.mxu1 %v7274_v30  ;;  %8971 = vst [vmem:[#allocation69_spill] sm:$0xff] %v7289_v12  ;;  %v7292_v30 = vld [vmem:[#allocation2 + $0x124] ss:$16 sps:$4 sm:$0xff]  }
 0xa1d   :  { %2796 = vmatpush1.bf16.msra.mxu0 %v7277_v16  ;;  %8972 = vst [vmem:[#allocation68_spill] sm:$0xff] %v7292_v30  ;;  %v7295_v16 = vld [vmem:[#allocation2 + $0x148] ss:$16 sps:$4 sm:$0xff]  }
 0xa1e   :  { %2797 = vmatprep.subr.bf16.mxu0 %v7280_v50  ;;  %8973 = vst [vmem:[#allocation71_spill] sm:$0xff] %v7295_v16  ;;  %v7298_v50 = vld [vmem:[#allocation2 + $0x12c] ss:$16 sps:$4 sm:$0xff]  }
 0xa1f   :  { %2837 = vmatpush1.bf16.msra.mxu1 %v7283_v2  ;;  %8974 = vst [vmem:[#allocation70_spill] sm:$0xff] %v7298_v50  ;;  %v7301_v2 = vld [vmem:[#allocation2 + $0x120] ss:$16 sps:$4 sm:$0xff]  }
 0xa20   :  { %2838 = vmatprep.subr.bf16.mxu1 %v7286_v40  ;;  %8975 = vst [vmem:[#allocation73_spill] sm:$0xff] %v7301_v2  ;;  %v7304_v40 = vld [vmem:[#allocation2 + $0x104] ss:$16 sps:$4 sm:$0xff]  }
 0xa21   :  { %2798 = vmatpush1.bf16.msra.mxu0 %v7289_v12  ;;  %8976 = vst [vmem:[#allocation72_spill] sm:$0xff] %v7304_v40  ;;  %v7307_v12 = vld [vmem:[#allocation2 + $0x128] ss:$16 sps:$4 sm:$0xff]  }
 0xa22   :  { %2799 = vmatprep.subr.bf16.mxu0 %v7292_v30  ;;  %8977 = vst [vmem:[#allocation75_spill] sm:$0xff] %v7307_v12  ;;  %v7310_v30 = vld [vmem:[#allocation2 + $0x10c] ss:$16 sps:$4 sm:$0xff]  }
 0xa23   :  { %2839 = vmatpush1.bf16.msra.mxu1 %v7295_v16  ;;  %8978 = vst [vmem:[#allocation74_spill] sm:$0xff] %v7310_v30  ;;  %v7313_v16 = vld [vmem:[#allocation2 + $0x100] ss:$16 sps:$4 sm:$0xff]  }
 0xa24   :  { %2840 = vmatprep.subr.bf16.mxu1 %v7298_v50  ;;  %8979 = vst [vmem:[#allocation77_spill] sm:$0xff] %v7313_v16  ;;  %v7316_v50 = vld [vmem:[#allocation2 + $0x2e4] ss:$16 sps:$4 sm:$0xff]  }
 0xa25   :  { %2800 = vmatpush1.bf16.msra.mxu0 %v7301_v2  ;;  %8980 = vst [vmem:[#allocation76_spill] sm:$0xff] %v7316_v50  ;;  %v7319_v2 = vld [vmem:[#allocation2 + $0x108] ss:$16 sps:$4 sm:$0xff]  }
 0xa26   :  { %2801 = vmatprep.subr.bf16.mxu0 %v7304_v40  ;;  %8981 = vst [vmem:[#allocation79_spill] sm:$0xff] %v7319_v2  ;;  %v7322_v40 = vld [vmem:[#allocation2 + $0x2ec] ss:$16 sps:$4 sm:$0xff]  }
 0xa27   :  { %2841 = vmatpush1.bf16.msra.mxu1 %v7307_v12  ;;  %8982 = vst [vmem:[#allocation78_spill] sm:$0xff] %v7322_v40  ;;  %v7325_v12 = vld [vmem:[#allocation2 + $0x2e0] ss:$16 sps:$4 sm:$0xff]  }
 0xa28   :  { %2842 = vmatprep.subr.bf16.mxu1 %v7310_v30  ;;  %8983 = vst [vmem:[#allocation81_spill] sm:$0xff] %v7325_v12  ;;  %v7328_v30 = vld [vmem:[#allocation2 + $0x2c4] ss:$16 sps:$4 sm:$0xff]  }
 0xa29   :  { %2802 = vmatpush1.bf16.msra.mxu0 %v7313_v16  ;;  %8984 = vst [vmem:[#allocation80_spill] sm:$0xff] %v7328_v30  ;;  %v7331_v16 = vld [vmem:[#allocation2 + $0x2e8] ss:$16 sps:$4 sm:$0xff]  }
 0xa2a   :  { %2803 = vmatprep.subr.bf16.mxu0 %v7316_v50  ;;  %8985 = vst [vmem:[#allocation83_spill] sm:$0xff] %v7331_v16  ;;  %v7334_v50 = vld [vmem:[#allocation2 + $0x2cc] ss:$16 sps:$4 sm:$0xff]  }
 0xa2b   :  { %2843 = vmatpush1.bf16.msra.mxu1 %v7319_v2  ;;  %8986 = vst [vmem:[#allocation82_spill] sm:$0xff] %v7334_v50  ;;  %v7337_v2 = vld [vmem:[#allocation2 + $0x2c0] ss:$16 sps:$4 sm:$0xff]  }
 0xa2c   :  { %2844 = vmatprep.subr.bf16.mxu1 %v7322_v40  ;;  %8987 = vst [vmem:[#allocation85_spill] sm:$0xff] %v7337_v2  ;;  %v7340_v40 = vld [vmem:[#allocation2 + $0x2a4] ss:$16 sps:$4 sm:$0xff]  }
 0xa2d   :  { %2804 = vmatpush2.bf16.msra.mxu0 %v7325_v12  ;;  %8988 = vst [vmem:[#allocation84_spill] sm:$0xff] %v7340_v40  ;;  %v7343_v12 = vld [vmem:[#allocation2 + $0x2c8] ss:$16 sps:$4 sm:$0xff]  }
 0xa2e   :  { %2805 = vmatprep.subr.bf16.mxu0 %v7328_v30  ;;  %8989 = vst [vmem:[#allocation87_spill] sm:$0xff] %v7343_v12  ;;  %v7346_v30 = vld [vmem:[#allocation2 + $0x2ac] ss:$16 sps:$4 sm:$0xff]  }
 0xa2f   :  { %2845 = vmatpush2.bf16.msra.mxu1 %v7331_v16  ;;  %8990 = vst [vmem:[#allocation86_spill] sm:$0xff] %v7346_v30  ;;  %v7349_v16 = vld [vmem:[#allocation2 + $0x2a0] ss:$16 sps:$4 sm:$0xff]  }
 0xa30   :  { %2846 = vmatprep.subr.bf16.mxu1 %v7334_v50  ;;  %8991 = vst [vmem:[#allocation89_spill] sm:$0xff] %v7349_v16  ;;  %v7352_v50 = vld [vmem:[#allocation2 + $0x284] ss:$16 sps:$4 sm:$0xff]  }
 0xa31   :  { %2806 = vmatpush2.bf16.msra.mxu0 %v7337_v2  ;;  %8992 = vst [vmem:[#allocation88_spill] sm:$0xff] %v7352_v50  ;;  %v7355_v2 = vld [vmem:[#allocation2 + $0x2a8] ss:$16 sps:$4 sm:$0xff]  }
 0xa32   :  { %2807 = vmatprep.subr.bf16.mxu0 %v7340_v40  ;;  %8993 = vst [vmem:[#allocation91_spill] sm:$0xff] %v7355_v2  ;;  %v7358_v40 = vld [vmem:[#allocation2 + $0x28c] ss:$16 sps:$4 sm:$0xff]  }
 0xa33   :  { %2847 = vmatpush2.bf16.msra.mxu1 %v7343_v12  ;;  %8994 = vst [vmem:[#allocation90_spill] sm:$0xff] %v7358_v40  ;;  %v7361_v12 = vld [vmem:[#allocation2 + $0x280] ss:$16 sps:$4 sm:$0xff]  }
 0xa34   :  { %2848 = vmatprep.subr.bf16.mxu1 %v7346_v30  ;;  %8995 = vst [vmem:[#allocation93_spill] sm:$0xff] %v7361_v12  ;;  %v7364_v30 = vld [vmem:[#allocation2 + $0x264] ss:$16 sps:$4 sm:$0xff]  }
 0xa35   :  { %2808 = vmatpush2.bf16.msra.mxu0 %v7349_v16  ;;  %8996 = vst [vmem:[#allocation92_spill] sm:$0xff] %v7364_v30  ;;  %v7367_v16 = vld [vmem:[#allocation2 + $0x288] ss:$16 sps:$4 sm:$0xff]  }
 0xa36   :  { %2809 = vmatprep.subr.bf16.mxu0 %v7352_v50  ;;  %8997 = vst [vmem:[#allocation95_spill] sm:$0xff] %v7367_v16  ;;  %v7370_v50 = vld [vmem:[#allocation2 + $0x26c] ss:$16 sps:$4 sm:$0xff]  }
 0xa37   :  { %2849 = vmatpush2.bf16.msra.mxu1 %v7355_v2  ;;  %8998 = vst [vmem:[#allocation94_spill] sm:$0xff] %v7370_v50  ;;  %v7373_v2 = vld [vmem:[#allocation2 + $0x260] ss:$16 sps:$4 sm:$0xff]  }
 0xa38   :  { %2850 = vmatprep.subr.bf16.mxu1 %v7358_v40  ;;  %8999 = vst [vmem:[#allocation97_spill] sm:$0xff] %v7373_v2  ;;  %v7376_v40 = vld [vmem:[#allocation2 + $0x244] ss:$16 sps:$4 sm:$0xff]  }
 0xa39   :  { %2810 = vmatpush2.bf16.msra.mxu0 %v7361_v12  ;;  %9000 = vst [vmem:[#allocation96_spill] sm:$0xff] %v7376_v40  ;;  %v7379_v12 = vld [vmem:[#allocation2 + $0x268] ss:$16 sps:$4 sm:$0xff]  }
 0xa3a   :  { %2811 = vmatprep.subr.bf16.mxu0 %v7364_v30  ;;  %9001 = vst [vmem:[#allocation98_spill] sm:$0xff] %v7379_v12  ;;  %v7382_v30 = vld [vmem:[#allocation2 + $0x24c] ss:$16 sps:$4 sm:$0xff]  }
 0xa3b   :  { %2851 = vmatpush2.bf16.msra.mxu1 %v7367_v16  ;;  %9002 = vst [vmem:[#allocation100_spill] sm:$0xff] %v7382_v30  ;;  %v7385_v16 = vld [vmem:[#allocation2 + $0x240] ss:$16 sps:$4 sm:$0xff]  }
 0xa3c   :  { %2852 = vmatprep.subr.bf16.mxu1 %v7370_v50  ;;  %9003 = vst [vmem:[#allocation101_spill] sm:$0xff] %v7385_v16  ;;  %v7388_v50 = vld [vmem:[#allocation2 + $0x224] ss:$16 sps:$4 sm:$0xff]  }
 0xa3d   :  { %2812 = vmatpush2.bf16.msra.mxu0 %v7373_v2  ;;  %9004 = vst [vmem:[#allocation50_spill] sm:$0xff] %v7388_v50  ;;  %v7391_v2 = vld [vmem:[#allocation2 + $0x248] ss:$16 sps:$4 sm:$0xff]  }
 0xa3e   :  { %2813 = vmatprep.subr.bf16.mxu0 %v7376_v40  ;;  %9005 = vst [vmem:[#allocation52_spill] sm:$0xff] %v7391_v2  ;;  %v7394_v40 = vld [vmem:[#allocation2 + $0x22c] ss:$16 sps:$4 sm:$0xff]  }
 0xa3f   :  { %2853 = vmatpush2.bf16.msra.mxu1 %v7379_v12  ;;  %9006 = vst [vmem:[#allocation51_spill] sm:$0xff] %v7394_v40  ;;  %v7397_v12 = vld [vmem:[#allocation2 + $0x220] ss:$16 sps:$4 sm:$0xff]  }
 0xa40   :  { %2854 = vmatprep.subr.bf16.mxu1 %v7382_v30  ;;  %9007 = vst [vmem:[#allocation53_spill] sm:$0xff] %v7397_v12  ;;  %v7400_v30 = vld [vmem:[#allocation2 + $0x204] ss:$16 sps:$4 sm:$0xff]  }
 0xa41   :  { %2814 = vmatpush2.bf16.msra.mxu0 %v7385_v16  ;;  %9008 = vst [vmem:[#allocation104_spill] sm:$0xff] %v7400_v30  ;;  %v7403_v16 = vld [vmem:[#allocation2 + $0x228] ss:$16 sps:$4 sm:$0xff]  }
 0xa42   :  { %2815 = vmatprep.subr.bf16.mxu0 %v7388_v50  ;;  %9009 = vst [vmem:[#allocation42_spill] sm:$0xff] %v7403_v16  ;;  %v7406_v50 = vld [vmem:[#allocation2 + $0x20c] ss:$16 sps:$4 sm:$0xff]  }
 0xa43   :  { %2855 = vmatpush2.bf16.msra.mxu1 %v7391_v2  ;;  %9010 = vst [vmem:[#allocation105_spill] sm:$0xff] %v7406_v50  ;;  %v7409_v2 = vld [vmem:[#allocation2 + $0x200] ss:$16 sps:$4 sm:$0xff]  }
 0xa44   :  { %2856 = vmatprep.subr.bf16.mxu1 %v7394_v40  ;;  %9011 = vst [vmem:[#allocation44_spill] sm:$0xff] %v7409_v2  ;;  %v7413_v40 = vld [vmem:[#allocation2 + $0x208] ss:$16 sps:$4 sm:$0xff]  }
 0xa45   :  { %2816 = vmatpush2.bf16.msra.mxu0 %v7397_v12  ;;  %9012 = vst [vmem:[#allocation106_spill] sm:$0xff] %v7413_v40 }
 0xa46   :  { %2817 = vmatprep.subr.bf16.mxu0 %v7400_v30 }
 0xa47   :  { %2857 = vmatpush2.bf16.msra.mxu1 %v7403_v16 }
 0xa48   :  { %2858 = vmatprep.subr.bf16.mxu1 %v7406_v50  ;;  %v9013_v50 = vld [vmem:[#allocation54_spill] sm:$0xff] }
 0xa49   :  { %2818 = vmatpush2.bf16.msra.mxu0 %v7409_v2 }
 0xa4a   :  { %4463 = vmatprep.subr.mxu0 %v8528_v37 }
 0xa4b   :  { %2859 = vmatpush2.bf16.msra.mxu1 %v7413_v40  ;;  %v9014_v40 = vld [vmem:[#allocation56_spill] sm:$0xff] }
 0xa4c   :  { %4498 = vmatprep.subr.mxu1 %v8528_v37 }
 0xaac   :  { %v2605_v30 = vpop.f32.mrf.mxu0 }
 0xaad   :  { %v2609_v12 = vadd.f32 %v7078_v26, %v2605_v30  ;;  %v9016_v26 = vld [vmem:[#allocation57_spill] sm:$0xff] }
 0xaae   :  { %v4427_v16 = vpop.f32.mrf.mxu0  ;;  %v2679_v14 = vpop.f32.mrf.mxu1 }
 0xaaf   :  { %v2683_v15 = vadd.f32 %v2679_v14, %v2609_v12 }
 0xab0   :  { %v4462_v8 = vpop.f32.mrf.mxu1 }
 0xab1   :  { %2684 = vst.msk [vmem:[%s8034_s4 + $0x4] sm:$0x1] %vm1299_vm2, %v2683_v15 }
 0xacc   :  { %v2719_v2 = vpop.f32.mrf.mxu0 }
 0xacd   :  { %v2767_v7 = vadd.f32 %v2719_v2, %v9013_v50 }
 0xace   :  { %v2721_v6 = vpop.f32.mrf.mxu0  ;;  %v2760_v5 = vpop.f32.mrf.mxu1 }
 0xacf   :  { %4923 = vtanh.f32 %v2767_v7  ;;  %v2768_v24 = vadd.f32 %v2721_v6, %v9014_v40  ;;  %v2769_v20 = vadd.f32 %v2760_v5, %v9015_v49 }
 0xad0   :  { %v2723_v30 = vpop.f32.mrf.mxu0  ;;  %v2762_v16 = vpop.f32.mrf.mxu1 }
 0xad1   :  { %4925 = vtanh.f32 %v2768_v24  ;;  %v2770_v38 = vadd.f32 %v2762_v16, %v9016_v26 }
 0xad2   :  { %v2724_v14 = vpop.f32.mrf.mxu0  ;;  %v2764_v8 = vpop.f32.mrf.mxu1  ;;  %4927 = vtanh.f32 %v2769_v20 }
 0xad3   :  { %4929 = vtanh.f32 %v2770_v38  ;;  %v7465_v38 = vld [vmem:[%s8033_s3 + $0x68] sm:$0xff]  ;;  %v7479_v8 = vld [vmem:[%s8033_s3 + $0x60] sm:$0xff] }
 0xad4   :  { %v2765_v12 = vpop.f32.mrf.mxu1  ;;  %v7471_v14 = vld [vmem:[%s8033_s3 + $0xe8] sm:$0xff] }
 0xad5   :  { %v7485_v12 = vld [vmem:[%s8033_s3 + $0xe0] sm:$0xff] }
 0xadc   :  { %v4924_v15 = vpop.eup %4923 }
 0xadd   :  { %v2775_v29 = vmul.f32 0.5, %v4924_v15  ;;  %v7493_v15 = vld [vmem:[%s8033_s3 + $0x58] sm:$0xff] }
 0xade   :  { %v4926_v25 = vpop.eup %4925 }
 0xadf   :  { %v2776_v50 = vadd.f32 0.5, %v2775_v29  ;;  %v2777_v2 = vmul.f32 0.5, %v4926_v25  ;;  %v4928_v7 = vpop.eup %4927  ;;  %v7437_v25 = vld [vmem:[%s8033_s3 + $0x78] sm:$0xff]  ;;  %v7457_v29 = vld [vmem:[%s8033_s3 + $0xf0] sm:$0xff] }
 0xae0   :  { %v4930_v24 = vpop.eup %4929 }
 0xae1   :  { %v2778_v23 = vadd.f32 0.5, %v2777_v2  ;;  %v2782_v6 = vmul.f32 %v4928_v7, %v2776_v50  ;;  %v2779_v20 = vmul.f32 0.5, %v4930_v24  ;;  %v7499_v50 = vld [vmem:[%s8033_s3 + $0xd8] sm:$0xff]  ;;  %v7507_v2 = vld [vmem:[%s8033_s3 + $0x50] sm:$0xff]  ;;  %v7535_v24 = vld [vmem:[%s8033_s3 + $0x40] sm:$0xff] }
 0xae2   :  { %v7513_v7 = vld [vmem:[%s8033_s3 + $0xd0] sm:$0xff] }
 0xae3   :  { %v2781_v49 = vmul.f32 %v2778_v23, %v7090_v46  ;;  %v2780_v40 = vadd.f32 0.5, %v2779_v20  ;;  %v7443_v46 = vld [vmem:[%s8033_s3 + $0xf8] sm:$0xff]  ;;  %v7451_v23 = vld [vmem:[%s8033_s3 + $0x70] sm:$0xff]  ;;  %v7541_v20 = vld [vmem:[%s8033_s3 + $0xc0] sm:$0xff] }
 0xae5   :  { %v7427_v5 = vadd.f32 %v2782_v6, %v2781_v49  ;;  %v7521_v6 = vld [vmem:[%s8033_s3 + $0x48] sm:$0xff] }
 0xae6   :  { %v7527_v49 = vld [vmem:[%s8033_s3 + $0xc8] sm:$0xff] }
 0xae7   :  { %4931 = vtanh.f32 %v7427_v5 }
 0xaf4   :  { %v4932_v30 = vpop.eup %4931 }
 0xaf5   :  { %v2785_v26 = vmul.f32 %v4932_v30, %v2780_v40  ;;  %v7549_v40 = vld [vmem:[%s8033_s3 + $0x38] sm:$0xff] }
 0xaf6   :  { %9017 = vst [vmem:[#allocation43_spill] sm:$0xff] %v7549_v40  ;;  %v7555_v30 = vld [vmem:[%s8033_s3 + $0xb8] sm:$0xff] }
 0xaf7   :  { %v7430_v16 = vpack.c.bf16 %v2785_v26, %v2785_v26  ;;  %9018 = vst [vmem:[#allocation45_spill] sm:$0xff] %v7555_v30  ;;  %v7563_v26 = vld [vmem:[%s8033_s3 + $0x30] sm:$0xff] }
 0xaf8   :  { %9019 = vst [vmem:[#allocation5_spill] sm:$0xff] %v7563_v26 }
 0xaf9   :  { %2820 = vmatmul.mubr.bf16.vlgmr.msra.gmra.mxu0 %v7430_v16  ;;  %2861 = vmatmul.mubr.bf16.vlgmr.msra.gmra.mxu1 %v7430_v16 }
 0xafa   :  { %4464 = vmatpush3.msra.mxu0 %v7437_v25  ;;  %4499 = vmatpush3.msra.mxu1 %v7443_v46 }
 0xafb   :  { %4465 = vmatprep.subr.mxu0 %v8528_v37  ;;  %4500 = vmatprep.subr.mxu1 %v8528_v37 }
 0xafc   :  { %4466 = vmatpush3.msra.mxu0 %v7451_v23  ;;  %4501 = vmatpush3.msra.mxu1 %v7457_v29 }
 0xafd   :  { %4467 = vmatprep.subr.mxu0 %v8528_v37  ;;  %4502 = vmatprep.subr.mxu1 %v8528_v37 }
 0xafe   :  { %4468 = vmatpush3.msra.mxu0 %v7465_v38  ;;  %4503 = vmatpush3.msra.mxu1 %v7471_v14 }
 0xaff   :  { %4469 = vmatprep.subr.mxu0 %v8528_v37  ;;  %4504 = vmatprep.subr.mxu1 %v8528_v37 }
 0xb00   :  { %4470 = vmatpush3.msra.mxu0 %v7479_v8  ;;  %4505 = vmatpush3.msra.mxu1 %v7485_v12 }
 0xb01   :  { %4471 = vmatprep.subr.mxu0 %v8528_v37  ;;  %4506 = vmatprep.subr.mxu1 %v8528_v37 }
 0xb02   :  { %4472 = vmatpush3.msra.mxu0 %v7493_v15  ;;  %4507 = vmatpush3.msra.mxu1 %v7499_v50 }
 0xb03   :  { %4473 = vmatprep.subr.mxu0 %v8528_v37  ;;  %4508 = vmatprep.subr.mxu1 %v8528_v37 }
 0xb04   :  { %4474 = vmatpush3.msra.mxu0 %v7507_v2  ;;  %4509 = vmatpush3.msra.mxu1 %v7513_v7 }
 0xb05   :  { %4475 = vmatprep.subr.mxu0 %v8528_v37  ;;  %4510 = vmatprep.subr.mxu1 %v8528_v37 }
 0xb06   :  { %4476 = vmatpush3.msra.mxu0 %v7521_v6  ;;  %4511 = vmatpush3.msra.mxu1 %v7527_v49 }
 0xb07   :  { %4477 = vmatprep.subr.mxu0 %v8528_v37  ;;  %4512 = vmatprep.subr.mxu1 %v8528_v37 }
 0xb08   :  { %4478 = vmatpush3.msra.mxu0 %v7535_v24  ;;  %4513 = vmatpush3.msra.mxu1 %v7541_v20 }
 0xb09   :  { %4479 = vmatprep.subr.mxu0 %v8528_v37  ;;  %4514 = vmatprep.subr.mxu1 %v8528_v37 }
 0xb0a   :  { %4480 = vmatpush3.msra.mxu0 %v7549_v40  ;;  %4515 = vmatpush3.msra.mxu1 %v7555_v30  ;;  %v7572_v30 = vld [vmem:[%s8033_s3 + $0x28] sm:$0xff] }
 0xb0b   :  { %4481 = vmatprep.subr.mxu0 %v8528_v37  ;;  %4516 = vmatprep.subr.mxu1 %v8528_v37  ;;  %9020 = vst [vmem:[#allocation7_spill] sm:$0xff] %v7572_v30 }
 0xb0c   :  { %4482 = vmatpush3.msra.mxu0 %v7563_v26  ;;  %4517 = vmatpush3.msra.mxu1 %v8920_v4  ;;  %v7581_v4 = vld [vmem:[%s8033_s3 + $0x20] sm:$0xff] }
 0xb0d   :  { %4483 = vmatprep.subr.mxu0 %v8528_v37  ;;  %4518 = vmatprep.subr.mxu1 %v8528_v37  ;;  %9021 = vst [vmem:[#allocation8_spill] sm:$0xff] %v7581_v4 }
 0xb0e   :  { %4484 = vmatpush3.msra.mxu0 %v7572_v30  ;;  %4519 = vmatpush3.msra.mxu1 %v8922_v19 }
 0xb0f   :  { %4485 = vmatprep.subr.mxu0 %v8528_v37  ;;  %4520 = vmatprep.subr.mxu1 %v8528_v37 }
 0xb10   :  { %4486 = vmatpush3.msra.mxu0 %v7581_v4  ;;  %4521 = vmatpush3.msra.mxu1 %v8924_v48 }
 0xb11   :  { %4487 = vmatprep.subr.mxu0 %v8528_v37  ;;  %4522 = vmatprep.subr.mxu1 %v8528_v37 }
 0xb12   :  { %4488 = vmatpush3.msra.mxu0 %v8925_v45  ;;  %4523 = vmatpush3.msra.mxu1 %v8926_v3 }
 0xb13   :  { %4489 = vmatprep.subr.mxu0 %v8528_v37  ;;  %4524 = vmatprep.subr.mxu1 %v8528_v37 }
 0xb14   :  { %4490 = vmatpush3.msra.mxu0 %v8927_v47  ;;  %4525 = vmatpush3.msra.mxu1 %v8928_v53 }
 0xb15   :  { %4491 = vmatprep.subr.mxu0 %v8528_v37  ;;  %4526 = vmatprep.subr.mxu1 %v8528_v37 }
 0xb16   :  { %4492 = vmatpush3.msra.mxu0 %v8929_v10  ;;  %4527 = vmatpush3.msra.mxu1 %v8930_v43 }
 0xb17   :  { %4493 = vmatprep.subr.mxu0 %v8528_v37  ;;  %4495 = vmatprep.mubr.msk.f32.mxu0 %vm5292_vm1, %v8528_v37 }
 0xb18   :  { %4494 = vmatpush3.msra.mxu0 %v8931_v42  ;;  %4528 = vmatprep.subr.mxu1 %v8528_v37 }
 0xb19   :  { %3031 = vmatprep.subr.bf16.mxu0 %v8932_v34  ;;  %4529 = vmatpush3.msra.mxu1 %v8933_v39 }
 0xb1a   :  { %4530 = vmatprep.mubr.msk.f32.mxu1 %vm5292_vm1, %v8528_v37  ;;  %3072 = vmatprep.subr.bf16.mxu1 %v8934_v17 }
 0xbb9   :  { %v2821_v19 = vpop.f32.mrf.mxu0  ;;  %v2862_v48 = vpop.f32.mrf.mxu1 }
 0xbba   :  { %v2822_v45 = vadd.f32 %v2821_v19, %v8935_v9  ;;  %v2863_v42 = vadd.f32 %v2862_v48, %v5983_v32 }
 0xbbb   :  { %v2823_v3 = vpop.f32.mrf.mxu0  ;;  %v2864_v47 = vpop.f32.mrf.mxu1 }
 0xbbc   :  { %4933 = vtanh.f32 %v2822_v45  ;;  %v2824_v53 = vadd.f32 %v2823_v3, %v5978_v27  ;;  %v2865_v4 = vadd.f32 %v2864_v47, %v5989_v28 }
 0xbbd   :  { %v2825_v10 = vpop.f32.mrf.mxu0  ;;  %v2866_v43 = vpop.f32.mrf.mxu1 }
 0xbbe   :  { %4935 = vtanh.f32 %v2824_v53 }
 0xbbf   :  { %v2826_v34 = vpop.f32.mrf.mxu0  ;;  %v2867_v39 = vpop.f32.mrf.mxu1  ;;  %4937 = vtanh.f32 %v2863_v42 }
 0xbc0   :  { %4939 = vtanh.f32 %v2865_v4  ;;  %v9049_v4 = vld [vmem:[#allocation67_spill] sm:$0xff] }
 0xbc9   :  { %v4934_v17 = vpop.eup %4933 }
 0xbca   :  { %v2873_v30 = vmul.f32 0.5, %v4934_v17  ;;  %v9050_v17 = vld [vmem:[#allocation66_spill] sm:$0xff] }
 0xbcb   :  { %v4936_v26 = vpop.eup %4935 }
 0xbcc   :  { %v2874_v40 = vadd.f32 0.5, %v2873_v30  ;;  %v2875_v19 = vmul.f32 0.5, %v4936_v26  ;;  %v4938_v45 = vpop.eup %4937  ;;  %v9047_v30 = vld [vmem:[#allocation39_spill] sm:$0xff]  ;;  %v9048_v26 = vld [vmem:[#allocation41_spill] sm:$0xff] }
 0xbcd   :  { %v4940_v48 = vpop.eup %4939 }
 0xbce   :  { %v2876_v9 = vadd.f32 0.5, %v2875_v19  ;;  %v2880_v10 = vmul.f32 %v4938_v45, %v2874_v40  ;;  %v2877_v53 = vmul.f32 0.5, %v4940_v48  ;;  %v9046_v40 = vld [vmem:[#allocation40_spill] sm:$0xff]  ;;  %v9051_v19 = vld [vmem:[#allocation69_spill] sm:$0xff] }
 0xbcf   :  { %v9052_v45 = vld [vmem:[#allocation68_spill] sm:$0xff]  ;;  %v9055_v48 = vld [vmem:[#allocation73_spill] sm:$0xff] }
 0xbd0   :  { %v2879_v3 = vmul.f32 %v2876_v9, %v7170_v56  ;;  %v2878_v42 = vadd.f32 0.5, %v2877_v53  ;;  %v9037_v9 = vld [vmem:[#allocation29_spill] sm:$0xff]  ;;  %v9038_v56 = vld [vmem:[#allocation31_spill] sm:$0xff]  ;;  %v9056_v53 = vld [vmem:[#allocation72_spill] sm:$0xff] }
 0xbd2   :  { %v7612_v43 = vadd.f32 %v2880_v10, %v2879_v3  ;;  %v9053_v3 = vld [vmem:[#allocation71_spill] sm:$0xff]  ;;  %v9054_v10 = vld [vmem:[#allocation70_spill] sm:$0xff] }
 0xbd4   :  { %4941 = vtanh.f32 %v7612_v43 }
 0xbe1   :  { %v4942_v34 = vpop.eup %4941 }
 0xbe2   :  { %v2883_v47 = vmul.f32 %v4942_v34, %v2878_v42  ;;  %v9057_v42 = vld [vmem:[#allocation75_spill] sm:$0xff]  ;;  %v9058_v34 = vld [vmem:[#allocation74_spill] sm:$0xff] }
 0xbe4   :  { %4496 = vmatmul.mubr.f32.vlgmr.msra.gmra.mxu0 %v2883_v47  ;;  %v2957_v39 = vrot.slane %v2883_v47, 1 }
 0xbe5   :  { %3032 = vmatpush1.bf16.msra.mxu0 %v6931_v52  ;;  %3063 = vmatprep.mubr.bf16.mxu0 %v8595_v36  ;;  %v9022_v52 = vld [vmem:[#allocation21_spill] sm:$0xff] }
 0xbe6   :  { %4531 = vmatmul.mubr.f32.vlgmr.msra.gmra.mxu1 %v2957_v39  ;;  %3033 = vmatprep.subr.bf16.mxu0 %v6935_v60  ;;  %v9023_v60 = vld [vmem:[#allocation23_spill] sm:$0xff]  ;;  %v9060_v39 = vld [vmem:[#allocation76_spill] sm:$0xff] }
 0xbe7   :  { %3073 = vmatpush1.bf16.msra.mxu1 %v6938_v11  ;;  %3104 = vmatprep.mubr.bf16.mxu1 %v8595_v36  ;;  %v9024_v11 = vld [vmem:[#allocation24_spill] sm:$0xff] }
 0xbe8   :  { %3074 = vmatprep.subr.bf16.mxu1 %v6942_v35  ;;  %v9025_v35 = vld [vmem:[#allocation26_spill] sm:$0xff] }
 0xbe9   :  { %3034 = vmatpush1.bf16.msra.mxu0 %v6945_v51  ;;  %v9026_v51 = vld [vmem:[#allocation6_spill] sm:$0xff] }
 0xbea   :  { %3035 = vmatprep.subr.bf16.mxu0 %v6948_v1  ;;  %v9027_v1 = vld [vmem:[#allocation46_spill] sm:$0xff] }
 0xbeb   :  { %3075 = vmatpush1.bf16.msra.mxu1 %v6951_v41  ;;  %v9028_v41 = vld [vmem:[#allocation48_spill] sm:$0xff] }
 0xbec   :  { %3076 = vmatprep.subr.bf16.mxu1 %v6954_v55  ;;  %v9029_v55 = vld [vmem:[#allocation47_spill] sm:$0xff] }
 0xbed   :  { %3036 = vmatpush1.bf16.msra.mxu0 %v6957_v54  ;;  %v2884_v54 = vpack.c.bf16 %v2883_v47, %v2883_v47  ;;  %v9059_v47 = vld [vmem:[#allocation77_spill] sm:$0xff] }
 0xbee   :  { %3037 = vmatprep.subr.bf16.mxu0 %v6960_v58  ;;  %v9030_v58 = vld [vmem:[#allocation49_spill] sm:$0xff] }
 0xbef   :  { %3077 = vmatpush1.bf16.msra.mxu1 %v8936_v59  ;;  %v9039_v59 = vld [vmem:[#allocation32_spill] sm:$0xff] }
 0xbf0   :  { %3078 = vmatprep.subr.bf16.mxu1 %v8937_v18  ;;  %v9040_v18 = vld [vmem:[#allocation34_spill] sm:$0xff] }
 0xbf1   :  { %3038 = vmatpush1.bf16.msra.mxu0 %v8938_v21  ;;  %v9041_v21 = vld [vmem:[#allocation33_spill] sm:$0xff] }
 0xbf2   :  { %3039 = vmatprep.subr.bf16.mxu0 %v8939_v44  ;;  %v9042_v44 = vld [vmem:[#allocation35_spill] sm:$0xff] }
 0xbf3   :  { %3079 = vmatpush1.bf16.msra.mxu1 %v8940_v31  ;;  %v9043_v31 = vld [vmem:[#allocation36_spill] sm:$0xff] }
 0xbf4   :  { %3080 = vmatprep.subr.bf16.mxu1 %v8941_v0  ;;  %v9044_v0 = vld [vmem:[#allocation37_spill] sm:$0xff] }
 0xbf5   :  { %3040 = vmatpush1.bf16.msra.mxu0 %v6981_v61  ;;  %v9031_v61 = vld [vmem:[#allocation102_spill] sm:$0xff] }
 0xbf6   :  { %3041 = vmatprep.subr.bf16.mxu0 %v6984_v33  ;;  %v9032_v33 = vld [vmem:[#allocation103_spill] sm:$0xff] }
 0xbf7   :  { %3081 = vmatpush1.bf16.msra.mxu1 %v6987_v57  ;;  %v9033_v57 = vld [vmem:[#allocation25_spill] sm:$0xff] }
 0xbf8   :  { %3082 = vmatprep.subr.bf16.mxu1 %v6990_v62  ;;  %v9034_v62 = vld [vmem:[#allocation27_spill] sm:$0xff] }
 0xbf9   :  { %3042 = vmatpush1.bf16.msra.mxu0 %v6993_v13  ;;  %v9035_v13 = vld [vmem:[#allocation28_spill] sm:$0xff] }
 0xbfa   :  { %3043 = vmatprep.subr.bf16.mxu0 %v7196_v22 }
 0xbfb   :  { %3083 = vmatpush1.bf16.msra.mxu1 %v6997_v63  ;;  %v9036_v63 = vld [vmem:[#allocation30_spill] sm:$0xff] }
 0xbfc   :  { %3084 = vmatprep.subr.bf16.mxu1 %v9022_v52 }
 0xbfd   :  { %3044 = vmatpush1.bf16.msra.mxu0 %v9023_v60 }
 0xbfe   :  { %3045 = vmatprep.subr.bf16.mxu0 %v9024_v11 }
 0xbff   :  { %3085 = vmatpush1.bf16.msra.mxu1 %v9025_v35 }
 0xc00   :  { %3086 = vmatprep.subr.bf16.mxu1 %v9026_v51 }
 0xc01   :  { %3046 = vmatpush1.bf16.msra.mxu0 %v9027_v1 }
 0xc02   :  { %3133 = vmatprep.subr.bf16.mxu0 %v9028_v41 }
 0xc03   :  { %3087 = vmatpush1.bf16.msra.mxu1 %v9029_v55 }
 0xc04   :  { %3064 = vmatmul.mubr.bf16.vlgmr.msra.gmra.mxu0 %v7430_v16  ;;  %3174 = vmatprep.subr.bf16.mxu1 %v9030_v58 }
 0xc05   :  { %3165 = vmatprep.mubr.bf16.mxu0 %v2884_v54  ;;  %3134 = vmatpush1.bf16.msra.mxu0 %v9031_v61 }
 0xc06   :  { %3105 = vmatmul.mubr.bf16.vlgmr.msra.gmra.mxu1 %v7430_v16  ;;  %3135 = vmatprep.subr.bf16.mxu0 %v9032_v33  ;;  %v9045_v16 = vld [vmem:[#allocation38_spill] sm:$0xff] }
 0xc07   :  { %3206 = vmatprep.mubr.bf16.mxu1 %v2884_v54  ;;  %3175 = vmatpush1.bf16.msra.mxu1 %v9033_v57  ;;  %v9061_v54 = vld [vmem:[#allocation79_spill] sm:$0xff] }
 0xc08   :  { %3176 = vmatprep.subr.bf16.mxu1 %v9034_v62 }
 0xc09   :  { %3136 = vmatpush1.bf16.msra.mxu0 %v9035_v13 }
 0xc0a   :  { %3137 = vmatprep.subr.bf16.mxu0 %v9036_v63 }
 0xc0b   :  { %3177 = vmatpush1.bf16.msra.mxu1 %v9037_v9 }
 0xc0c   :  { %3178 = vmatprep.subr.bf16.mxu1 %v9038_v56 }
 0xc0d   :  { %3138 = vmatpush1.bf16.msra.mxu0 %v9039_v59 }
 0xc0e   :  { %3139 = vmatprep.subr.bf16.mxu0 %v9040_v18 }
 0xc0f   :  { %3179 = vmatpush1.bf16.msra.mxu1 %v9041_v21 }
 0xc10   :  { %3180 = vmatprep.subr.bf16.mxu1 %v9042_v44 }
 0xc11   :  { %3140 = vmatpush1.bf16.msra.mxu0 %v9043_v31 }
 0xc12   :  { %3141 = vmatprep.subr.bf16.mxu0 %v9044_v0 }
 0xc13   :  { %3181 = vmatpush1.bf16.msra.mxu1 %v9045_v16 }
 0xc14   :  { %3182 = vmatprep.subr.bf16.mxu1 %v9046_v40 }
 0xc15   :  { %3142 = vmatpush1.bf16.msra.mxu0 %v9047_v30  ;;  %v9096_v30 = vld [vmem:[#allocation59_spill] sm:$0xff] }
 0xc16   :  { %3143 = vmatprep.subr.bf16.mxu0 %v9048_v26 }
 0xc17   :  { %3183 = vmatpush1.bf16.msra.mxu1 %v9049_v4 }
 0xc18   :  { %3184 = vmatprep.subr.bf16.mxu1 %v9050_v17 }
 0xc19   :  { %3144 = vmatpush1.bf16.msra.mxu0 %v9051_v19  ;;  %v9062_v19 = vld [vmem:[#allocation78_spill] sm:$0xff] }
 0xc1a   :  { %3145 = vmatprep.subr.bf16.mxu0 %v9052_v45  ;;  %v9063_v45 = vld [vmem:[#allocation81_spill] sm:$0xff] }
 0xc1b   :  { %3185 = vmatpush1.bf16.msra.mxu1 %v9053_v3  ;;  %v9064_v3 = vld [vmem:[#allocation80_spill] sm:$0xff] }
 0xc1c   :  { %3186 = vmatprep.subr.bf16.mxu1 %v9054_v10  ;;  %v9065_v10 = vld [vmem:[#allocation83_spill] sm:$0xff] }
 0xc1d   :  { %3146 = vmatpush1.bf16.msra.mxu0 %v9055_v48  ;;  %v9066_v48 = vld [vmem:[#allocation82_spill] sm:$0xff] }
 0xc1e   :  { %3147 = vmatprep.subr.bf16.mxu0 %v9056_v53  ;;  %v9067_v53 = vld [vmem:[#allocation85_spill] sm:$0xff] }
 0xc1f   :  { %3187 = vmatpush1.bf16.msra.mxu1 %v9057_v42  ;;  %v9068_v42 = vld [vmem:[#allocation84_spill] sm:$0xff] }
 0xc20   :  { %3188 = vmatprep.subr.bf16.mxu1 %v9058_v34  ;;  %v9069_v34 = vld [vmem:[#allocation87_spill] sm:$0xff] }
 0xc21   :  { %3148 = vmatpush1.bf16.msra.mxu0 %v9059_v47  ;;  %v9070_v47 = vld [vmem:[#allocation86_spill] sm:$0xff] }
 0xc22   :  { %3149 = vmatprep.subr.bf16.mxu0 %v9060_v39  ;;  %v9071_v39 = vld [vmem:[#allocation89_spill] sm:$0xff] }
 0xc23   :  { %3189 = vmatpush1.bf16.msra.mxu1 %v9061_v54  ;;  %v9072_v54 = vld [vmem:[#allocation88_spill] sm:$0xff] }
 0xc24   :  { %3190 = vmatprep.subr.bf16.mxu1 %v9062_v19  ;;  %v9073_v19 = vld [vmem:[#allocation91_spill] sm:$0xff] }
 0xc25   :  { %3150 = vmatpush2.bf16.msra.mxu0 %v9063_v45  ;;  %v9074_v45 = vld [vmem:[#allocation90_spill] sm:$0xff] }
 0xc26   :  { %3151 = vmatprep.subr.bf16.mxu0 %v9064_v3  ;;  %v9075_v3 = vld [vmem:[#allocation93_spill] sm:$0xff] }
 0xc27   :  { %3191 = vmatpush2.bf16.msra.mxu1 %v9065_v10  ;;  %v9076_v10 = vld [vmem:[#allocation92_spill] sm:$0xff] }
 0xc28   :  { %3192 = vmatprep.subr.bf16.mxu1 %v9066_v48  ;;  %v9077_v48 = vld [vmem:[#allocation95_spill] sm:$0xff] }
 0xc29   :  { %3152 = vmatpush2.bf16.msra.mxu0 %v9067_v53  ;;  %v9078_v53 = vld [vmem:[#allocation94_spill] sm:$0xff] }
 0xc2a   :  { %3153 = vmatprep.subr.bf16.mxu0 %v9068_v42  ;;  %v9079_v42 = vld [vmem:[#allocation97_spill] sm:$0xff] }
 0xc2b   :  { %3193 = vmatpush2.bf16.msra.mxu1 %v9069_v34  ;;  %v9080_v34 = vld [vmem:[#allocation96_spill] sm:$0xff] }
 0xc2c   :  { %3194 = vmatprep.subr.bf16.mxu1 %v9070_v47  ;;  %v9081_v47 = vld [vmem:[#allocation98_spill] sm:$0xff] }
 0xc2d   :  { %3154 = vmatpush2.bf16.msra.mxu0 %v9071_v39  ;;  %v9082_v39 = vld [vmem:[#allocation100_spill] sm:$0xff] }
 0xc2e   :  { %3155 = vmatprep.subr.bf16.mxu0 %v9072_v54  ;;  %v9083_v54 = vld [vmem:[#allocation101_spill] sm:$0xff] }
 0xc2f   :  { %3195 = vmatpush2.bf16.msra.mxu1 %v9073_v19  ;;  %v9084_v19 = vld [vmem:[#allocation50_spill] sm:$0xff] }
 0xc30   :  { %3196 = vmatprep.subr.bf16.mxu1 %v9074_v45  ;;  %v9085_v45 = vld [vmem:[#allocation52_spill] sm:$0xff] }
 0xc31   :  { %3156 = vmatpush2.bf16.msra.mxu0 %v9075_v3  ;;  %v9086_v3 = vld [vmem:[#allocation51_spill] sm:$0xff] }
 0xc32   :  { %3157 = vmatprep.subr.bf16.mxu0 %v9076_v10  ;;  %v9087_v10 = vld [vmem:[#allocation53_spill] sm:$0xff] }
 0xc33   :  { %3197 = vmatpush2.bf16.msra.mxu1 %v9077_v48  ;;  %v9088_v48 = vld [vmem:[#allocation104_spill] sm:$0xff] }
 0xc34   :  { %3198 = vmatprep.subr.bf16.mxu1 %v9078_v53  ;;  %v9089_v53 = vld [vmem:[#allocation42_spill] sm:$0xff] }
 0xc35   :  { %3158 = vmatpush2.bf16.msra.mxu0 %v9079_v42  ;;  %v9090_v42 = vld [vmem:[#allocation105_spill] sm:$0xff] }
 0xc36   :  { %3159 = vmatprep.subr.bf16.mxu0 %v9080_v34  ;;  %v9091_v34 = vld [vmem:[#allocation44_spill] sm:$0xff] }
 0xc37   :  { %3199 = vmatpush2.bf16.msra.mxu1 %v9081_v47 }
 0xc38   :  { %3200 = vmatprep.subr.bf16.mxu1 %v9082_v39  ;;  %v9092_v39 = vld [vmem:[#allocation106_spill] sm:$0xff] }
 0xc39   :  { %3160 = vmatpush2.bf16.msra.mxu0 %v9083_v54 }
 0xc3a   :  { %3161 = vmatprep.subr.bf16.mxu0 %v9084_v19 }
 0xc3b   :  { %3201 = vmatpush2.bf16.msra.mxu1 %v9085_v45  ;;  %v9093_v45 = vld [vmem:[#allocation22_spill] sm:$0xff] }
 0xc3c   :  { %3202 = vmatprep.subr.bf16.mxu1 %v9086_v3 }
 0xc3d   :  { %3162 = vmatpush2.bf16.msra.mxu0 %v9087_v10 }
 0xc3e   :  { %3163 = vmatprep.subr.bf16.mxu0 %v9088_v48 }
 0xc3f   :  { %3203 = vmatpush2.bf16.msra.mxu1 %v9089_v53 }
 0xc40   :  { %3204 = vmatprep.subr.bf16.mxu1 %v9090_v42 }
 0xc41   :  { %3164 = vmatpush2.bf16.msra.mxu0 %v9091_v34  ;;  %v9094_v34 = vld [vmem:[#allocation58_spill] sm:$0xff] }
 0xc42   :  { %4533 = vmatprep.subr.mxu0 %v8528_v37 }
 0xc43   :  { %3205 = vmatpush2.bf16.msra.mxu1 %v9092_v39  ;;  %v9095_v39 = vld [vmem:[#allocation60_spill] sm:$0xff] }
 0xc44   :  { %4568 = vmatprep.subr.mxu1 %v8528_v37 }
 0xca4   :  { %v2951_v19 = vpop.f32.mrf.mxu0 }
 0xca5   :  { %v2955_v54 = vadd.f32 %v9093_v45, %v2951_v19 }
 0xca6   :  { %v4497_v3 = vpop.f32.mrf.mxu0  ;;  %v3025_v47 = vpop.f32.mrf.mxu1 }
 0xca7   :  { %v3029_v10 = vadd.f32 %v3025_v47, %v2955_v54  ;;  %v9097_v54 = vld [vmem:[#allocation61_spill] sm:$0xff] }
 0xca8   :  { %v4532_v17 = vpop.f32.mrf.mxu1 }
 0xca9   :  { %3030 = vst.msk [vmem:[%s8034_s4 + $0x5] sm:$0x1] %vm1299_vm2, %v3029_v10 }
 0xcc4   :  { %v3065_v42 = vpop.f32.mrf.mxu0 }
 0xcc5   :  { %v3113_v53 = vadd.f32 %v3065_v42, %v9094_v34 }
 0xcc6   :  { %v3067_v48 = vpop.f32.mrf.mxu0  ;;  %v3106_v4 = vpop.f32.mrf.mxu1 }
 0xcc7   :  { %4943 = vtanh.f32 %v3113_v53  ;;  %v3114_v26 = vadd.f32 %v3067_v48, %v9095_v39  ;;  %v3115_v40 = vadd.f32 %v3106_v4, %v9096_v30 }
 0xcc8   :  { %v3069_v19 = vpop.f32.mrf.mxu0  ;;  %v3108_v45 = vpop.f32.mrf.mxu1 }
 0xcc9   :  { %4945 = vtanh.f32 %v3114_v26  ;;  %v3116_v16 = vadd.f32 %v3108_v45, %v9097_v54  ;;  %v7790_v54 = vld [vmem:[%s8033_s3 + $0xa0] sm:$0xff] }
 0xcca   :  { %v3070_v3 = vpop.f32.mrf.mxu0  ;;  %v3110_v17 = vpop.f32.mrf.mxu1  ;;  %4947 = vtanh.f32 %v3115_v40  ;;  %9105 = vst [vmem:[#allocation11_spill] sm:$0xff] %v7790_v54 }
 0xccb   :  { %4949 = vtanh.f32 %v3116_v16  ;;  %v9102_v16 = vld [vmem:[#allocation7_spill] sm:$0xff]  ;;  %v7781_v17 = vld [vmem:[%s8033_s3 + $0xa8] sm:$0xff] }
 0xccc   :  { %v3111_v47 = vpop.f32.mrf.mxu1  ;;  %9103 = vst [vmem:[#allocation9_spill] sm:$0xff] %v7781_v17 }
 0xccd   :  { %v9104_v47 = vld [vmem:[#allocation8_spill] sm:$0xff] }
 0xcd4   :  { %v4944_v10 = vpop.eup %4943 }
 0xcd5   :  { %v3121_v0 = vmul.f32 0.5, %v4944_v10  ;;  %v7798_v10 = vld [vmem:[%s8033_s3 + $0x18] sm:$0xff] }
 0xcd6   :  { %v4946_v31 = vpop.eup %4945  ;;  %9106 = vst [vmem:[#allocation12_spill] sm:$0xff] %v7798_v10 }
 0xcd7   :  { %v3122_v42 = vadd.f32 0.5, %v3121_v0  ;;  %v3123_v34 = vmul.f32 0.5, %v4946_v31  ;;  %v4948_v53 = vpop.eup %4947  ;;  %v9100_v31 = vld [vmem:[#allocation5_spill] sm:$0xff]  ;;  %v7772_v0 = vld [vmem:[%s8033_s3 + $0xb0] sm:$0xff] }
 0xcd8   :  { %v4950_v26 = vpop.eup %4949  ;;  %9101 = vst [vmem:[#allocation10_spill] sm:$0xff] %v7772_v0 }
 0xcd9   :  { %v3124_v44 = vadd.f32 0.5, %v3123_v34  ;;  %v3128_v48 = vmul.f32 %v4948_v53, %v3122_v42  ;;  %v3125_v40 = vmul.f32 0.5, %v4950_v26  ;;  %v7804_v42 = vld [vmem:[%s8033_s3 + $0x98] sm:$0xff]  ;;  %v7812_v34 = vld [vmem:[%s8033_s3 + $0x10] sm:$0xff]  ;;  %v7841_v26 = vld [vmem:[%s8033_s3] sm:$0xff] }
 0xcda   :  { %9107 = vst [vmem:[#allocation14_spill] sm:$0xff] %v7804_v42  ;;  %9108 = vst [vmem:[#allocation13_spill] sm:$0xff] %v7812_v34  ;;  %v7818_v53 = vld [vmem:[%s8033_s3 + $0x90] sm:$0xff] }
 0xcdb   :  { %v3127_v30 = vmul.f32 %v3124_v44, %v7427_v5  ;;  %v3126_v39 = vadd.f32 0.5, %v3125_v40  ;;  %v9098_v5 = vld [vmem:[#allocation43_spill] sm:$0xff]  ;;  %v9099_v44 = vld [vmem:[#allocation45_spill] sm:$0xff]  ;;  %9109 = vst [vmem:[#allocation15_spill] sm:$0xff] %v7818_v53  ;;  %9112 = vst [vmem:[#allocation17_spill] sm:$0xff] %v7841_v26 }
 0xcdc   :  { %v5239_v40 = vld [vmem:[#allocation2 + $0xe4] ss:$16 sps:$4 sm:$0xff]  }
 0xcdd   :  { %v7725_v4 = vadd.f32 %v3128_v48, %v3127_v30  ;;  %v7826_v48 = vld [vmem:[%s8033_s3 + $0x8] sm:$0xff] }
 0xcde   :  { %9110 = vst [vmem:[#allocation16_spill] sm:$0xff] %v7826_v48  ;;  %v7832_v30 = vld [vmem:[%s8033_s3 + $0x88] sm:$0xff] }
 0xcdf   :  { %4951 = vtanh.f32 %v7725_v4  ;;  %9111 = vst [vmem:[#allocation18_spill] sm:$0xff] %v7832_v30 }
 0xcec   :  { %v4952_v19 = vpop.eup %4951 }
 0xced   :  { %v3131_v45 = vmul.f32 %v4952_v19, %v3126_v39  ;;  %v7848_v39 = vld [vmem:[%s8033_s3 + $0x80] sm:$0xff]  ;;  %v5241_v19 = vld [vmem:[#allocation2 + $0xec] ss:$16 sps:$4 sm:$0xff]  }
 0xcee   :  { %9113 = vst [vmem:[#allocation19_spill] sm:$0xff] %v7848_v39 }
 0xcef   :  { %v7728_v3 = vpack.c.bf16 %v3131_v45, %v3131_v45 }
 0xcf1   :  { %3166 = vmatmul.mubr.bf16.vlgmr.msra.gmra.mxu0 %v7728_v3  ;;  %3207 = vmatmul.mubr.bf16.vlgmr.msra.gmra.mxu1 %v7728_v3 }
 0xcf2   :  { %4534 = vmatpush3.msra.mxu0 %v7437_v25  ;;  %4569 = vmatpush3.msra.mxu1 %v7443_v46 }
 0xcf3   :  { %4535 = vmatprep.subr.mxu0 %v8528_v37  ;;  %4570 = vmatprep.subr.mxu1 %v8528_v37 }
 0xcf4   :  { %4536 = vmatpush3.msra.mxu0 %v7451_v23  ;;  %4571 = vmatpush3.msra.mxu1 %v7457_v29 }
 0xcf5   :  { %4537 = vmatprep.subr.mxu0 %v8528_v37  ;;  %4572 = vmatprep.subr.mxu1 %v8528_v37 }
 0xcf6   :  { %4538 = vmatpush3.msra.mxu0 %v7465_v38  ;;  %4573 = vmatpush3.msra.mxu1 %v7471_v14 }
 0xcf7   :  { %4539 = vmatprep.subr.mxu0 %v8528_v37  ;;  %4574 = vmatprep.subr.mxu1 %v8528_v37 }
 0xcf8   :  { %4540 = vmatpush3.msra.mxu0 %v7479_v8  ;;  %4575 = vmatpush3.msra.mxu1 %v7485_v12 }
 0xcf9   :  { %4541 = vmatprep.subr.mxu0 %v8528_v37  ;;  %4576 = vmatprep.subr.mxu1 %v8528_v37 }
 0xcfa   :  { %4542 = vmatpush3.msra.mxu0 %v7493_v15  ;;  %4577 = vmatpush3.msra.mxu1 %v7499_v50 }
 0xcfb   :  { %4543 = vmatprep.subr.mxu0 %v8528_v37  ;;  %4578 = vmatprep.subr.mxu1 %v8528_v37 }
 0xcfc   :  { %4544 = vmatpush3.msra.mxu0 %v7507_v2  ;;  %4579 = vmatpush3.msra.mxu1 %v7513_v7 }
 0xcfd   :  { %4545 = vmatprep.subr.mxu0 %v8528_v37  ;;  %4580 = vmatprep.subr.mxu1 %v8528_v37 }
 0xcfe   :  { %4546 = vmatpush3.msra.mxu0 %v7521_v6  ;;  %4581 = vmatpush3.msra.mxu1 %v7527_v49 }
 0xcff   :  { %4547 = vmatprep.subr.mxu0 %v8528_v37  ;;  %4582 = vmatprep.subr.mxu1 %v8528_v37 }
 0xd00   :  { %4548 = vmatpush3.msra.mxu0 %v7535_v24  ;;  %4583 = vmatpush3.msra.mxu1 %v7541_v20 }
 0xd01   :  { %4549 = vmatprep.subr.mxu0 %v8528_v37  ;;  %4584 = vmatprep.subr.mxu1 %v8528_v37 }
 0xd02   :  { %4550 = vmatpush3.msra.mxu0 %v9098_v5  ;;  %4585 = vmatpush3.msra.mxu1 %v9099_v44 }
 0xd03   :  { %4551 = vmatprep.subr.mxu0 %v8528_v37  ;;  %4586 = vmatprep.subr.mxu1 %v8528_v37 }
 0xd04   :  { %4552 = vmatpush3.msra.mxu0 %v9100_v31  ;;  %4587 = vmatpush3.msra.mxu1 %v7772_v0 }
 0xd05   :  { %4553 = vmatprep.subr.mxu0 %v8528_v37  ;;  %4588 = vmatprep.subr.mxu1 %v8528_v37 }
 0xd06   :  { %4554 = vmatpush3.msra.mxu0 %v9102_v16  ;;  %4589 = vmatpush3.msra.mxu1 %v7781_v17 }
 0xd07   :  { %4555 = vmatprep.subr.mxu0 %v8528_v37  ;;  %4590 = vmatprep.subr.mxu1 %v8528_v37 }
 0xd08   :  { %4556 = vmatpush3.msra.mxu0 %v9104_v47  ;;  %4591 = vmatpush3.msra.mxu1 %v7790_v54 }
 0xd09   :  { %4557 = vmatprep.subr.mxu0 %v8528_v37  ;;  %4592 = vmatprep.subr.mxu1 %v8528_v37 }
 0xd0a   :  { %4558 = vmatpush3.msra.mxu0 %v7798_v10  ;;  %4593 = vmatpush3.msra.mxu1 %v7804_v42 }
 0xd0b   :  { %4559 = vmatprep.subr.mxu0 %v8528_v37  ;;  %4594 = vmatprep.subr.mxu1 %v8528_v37 }
 0xd0c   :  { %4560 = vmatpush3.msra.mxu0 %v7812_v34  ;;  %4595 = vmatpush3.msra.mxu1 %v7818_v53 }
 0xd0d   :  { %4561 = vmatprep.subr.mxu0 %v8528_v37  ;;  %4596 = vmatprep.subr.mxu1 %v8528_v37 }
 0xd0e   :  { %4562 = vmatpush3.msra.mxu0 %v7826_v48  ;;  %4597 = vmatpush3.msra.mxu1 %v7832_v30  ;;  %v9114_v48 = vld [vmem:[#allocation99_spill] sm:$0xff] }
 0xd0f   :  { %4563 = vmatprep.subr.mxu0 %v8528_v37  ;;  %4565 = vmatprep.mubr.msk.f32.mxu0 %vm5292_vm1, %v8528_v37 }
 0xd10   :  { %4564 = vmatpush3.msra.mxu0 %v7841_v26  ;;  %4598 = vmatprep.subr.mxu1 %v8528_v37 }
 0xd11   :  { %3377 = vmatprep.subr.bf16.mxu0 %v5239_v40  ;;  %4599 = vmatpush3.msra.mxu1 %v7848_v39 }
 0xd12   :  { %4600 = vmatprep.mubr.msk.f32.mxu1 %vm5292_vm1, %v8528_v37  ;;  %3418 = vmatprep.subr.bf16.mxu1 %v5241_v19 }
 0xdb1   :  { %v3167_v45 = vpop.f32.mrf.mxu0  ;;  %v3208_v30 = vpop.f32.mrf.mxu1 }
 0xdb2   :  { %v3168_v26 = vadd.f32 %v3167_v45, %v9114_v48  ;;  %v3209_v54 = vadd.f32 %v3208_v30, %v5983_v32 }
 0xdb3   :  { %v3169_v53 = vpop.f32.mrf.mxu0  ;;  %v3210_v34 = vpop.f32.mrf.mxu1 }
 0xdb4   :  { %4953 = vtanh.f32 %v3168_v26  ;;  %v3170_v40 = vadd.f32 %v3169_v53, %v5978_v27  ;;  %v3211_v17 = vadd.f32 %v3210_v34, %v5989_v28 }
 0xdb5   :  { %v3171_v42 = vpop.f32.mrf.mxu0  ;;  %v3212_v10 = vpop.f32.mrf.mxu1 }
 0xdb6   :  { %4955 = vtanh.f32 %v3170_v40 }
 0xdb7   :  { %v3172_v39 = vpop.f32.mrf.mxu0  ;;  %v3213_v47 = vpop.f32.mrf.mxu1  ;;  %4957 = vtanh.f32 %v3209_v54 }
 0xdb8   :  { %4959 = vtanh.f32 %v3211_v17  ;;  %v5247_v17 = vld [vmem:[#allocation2 + $0xa4] ss:$16 sps:$4 sm:$0xff]  }
 0xdc1   :  { %v4954_v19 = vpop.eup %4953 }
 0xdc2   :  { %v3219_v16 = vmul.f32 0.5, %v4954_v19  ;;  %v5242_v19 = vld [vmem:[#allocation2 + $0xe0] ss:$16 sps:$4 sm:$0xff]  }
 0xdc3   :  { %v4956_v0 = vpop.eup %4955 }
 0xdc4   :  { %v3220_v31 = vadd.f32 0.5, %v3219_v16  ;;  %v3221_v45 = vmul.f32 0.5, %v4956_v0  ;;  %v4958_v26 = vpop.eup %4957  ;;  %v5243_v0 = vld [vmem:[#allocation2 + $0xc4] ss:$16 sps:$4 sm:$0xff]   ;;  %v5246_v16 = vld [vmem:[#allocation2 + $0xc0] ss:$16 sps:$4 sm:$0xff]  }
 0xdc5   :  { %v4960_v30 = vpop.eup %4959 }
 0xdc6   :  { %v3222_v48 = vadd.f32 0.5, %v3221_v45  ;;  %v3226_v42 = vmul.f32 %v4958_v26, %v3220_v31  ;;  %v3223_v47 = vmul.f32 0.5, %v4960_v30  ;;  %v5245_v31 = vld [vmem:[#allocation2 + $0xcc] ss:$16 sps:$4 sm:$0xff]   ;;  %v5250_v26 = vld [vmem:[#allocation2 + $0xa0] ss:$16 sps:$4 sm:$0xff]  }
 0xdc7   :  { %v5249_v45 = vld [vmem:[#allocation2 + $0xac] ss:$16 sps:$4 sm:$0xff]  }
 0xdc8   :  { %v3225_v53 = vmul.f32 %v3222_v48, %v7612_v43  ;;  %v3224_v54 = vadd.f32 0.5, %v3223_v47  ;;  %v5244_v43 = vld [vmem:[#allocation2 + $0xe8] ss:$16 sps:$4 sm:$0xff]   ;;  %v5253_v30 = vld [vmem:[#allocation2 + $0x8c] ss:$16 sps:$4 sm:$0xff]  }
 0xdc9   :  { %v5248_v48 = vld [vmem:[#allocation2 + $0xc8] ss:$16 sps:$4 sm:$0xff]   ;;  %v5254_v47 = vld [vmem:[#allocation2 + $0x80] ss:$16 sps:$4 sm:$0xff]  }
 0xdca   :  { %v7858_v10 = vadd.f32 %v3226_v42, %v3225_v53  ;;  %v5251_v53 = vld [vmem:[#allocation2 + $0x84] ss:$16 sps:$4 sm:$0xff]   ;;  %v5252_v42 = vld [vmem:[#allocation2 + $0xa8] ss:$16 sps:$4 sm:$0xff]  }
 0xdcc   :  { %4961 = vtanh.f32 %v7858_v10 }
 0xdd9   :  { %v4962_v39 = vpop.eup %4961 }
 0xdda   :  { %v3229_v34 = vmul.f32 %v4962_v39, %v3224_v54  ;;  %v5256_v54 = vld [vmem:[#allocation2 + $0x88] ss:$16 sps:$4 sm:$0xff]   ;;  %v5257_v39 = vld [vmem:[#allocation2 + $0x6c] ss:$16 sps:$4 sm:$0xff]  }
 0xddc   :  { %4566 = vmatmul.mubr.f32.vlgmr.msra.gmra.mxu0 %v3229_v34  ;;  %v3303_v40 = vrot.slane %v3229_v34, 1 }
 0xddd   :  { %3378 = vmatpush1.bf16.msra.mxu0 %v5242_v19  ;;  %3409 = vmatprep.mubr.bf16.mxu0 %v8595_v36  ;;  %v5259_v19 = vld [vmem:[#allocation2 + $0x44] ss:$16 sps:$4 sm:$0xff]  }
 0xdde   :  { %4601 = vmatmul.mubr.f32.vlgmr.msra.gmra.mxu1 %v3303_v40  ;;  %3379 = vmatprep.subr.bf16.mxu0 %v5243_v0  ;;  %v5258_v40 = vld [vmem:[#allocation2 + $0x60] ss:$16 sps:$4 sm:$0xff]   ;;  %v5260_v0 = vld [vmem:[#allocation2 + $0x68] ss:$16 sps:$4 sm:$0xff]  }
 0xddf   :  { %3419 = vmatpush1.bf16.msra.mxu1 %v5244_v43  ;;  %3450 = vmatprep.mubr.bf16.mxu1 %v8595_v36  ;;  %v5255_v36 = vld [vmem:[#allocation2 + $0x64] ss:$16 sps:$4 sm:$0xff]   ;;  %v5261_v43 = vld [vmem:[#allocation2 + $0x4c] ss:$16 sps:$4 sm:$0xff]  }
 0xde0   :  { %3420 = vmatprep.subr.bf16.mxu1 %v5245_v31  ;;  %v5262_v31 = vld [vmem:[#allocation2 + $0x40] ss:$16 sps:$4 sm:$0xff]  }
 0xde1   :  { %3380 = vmatpush1.bf16.msra.mxu0 %v5246_v16  ;;  %v5263_v16 = vld [vmem:[#allocation2 + $0x48] ss:$16 sps:$4 sm:$0xff]  }
 0xde2   :  { %3381 = vmatprep.subr.bf16.mxu0 %v5247_v17  ;;  %v3230_v17 = vpack.c.bf16 %v3229_v34, %v3229_v34  ;;  %v9137_v34 = vld [vmem:[#allocation80_spill] sm:$0xff] }
 0xde3   :  { %3421 = vmatpush1.bf16.msra.mxu1 %v5248_v48  ;;  %v9138_v48 = vld [vmem:[#allocation83_spill] sm:$0xff] }
 0xde4   :  { %3422 = vmatprep.subr.bf16.mxu1 %v5249_v45  ;;  %v9139_v45 = vld [vmem:[#allocation82_spill] sm:$0xff] }
 0xde5   :  { %3382 = vmatpush1.bf16.msra.mxu0 %v5250_v26  ;;  %v9140_v26 = vld [vmem:[#allocation85_spill] sm:$0xff] }
 0xde6   :  { %3383 = vmatprep.subr.bf16.mxu0 %v5251_v53  ;;  %v9141_v53 = vld [vmem:[#allocation84_spill] sm:$0xff] }
 0xde7   :  { %3423 = vmatpush1.bf16.msra.mxu1 %v5252_v42  ;;  %v9142_v42 = vld [vmem:[#allocation87_spill] sm:$0xff] }
 0xde8   :  { %3424 = vmatprep.subr.bf16.mxu1 %v5253_v30  ;;  %v9143_v30 = vld [vmem:[#allocation86_spill] sm:$0xff] }
 0xde9   :  { %3384 = vmatpush1.bf16.msra.mxu0 %v5254_v47  ;;  %v9144_v47 = vld [vmem:[#allocation89_spill] sm:$0xff] }
 0xdea   :  { %3385 = vmatprep.subr.bf16.mxu0 %v5255_v36  ;;  %v9145_v36 = vld [vmem:[#allocation88_spill] sm:$0xff] }
 0xdeb   :  { %3425 = vmatpush1.bf16.msra.mxu1 %v5256_v54  ;;  %v9146_v54 = vld [vmem:[#allocation91_spill] sm:$0xff] }
 0xdec   :  { %3426 = vmatprep.subr.bf16.mxu1 %v5257_v39  ;;  %v9147_v39 = vld [vmem:[#allocation90_spill] sm:$0xff] }
 0xded   :  { %3386 = vmatpush1.bf16.msra.mxu0 %v5258_v40  ;;  %v9148_v40 = vld [vmem:[#allocation93_spill] sm:$0xff] }
 0xdee   :  { %3387 = vmatprep.subr.bf16.mxu0 %v5259_v19  ;;  %v9149_v19 = vld [vmem:[#allocation92_spill] sm:$0xff] }
 0xdef   :  { %3427 = vmatpush1.bf16.msra.mxu1 %v5260_v0  ;;  %v9150_v0 = vld [vmem:[#allocation95_spill] sm:$0xff] }
 0xdf0   :  { %3428 = vmatprep.subr.bf16.mxu1 %v5261_v43  ;;  %v9151_v43 = vld [vmem:[#allocation94_spill] sm:$0xff] }
 0xdf1   :  { %3388 = vmatpush1.bf16.msra.mxu0 %v5262_v31  ;;  %v9152_v31 = vld [vmem:[#allocation97_spill] sm:$0xff] }
 0xdf2   :  { %3389 = vmatprep.subr.bf16.mxu0 %v7196_v22  ;;  %v9115_v22 = vld [vmem:[#allocation35_spill] sm:$0xff] }
 0xdf3   :  { %3429 = vmatpush1.bf16.msra.mxu1 %v5263_v16  ;;  %v9153_v16 = vld [vmem:[#allocation96_spill] sm:$0xff] }
 0xdf4   :  { %3430 = vmatprep.subr.bf16.mxu1 %v9022_v52  ;;  %v9116_v52 = vld [vmem:[#allocation36_spill] sm:$0xff] }
 0xdf5   :  { %3390 = vmatpush1.bf16.msra.mxu0 %v9023_v60  ;;  %v9117_v60 = vld [vmem:[#allocation37_spill] sm:$0xff] }
 0xdf6   :  { %3391 = vmatprep.subr.bf16.mxu0 %v9024_v11  ;;  %v9118_v11 = vld [vmem:[#allocation38_spill] sm:$0xff] }
 0xdf7   :  { %3431 = vmatpush1.bf16.msra.mxu1 %v9025_v35  ;;  %v9119_v35 = vld [vmem:[#allocation40_spill] sm:$0xff] }
 0xdf8   :  { %3432 = vmatprep.subr.bf16.mxu1 %v9026_v51  ;;  %v9120_v51 = vld [vmem:[#allocation39_spill] sm:$0xff] }
 0xdf9   :  { %3392 = vmatpush1.bf16.msra.mxu0 %v9027_v1  ;;  %v9121_v1 = vld [vmem:[#allocation41_spill] sm:$0xff] }
 0xdfa   :  { %3479 = vmatprep.subr.bf16.mxu0 %v9028_v41  ;;  %v9122_v41 = vld [vmem:[#allocation67_spill] sm:$0xff] }
 0xdfb   :  { %3433 = vmatpush1.bf16.msra.mxu1 %v9029_v55  ;;  %v9123_v55 = vld [vmem:[#allocation66_spill] sm:$0xff] }
 0xdfc   :  { %3410 = vmatmul.mubr.bf16.vlgmr.msra.gmra.mxu0 %v7728_v3  ;;  %3520 = vmatprep.subr.bf16.mxu1 %v9030_v58  ;;  %v9124_v58 = vld [vmem:[#allocation69_spill] sm:$0xff] }
 0xdfd   :  { %3511 = vmatprep.mubr.bf16.mxu0 %v3230_v17  ;;  %3480 = vmatpush1.bf16.msra.mxu0 %v9031_v61  ;;  %v9125_v61 = vld [vmem:[#allocation68_spill] sm:$0xff] }
 0xdfe   :  { %3451 = vmatmul.mubr.bf16.vlgmr.msra.gmra.mxu1 %v7728_v3  ;;  %3481 = vmatprep.subr.bf16.mxu0 %v9032_v33  ;;  %v9126_v33 = vld [vmem:[#allocation71_spill] sm:$0xff]  ;;  %v9136_v3 = vld [vmem:[#allocation81_spill] sm:$0xff] }
 0xdff   :  { %3552 = vmatprep.mubr.bf16.mxu1 %v3230_v17  ;;  %3521 = vmatpush1.bf16.msra.mxu1 %v9033_v57  ;;  %v9127_v57 = vld [vmem:[#allocation70_spill] sm:$0xff] }
 0xe00   :  { %3522 = vmatprep.subr.bf16.mxu1 %v9034_v62  ;;  %v9128_v62 = vld [vmem:[#allocation73_spill] sm:$0xff]  ;;  %v9154_v17 = vld [vmem:[#allocation98_spill] sm:$0xff] }
 0xe01   :  { %3482 = vmatpush1.bf16.msra.mxu0 %v9035_v13  ;;  %v9129_v13 = vld [vmem:[#allocation72_spill] sm:$0xff] }
 0xe02   :  { %3483 = vmatprep.subr.bf16.mxu0 %v9036_v63  ;;  %v9130_v63 = vld [vmem:[#allocation75_spill] sm:$0xff] }
 0xe03   :  { %3523 = vmatpush1.bf16.msra.mxu1 %v9037_v9  ;;  %v9131_v9 = vld [vmem:[#allocation74_spill] sm:$0xff] }
 0xe04   :  { %3524 = vmatprep.subr.bf16.mxu1 %v9038_v56  ;;  %v9132_v56 = vld [vmem:[#allocation77_spill] sm:$0xff] }
 0xe05   :  { %3484 = vmatpush1.bf16.msra.mxu0 %v9039_v59  ;;  %v9133_v59 = vld [vmem:[#allocation76_spill] sm:$0xff] }
 0xe06   :  { %3485 = vmatprep.subr.bf16.mxu0 %v9040_v18  ;;  %v9134_v18 = vld [vmem:[#allocation79_spill] sm:$0xff] }
 0xe07   :  { %3525 = vmatpush1.bf16.msra.mxu1 %v9041_v21  ;;  %v9135_v21 = vld [vmem:[#allocation78_spill] sm:$0xff] }
 0xe08   :  { %3526 = vmatprep.subr.bf16.mxu1 %v9115_v22  ;;  %v9155_v22 = vld [vmem:[#allocation100_spill] sm:$0xff] }
 0xe09   :  { %3486 = vmatpush1.bf16.msra.mxu0 %v9116_v52  ;;  %v9156_v52 = vld [vmem:[#allocation101_spill] sm:$0xff] }
 0xe0a   :  { %3487 = vmatprep.subr.bf16.mxu0 %v9117_v60  ;;  %v9157_v60 = vld [vmem:[#allocation50_spill] sm:$0xff] }
 0xe0b   :  { %3527 = vmatpush1.bf16.msra.mxu1 %v9118_v11  ;;  %v9158_v11 = vld [vmem:[#allocation52_spill] sm:$0xff] }
 0xe0c   :  { %3528 = vmatprep.subr.bf16.mxu1 %v9119_v35  ;;  %v9159_v35 = vld [vmem:[#allocation51_spill] sm:$0xff] }
 0xe0d   :  { %3488 = vmatpush1.bf16.msra.mxu0 %v9120_v51  ;;  %v9160_v51 = vld [vmem:[#allocation53_spill] sm:$0xff] }
 0xe0e   :  { %3489 = vmatprep.subr.bf16.mxu0 %v9121_v1  ;;  %v9161_v1 = vld [vmem:[#allocation104_spill] sm:$0xff] }
 0xe0f   :  { %3529 = vmatpush1.bf16.msra.mxu1 %v9122_v41  ;;  %v9162_v41 = vld [vmem:[#allocation42_spill] sm:$0xff] }
 0xe10   :  { %3530 = vmatprep.subr.bf16.mxu1 %v9123_v55  ;;  %v9163_v55 = vld [vmem:[#allocation105_spill] sm:$0xff] }
 0xe11   :  { %3490 = vmatpush1.bf16.msra.mxu0 %v9124_v58  ;;  %v9164_v58 = vld [vmem:[#allocation44_spill] sm:$0xff] }
 0xe12   :  { %3491 = vmatprep.subr.bf16.mxu0 %v9125_v61  ;;  %v9165_v61 = vld [vmem:[#allocation106_spill] sm:$0xff] }
 0xe13   :  { %3531 = vmatpush1.bf16.msra.mxu1 %v9126_v33 }
 0xe14   :  { %3532 = vmatprep.subr.bf16.mxu1 %v9127_v57  ;;  %v7942_v57 = vld [vmem:[%s8033_s3 + $0x100] sm:$0x1] }
 0xe15   :  { %3492 = vmatpush1.bf16.msra.mxu0 %v9128_v62 }
 0xe16   :  { %3493 = vmatprep.subr.bf16.mxu0 %v9129_v13 }
 0xe17   :  { %3533 = vmatpush1.bf16.msra.mxu1 %v9130_v63 }
 0xe18   :  { %3534 = vmatprep.subr.bf16.mxu1 %v9131_v9 }
 0xe19   :  { %3494 = vmatpush1.bf16.msra.mxu0 %v9132_v56 }
 0xe1a   :  { %3495 = vmatprep.subr.bf16.mxu0 %v9133_v59 }
 0xe1b   :  { %3535 = vmatpush1.bf16.msra.mxu1 %v9134_v18  ;;  %v9166_v18 = vld [vmem:[#allocation62_spill] sm:$0xff] }
 0xe1c   :  { %3536 = vmatprep.subr.bf16.mxu1 %v9135_v21 }
 0xe1d   :  { %3496 = vmatpush2.bf16.msra.mxu0 %v9136_v3 }
 0xe1e   :  { %3497 = vmatprep.subr.bf16.mxu0 %v9137_v34 }
 0xe1f   :  { %3537 = vmatpush2.bf16.msra.mxu1 %v9138_v48  ;;  %v9167_v48 = vld [vmem:[#allocation64_spill] sm:$0xff] }
 0xe20   :  { %3538 = vmatprep.subr.bf16.mxu1 %v9139_v45 }
 0xe21   :  { %3498 = vmatpush2.bf16.msra.mxu0 %v9140_v26  ;;  %v9168_v26 = vld [vmem:[#allocation63_spill] sm:$0xff] }
 0xe22   :  { %3499 = vmatprep.subr.bf16.mxu0 %v9141_v53 }
 0xe23   :  { %3539 = vmatpush2.bf16.msra.mxu1 %v9142_v42 }
 0xe24   :  { %3540 = vmatprep.subr.bf16.mxu1 %v9143_v30 }
 0xe25   :  { %3500 = vmatpush2.bf16.msra.mxu0 %v9144_v47 }
 0xe26   :  { %3501 = vmatprep.subr.bf16.mxu0 %v9145_v36 }
 0xe27   :  { %3541 = vmatpush2.bf16.msra.mxu1 %v9146_v54 }
 0xe28   :  { %3542 = vmatprep.subr.bf16.mxu1 %v9147_v39  ;;  %v9169_v39 = vld [vmem:[#allocation65_spill] sm:$0xff] }
 0xe29   :  { %3502 = vmatpush2.bf16.msra.mxu0 %v9148_v40 }
 0xe2a   :  { %3503 = vmatprep.subr.bf16.mxu0 %v9149_v19 }
 0xe2b   :  { %3543 = vmatpush2.bf16.msra.mxu1 %v9150_v0 }
 0xe2c   :  { %3544 = vmatprep.subr.bf16.mxu1 %v9151_v43 }
 0xe2d   :  { %3504 = vmatpush2.bf16.msra.mxu0 %v9152_v31 }
 0xe2e   :  { %3505 = vmatprep.subr.bf16.mxu0 %v9153_v16 }
 0xe2f   :  { %3545 = vmatpush2.bf16.msra.mxu1 %v9154_v17 }
 0xe30   :  { %3546 = vmatprep.subr.bf16.mxu1 %v9155_v22 }
 0xe31   :  { %3506 = vmatpush2.bf16.msra.mxu0 %v9156_v52 }
 0xe32   :  { %3507 = vmatprep.subr.bf16.mxu0 %v9157_v60 }
 0xe33   :  { %3547 = vmatpush2.bf16.msra.mxu1 %v9158_v11 }
 0xe34   :  { %3548 = vmatprep.subr.bf16.mxu1 %v9159_v35 }
 0xe35   :  { %3508 = vmatpush2.bf16.msra.mxu0 %v9160_v51 }
 0xe36   :  { %3509 = vmatprep.subr.bf16.mxu0 %v9161_v1 }
 0xe37   :  { %3549 = vmatpush2.bf16.msra.mxu1 %v9162_v41 }
 0xe38   :  { %3550 = vmatprep.subr.bf16.mxu1 %v9163_v55 }
 0xe39   :  { %3510 = vmatpush2.bf16.msra.mxu0 %v9164_v58 }
 0xe3a   :  { %4603 = vmatprep.subr.mxu0 %v8528_v37 }
 0xe3b   :  { %3551 = vmatpush2.bf16.msra.mxu1 %v9165_v61 }
 0xe3c   :  { %4638 = vmatprep.subr.mxu1 %v8528_v37 }
 0xe9c   :  { %v3297_v33 = vpop.f32.mrf.mxu0 }
 0xe9d   :  { %v3301_v62 = vadd.f32 %v7942_v57, %v3297_v33 }
 0xe9e   :  { %v4567_v13 = vpop.f32.mrf.mxu0  ;;  %v3371_v63 = vpop.f32.mrf.mxu1 }
 0xe9f   :  { %v3375_v9 = vadd.f32 %v3371_v63, %v3301_v62 }
 0xea0   :  { %v4602_v56 = vpop.f32.mrf.mxu1 }
 0xea1   :  { %3376 = vst.msk [vmem:[%s8034_s4 + $0x6] sm:$0x1] %vm1299_vm2, %v3375_v9 }
 0xebc   :  { %v3411_v59 = vpop.f32.mrf.mxu0 }
 0xebd   :  { %v3459_v21 = vadd.f32 %v3411_v59, %v9166_v18 }
 0xebe   :  { %v3413_v3 = vpop.f32.mrf.mxu0  ;;  %v3452_v34 = vpop.f32.mrf.mxu1 }
 0xebf   :  { %4963 = vtanh.f32 %v3459_v21  ;;  %v3460_v45 = vadd.f32 %v3413_v3, %v9167_v48  ;;  %v3461_v53 = vadd.f32 %v3452_v34, %v9168_v26 }
 0xec0   :  { %v3415_v42 = vpop.f32.mrf.mxu0  ;;  %v3454_v30 = vpop.f32.mrf.mxu1 }
 0xec1   :  { %4965 = vtanh.f32 %v3460_v45  ;;  %v3462_v40 = vadd.f32 %v3454_v30, %v9169_v39 }
 0xec2   :  { %v3416_v47 = vpop.f32.mrf.mxu0  ;;  %v3456_v36 = vpop.f32.mrf.mxu1  ;;  %4967 = vtanh.f32 %v3461_v53 }
 0xec3   :  { %4969 = vtanh.f32 %v3462_v40 }
 0xec4   :  { %v3457_v54 = vpop.f32.mrf.mxu1 }
 0xecc   :  { %v4964_v19 = vpop.eup %4963 }
 0xecd   :  { %v3467_v0 = vmul.f32 0.5, %v4964_v19 }
 0xece   :  { %v4966_v43 = vpop.eup %4965 }
 0xecf   :  { %v3468_v31 = vadd.f32 0.5, %v3467_v0  ;;  %v3469_v16 = vmul.f32 0.5, %v4966_v43  ;;  %v4968_v17 = vpop.eup %4967 }
 0xed0   :  { %v4970_v35 = vpop.eup %4969 }
 0xed1   :  { %v3470_v22 = vadd.f32 0.5, %v3469_v16  ;;  %v3474_v52 = vmul.f32 %v4968_v17, %v3468_v31  ;;  %v3471_v51 = vmul.f32 0.5, %v4970_v35 }
 0xed3   :  { %v3473_v60 = vmul.f32 %v3470_v22, %v7725_v4  ;;  %v3472_v1 = vadd.f32 0.5, %v3471_v51  ;;  %v9184_v4 = vld [vmem:[#allocation99_spill] sm:$0xff] }
 0xed5   :  { %v3475_v11 = vadd.f32 %v3474_v52, %v3473_v60 }
 0xed7   :  { %4971 = vtanh.f32 %v3475_v11 }
 0xee4   :  { %v4972_v41 = vpop.eup %4971 }
 0xee5   :  { %v3477_v55 = vmul.f32 %v4972_v41, %v3472_v1 }
 0xee7   :  { %v3478_v58 = vpack.c.bf16 %v3477_v55, %v3477_v55 }
 0xee9   :  { %3512 = vmatmul.mubr.bf16.vlgmr.msra.gmra.mxu0 %v3478_v58  ;;  %3553 = vmatmul.mubr.bf16.vlgmr.msra.gmra.mxu1 %v3478_v58 }
 0xeea   :  { %4604 = vmatpush3.msra.mxu0 %v7437_v25  ;;  %4639 = vmatpush3.msra.mxu1 %v7443_v46  ;;  %v9170_v25 = vld [vmem:[#allocation5_spill] sm:$0xff]  ;;  %v9171_v46 = vld [vmem:[#allocation10_spill] sm:$0xff] }
 0xeeb   :  { %4605 = vmatprep.subr.mxu0 %v8528_v37  ;;  %4640 = vmatprep.subr.mxu1 %v8528_v37 }
 0xeec   :  { %4606 = vmatpush3.msra.mxu0 %v7451_v23  ;;  %4641 = vmatpush3.msra.mxu1 %v7457_v29  ;;  %v9172_v23 = vld [vmem:[#allocation7_spill] sm:$0xff]  ;;  %v9173_v29 = vld [vmem:[#allocation9_spill] sm:$0xff] }
 0xeed   :  { %4607 = vmatprep.subr.mxu0 %v8528_v37  ;;  %4642 = vmatprep.subr.mxu1 %v8528_v37 }
 0xeee   :  { %4608 = vmatpush3.msra.mxu0 %v7465_v38  ;;  %4643 = vmatpush3.msra.mxu1 %v7471_v14  ;;  %v9174_v38 = vld [vmem:[#allocation8_spill] sm:$0xff]  ;;  %v9175_v14 = vld [vmem:[#allocation11_spill] sm:$0xff] }
 0xeef   :  { %4609 = vmatprep.subr.mxu0 %v8528_v37  ;;  %4644 = vmatprep.subr.mxu1 %v8528_v37 }
 0xef0   :  { %4610 = vmatpush3.msra.mxu0 %v7479_v8  ;;  %4645 = vmatpush3.msra.mxu1 %v7485_v12  ;;  %v9176_v8 = vld [vmem:[#allocation12_spill] sm:$0xff]  ;;  %v9177_v12 = vld [vmem:[#allocation14_spill] sm:$0xff] }
 0xef1   :  { %4611 = vmatprep.subr.mxu0 %v8528_v37  ;;  %4646 = vmatprep.subr.mxu1 %v8528_v37 }
 0xef2   :  { %4612 = vmatpush3.msra.mxu0 %v7493_v15  ;;  %4647 = vmatpush3.msra.mxu1 %v7499_v50  ;;  %v9178_v15 = vld [vmem:[#allocation13_spill] sm:$0xff]  ;;  %v9179_v50 = vld [vmem:[#allocation15_spill] sm:$0xff] }
 0xef3   :  { %4613 = vmatprep.subr.mxu0 %v8528_v37  ;;  %4648 = vmatprep.subr.mxu1 %v8528_v37 }
 0xef4   :  { %4614 = vmatpush3.msra.mxu0 %v7507_v2  ;;  %4649 = vmatpush3.msra.mxu1 %v7513_v7  ;;  %v9180_v2 = vld [vmem:[#allocation16_spill] sm:$0xff]  ;;  %v9181_v7 = vld [vmem:[#allocation18_spill] sm:$0xff] }
 0xef5   :  { %4615 = vmatprep.subr.mxu0 %v8528_v37  ;;  %4650 = vmatprep.subr.mxu1 %v8528_v37 }
 0xef6   :  { %4616 = vmatpush3.msra.mxu0 %v7521_v6  ;;  %4651 = vmatpush3.msra.mxu1 %v7527_v49  ;;  %v9182_v6 = vld [vmem:[#allocation17_spill] sm:$0xff]  ;;  %v9183_v49 = vld [vmem:[#allocation19_spill] sm:$0xff] }
 0xef7   :  { %4617 = vmatprep.subr.mxu0 %v8528_v37  ;;  %4652 = vmatprep.subr.mxu1 %v8528_v37 }
 0xef8   :  { %4618 = vmatpush3.msra.mxu0 %v7535_v24  ;;  %4653 = vmatpush3.msra.mxu1 %v7541_v20 }
 0xef9   :  { %4619 = vmatprep.subr.mxu0 %v8528_v37  ;;  %4654 = vmatprep.subr.mxu1 %v8528_v37 }
 0xefa   :  { %4620 = vmatpush3.msra.mxu0 %v9098_v5  ;;  %4655 = vmatpush3.msra.mxu1 %v9099_v44 }
 0xefb   :  { %4621 = vmatprep.subr.mxu0 %v8528_v37  ;;  %4656 = vmatprep.subr.mxu1 %v8528_v37 }
 0xefc   :  { %4622 = vmatpush3.msra.mxu0 %v9170_v25  ;;  %4657 = vmatpush3.msra.mxu1 %v9171_v46 }
 0xefd   :  { %4623 = vmatprep.subr.mxu0 %v8528_v37  ;;  %4658 = vmatprep.subr.mxu1 %v8528_v37 }
 0xefe   :  { %4624 = vmatpush3.msra.mxu0 %v9172_v23  ;;  %4659 = vmatpush3.msra.mxu1 %v9173_v29 }
 0xeff   :  { %4625 = vmatprep.subr.mxu0 %v8528_v37  ;;  %4660 = vmatprep.subr.mxu1 %v8528_v37 }
 0xf00   :  { %4626 = vmatpush3.msra.mxu0 %v9174_v38  ;;  %4661 = vmatpush3.msra.mxu1 %v9175_v14 }
 0xf01   :  { %4627 = vmatprep.subr.mxu0 %v8528_v37  ;;  %4662 = vmatprep.subr.mxu1 %v8528_v37 }
 0xf02   :  { %4628 = vmatpush3.msra.mxu0 %v9176_v8  ;;  %4663 = vmatpush3.msra.mxu1 %v9177_v12 }
 0xf03   :  { %4629 = vmatprep.subr.mxu0 %v8528_v37  ;;  %4664 = vmatprep.subr.mxu1 %v8528_v37 }
 0xf04   :  { %4630 = vmatpush3.msra.mxu0 %v9178_v15  ;;  %4665 = vmatpush3.msra.mxu1 %v9179_v50 }
 0xf05   :  { %4631 = vmatprep.subr.mxu0 %v8528_v37  ;;  %4666 = vmatprep.subr.mxu1 %v8528_v37 }
 0xf06   :  { %4632 = vmatpush3.msra.mxu0 %v9180_v2  ;;  %4635 = vmatprep.mubr.msk.f32.mxu0 %vm5292_vm1, %v8528_v37 }
 0xf07   :  { %4633 = vmatprep.subr.mxu0 %v8528_v37  ;;  %4667 = vmatpush3.msra.mxu1 %v9181_v7 }
 0xf08   :  { %4634 = vmatpush3.msra.mxu0 %v9182_v6  ;;  %4668 = vmatprep.subr.mxu1 %v8528_v37 }
 0xf09   :  { %4669 = vmatpush3.msra.mxu1 %v9183_v49  ;;  %4670 = vmatprep.mubr.msk.f32.mxu1 %vm5292_vm1, %v8528_v37 }
 0xfa9   :  { %v3513_v24 = vpop.f32.mrf.mxu0  ;;  %v3554_v20 = vpop.f32.mrf.mxu1 }
 0xfaa   :  { %v3514_v5 = vadd.f32 %v3513_v24, %v9184_v4  ;;  %v3555_v63 = vadd.f32 %v3554_v20, %v5983_v32 }
 0xfab   :  { %v3515_v44 = vpop.f32.mrf.mxu0  ;;  %v3556_v61 = vpop.f32.mrf.mxu1 }
 0xfac   :  { %4973 = vtanh.f32 %v3514_v5  ;;  %v3516_v33 = vadd.f32 %v3515_v44, %v5978_v27  ;;  %v3557_v59 = vadd.f32 %v3556_v61, %v5989_v28 }
 0xfad   :  { %v3517_v62 = vpop.f32.mrf.mxu0  ;;  %v3558_v13 = vpop.f32.mrf.mxu1 }
 0xfae   :  { %4975 = vtanh.f32 %v3516_v33 }
 0xfaf   :  { %v3518_v9 = vpop.f32.mrf.mxu0  ;;  %v3559_v56 = vpop.f32.mrf.mxu1  ;;  %4977 = vtanh.f32 %v3555_v63 }
 0xfb0   :  { %4979 = vtanh.f32 %v3557_v59 }
 0xfb9   :  { %v4974_v37 = vpop.eup %4973 }
 0xfba   :  { %v3565_v18 = vmul.f32 0.5, %v4974_v37 }
 0xfbb   :  { %v4976_v21 = vpop.eup %4975 }
 0xfbc   :  { %v3566_v3 = vadd.f32 0.5, %v3565_v18  ;;  %v3567_v34 = vmul.f32 0.5, %v4976_v21  ;;  %v4978_v45 = vpop.eup %4977 }
 0xfbd   :  { %v4980_v32 = vpop.eup %4979 }
 0xfbe   :  { %v3568_v48 = vadd.f32 0.5, %v3567_v34  ;;  %v3572_v26 = vmul.f32 %v4978_v45, %v3566_v3  ;;  %v3569_v42 = vmul.f32 0.5, %v4980_v32 }
 0xfc0   :  { %v3571_v27 = vmul.f32 %v3568_v48, %v7858_v10  ;;  %v3570_v30 = vadd.f32 0.5, %v3569_v42 }
 0xfc2   :  { %v3573_v53 = vadd.f32 %v3572_v26, %v3571_v27 }
 0xfc4   :  { %4981 = vtanh.f32 %v3573_v53 }
 0xfd1   :  { %v4982_v47 = vpop.eup %4981 }
 0xfd2   :  { %v3575_v36 = vmul.f32 %v4982_v47, %v3570_v30 }
 0xfd4   :  { %4636 = vmatmul.mubr.f32.vlgmr.msra.gmra.mxu0 %v3575_v36  ;;  %v3648_v28 = vrot.slane %v3575_v36, 1 }
 0xfd6   :  { %4671 = vmatmul.mubr.f32.vlgmr.msra.gmra.mxu1 %v3648_v28 }
0x1094   :  { %v3642_v54 = vpop.f32.mrf.mxu0 }
0x1095   :  { %v3646_v39 = vadd.f32 %v7942_v57, %v3642_v54 }
0x1096   :  { %v4637_v40 = vpop.f32.mrf.mxu0  ;;  %v3716_v19 = vpop.f32.mrf.mxu1 }
0x1097   :  { %v3720_v0 = vadd.f32 %v3716_v19, %v3646_v39 }
0x1098   :  { %v4672_v43 = vpop.f32.mrf.mxu1 }
0x1099   :  { %3721 = vst.msk [vmem:[%s8034_s4 + $0x7] sm:$0x1] %vm1299_vm2, %v3720_v0 }
0x109a   :  { %3726 = vsyncpa [#allocation3], 1 }

</bundles_post_ra>
